<compile_context>
chip_gen: v5e
topology: v5e:2x2
jax: 0.10.0
libtpu: 0.0.40
codegen_flags: <defaults>
</compile_context>

<pallas_src>
import functools

import jax
import jax.numpy as jnp
import numpy as np
from jax import lax
from jax.experimental import pallas as pl
from jax.experimental.pallas import tpu as pltpu


# ----------------------------------------------------------------------------
# Fused ViT kernel
# ----------------------------------------------------------------------------
def _layernorm(y, gamma, beta):
    # f32 statistics (v5e has no bf16 VPU/EUP).
    mu = jnp.mean(y, axis=-1, keepdims=True)
    var = jnp.mean((y - mu) ** 2, axis=-1, keepdims=True)
    return (y - mu) * lax.rsqrt(var + 1e-5) * gamma + beta


def _vit_kernel(
    patches_ref, wpt_ref, bpt_ref, pos_ref,
    wqkv_ref, bqkv_ref, wo_ref, bo_ref, g1_ref, be1_ref,
    w1_ref, b1_ref, w2_ref, b2_ref, g2_ref, be2_ref,
    o_ref, act_ref, qkv_ref, ctx_ref,
    *, num_heads, head_dim, b_tile,
):
    l = pl.program_id(1)
    E = wo_ref.shape[1]
    S = E                                   # tokens per image (seq_len == E)

    # ---- layer-0 preamble: patch embedding (transposed) + positional add ----
    @pl.when(l == 0)
    def _():
        for bt in range(b_tile):            # static unroll over batch block
            # pe^T = w_patch^T @ patches^T -> (E, Np); bias broadcasts over lanes.
            pe_t = jnp.dot(wpt_ref[...], patches_ref[bt],
                           preferred_element_type=jnp.float32)
            act_ref[bt * S:(bt + 1) * S, :] = pe_t + bpt_ref[...] + pos_ref[...]

    x = act_ref[...]                        # (B_TILE*S, D) f32, VMEM-resident
    xb = x.astype(jnp.bfloat16)

    # ---- fused QKV projection over all B_TILE*S rows; result parked in VMEM --
    qkv_ref[...] = (jnp.dot(xb, wqkv_ref[0],
                            preferred_element_type=jnp.float32)
                    + bqkv_ref[0]).astype(jnp.bfloat16)      # (B_TILE*S, 3E)

    # ---- attention: per image / per head, q/k/v as free ref slices ----------
    scale = head_dim ** (-0.5)
    for bt in range(b_tile):                # static unroll over images
        r0 = bt * S
        for h in range(num_heads):          # static unroll over heads
            lo = h * head_dim
            qh = qkv_ref[r0:r0 + S, lo:lo + head_dim]
            kh = qkv_ref[r0:r0 + S, E + lo:E + lo + head_dim]
            vh = qkv_ref[r0:r0 + S, 2 * E + lo:2 * E + lo + head_dim]
            # q @ k^T without materializing a transpose.
            s = lax.dot_general(qh, kh, (((1,), (1,)), ((), ())),
                                preferred_element_type=jnp.float32) * scale
            s = s - jnp.max(s, axis=-1, keepdims=True)
            p = jnp.exp(s)
            p = p * pl.reciprocal(jnp.sum(p, axis=-1, keepdims=True), approx=True)
            ctx = jnp.dot(p.astype(jnp.bfloat16), vh,
                          preferred_element_type=jnp.float32)   # (S, hd)
            # Head output parked at its column offset; no per-head Wo matmul.
            ctx_ref[r0:r0 + S, lo:lo + head_dim] = ctx.astype(jnp.bfloat16)

    # ---- output projection: ONE full-depth matmul over all rows -------------
    attn = jnp.dot(ctx_ref[...], wo_ref[0],
                   preferred_element_type=jnp.float32) + bo_ref[0]

    # ---- residual + LayerNorm 1 (f32) ----
    y = _layernorm(x + attn, g1_ref[0], be1_ref[0])

    # ---- MLP (bf16 matmuls, f32 accumulate) ----
    h1 = jnp.maximum(
        jnp.dot(y.astype(jnp.bfloat16), w1_ref[0],
                preferred_element_type=jnp.float32) + b1_ref[0], 0.0)
    h2 = jnp.dot(h1.astype(jnp.bfloat16), w2_ref[0],
                 preferred_element_type=jnp.float32) + b2_ref[0]

    # ---- residual + LayerNorm 2 (f32) ----
    z = _layernorm(y + h2, g2_ref[0], be2_ref[0])

    act_ref[...] = z                        # carry to next layer (VMEM only)

    @pl.when(l == pl.num_programs(1) - 1)
    def _():
        o_ref[...] = z.astype(o_ref.dtype)  # single HBM writeback per batch block


def vit_forward(x, params, num_heads, patch, b_tile=2):
    """Whole-model forward in one pipelined pallas_call, grid = (B//B_TILE, L)."""
    B = x.shape[0]
    patches = extract_patches(x, patch)                    # (B, Np, K)
    Np, K = patches.shape[1], patches.shape[2]
    E = params["w_patch"].shape[1]
    L = params["wqkv"].shape[0]
    mlp = params["w1"].shape[2]
    head_dim = E // num_heads
    assert Np == E, "module's extra transpose requires num_patches == embed_dim"
    assert B % b_tile == 0
    S, D = E, Np                                           # token layout after transpose

    # bf16 for all matmul operands (halves weight DMA bytes); biases/LN/pos f32.
    patches_t = jnp.transpose(patches, (0, 2, 1)).astype(jnp.bfloat16)  # (B, K, Np)
    w_patch_t = params["w_patch"].T.astype(jnp.bfloat16)                # (E, K)
    b_patch_t = params["b_patch"].T                                     # (E, 1)
    pos2d = params["pos"][0]                                            # (Np, E)
    wqkv = params["wqkv"].astype(jnp.bfloat16)
    wo = params["wo"].astype(jnp.bfloat16)
    w1 = params["w1"].astype(jnp.bfloat16)
    w2 = params["w2"].astype(jnp.bfloat16)

    kern = functools.partial(_vit_kernel, num_heads=num_heads,
                             head_dim=head_dim, b_tile=b_tile)

    def wspec(shape):   # per-layer stacked weight: block index follows layer axis
        return pl.BlockSpec(shape, lambda b, l: (l, 0, 0))

    def cspec(shape):   # constant (patch-embed / pos) tensors: fetched once
        return pl.BlockSpec(shape, lambda b, l: (0, 0))

    in_specs = [
        pl.BlockSpec((b_tile, K, Np), lambda b, l: (b, 0, 0)),  # patches^T block
        cspec((E, K)),                                          # w_patch^T
        cspec((E, 1)),                                          # b_patch^T
        cspec((Np, E)),                                         # pos embedding
        wspec((1, E, 3 * E)), wspec((1, 1, 3 * E)),             # fused QKV
        wspec((1, E, E)), wspec((1, 1, E)),                     # out proj
        wspec((1, 1, E)), wspec((1, 1, E)),                     # LN1 gamma, beta
        wspec((1, E, mlp)), wspec((1, 1, mlp)),                 # MLP fc1
        wspec((1, mlp, E)), wspec((1, 1, E)),                   # MLP fc2
        wspec((1, 1, E)), wspec((1, 1, E)),                     # LN2 gamma, beta
    ]

    out_flat = pl.pallas_call(
        kern,
        out_shape=jax.ShapeDtypeStruct((B * S, D), jnp.float32),
        grid=(B // b_tile, L),
        in_specs=in_specs,
        out_specs=pl.BlockSpec((b_tile * S, D), lambda b, l: (b, 0)),
        scratch_shapes=[
            pltpu.VMEM((b_tile * S, D), jnp.float32),        # resident activation
            pltpu.VMEM((b_tile * S, 3 * E), jnp.bfloat16),   # fused QKV parking
            pltpu.VMEM((b_tile * S, E), jnp.bfloat16),       # per-head contexts
        ],
        compiler_params=pltpu.CompilerParams(
            dimension_semantics=("parallel", "arbitrary"),
            # Above the 16/32 MiB scoped defaults; <= physical on every chip
            # generation.  For production dims on v5e/v6e raise further (~100 MB);
            # on v7x (64 MiB physical) tile the MLP hidden dim instead.
            vmem_limit_bytes=64 * 1024 * 1024),
    )(
        patches_t, w_patch_t, b_patch_t, pos2d,
        wqkv, params["bqkv"], wo, params["bo"],
        params["g1"], params["be1"],
        w1, params["b1"], w2, params["b2"],
        params["g2"], params["be2"],
    )
    return out_flat.reshape(B, S, D)


# ----------------------------------------------------------------------------
# Glue (reshapes / parameter plumbing) in plain JAX
# ----------------------------------------------------------------------------
def extract_patches(x, patch):
    """NCHW -> (B, num_patches, C*P*P), matching Conv2d(k=P, stride=P) unfolding."""
    B, C, H, W = x.shape
    hp, wp = H // patch, W // patch
    x = x.reshape(B, C, hp, patch, wp, patch)
    x = jnp.transpose(x, (0, 2, 4, 1, 3, 5))  # (B, hp, wp, C, P, P)
    return x.reshape(B, hp * wp, C * patch * patch)


# ----------------------------------------------------------------------------
# Pure-JAX f32 reference (for verification)
# ----------------------------------------------------------------------------
def _ref_block(x, p, l, num_heads):
    B, S, E = x.shape
    hd = E // num_heads
    qkv = x @ p["wqkv"][l] + p["bqkv"][l]
    q, k, v = qkv[..., :E], qkv[..., E:2 * E], qkv[..., 2 * E:]

    def split(t):
        return jnp.transpose(t.reshape(B, S, num_heads, hd), (0, 2, 1, 3))

    qh, kh, vh = split(q), split(k), split(v)
    s = jnp.einsum("bhqd,bhkd->bhqk", qh, kh) * (hd ** -0.5)
    a = jax.nn.softmax(s, axis=-1)
    ao = jnp.einsum("bhqk,bhkd->bhqd", a, vh)
    ao = jnp.transpose(ao, (0, 2, 1, 3)).reshape(B, S, E)
    ao = ao @ p["wo"][l] + p["bo"][l]

    def ln(y, g, b):
        mu = y.mean(-1, keepdims=True)
        var = ((y - mu) ** 2).mean(-1, keepdims=True)
        return (y - mu) * lax.rsqrt(var + 1e-5) * g + b

    y = ln(x + ao, p["g1"][l], p["be1"][l])
    h1 = jax.nn.relu(y @ p["w1"][l] + p["b1"][l])
    return ln(y + h1 @ p["w2"][l] + p["b2"][l], p["g2"][l], p["be2"][l])


def ref_forward(x, params, num_heads, patch):
    patches = extract_patches(x, patch)
    pe = patches @ params["w_patch"] + params["b_patch"]
    h = jnp.transpose(pe, (0, 2, 1)) + params["pos"]
    for l in range(params["wqkv"].shape[0]):
        h = _ref_block(h, params, l, num_heads)
    return h


# ----------------------------------------------------------------------------
# Deterministic parameter init (per-layer weights stacked along leading L axis)
# ----------------------------------------------------------------------------
def init_params(key, in_channels, patch, embed_dim, mlp_dim, num_layers, num_patches):
    K = in_channels * patch * patch
    E, M, L = embed_dim, mlp_dim, num_layers

    def nrm(k, shape):
        return 0.02 * jax.random.normal(k, shape, jnp.float32)

    ks = jax.random.split(key, 11)
    return {
        "w_patch": nrm(ks[0], (K, E)),
        "b_patch": nrm(ks[1], (1, E)),
        "pos": nrm(ks[2], (1, num_patches, E)),
        "wqkv": nrm(ks[3], (L, E, 3 * E)),
        "bqkv": nrm(ks[4], (L, 1, 3 * E)),
        "wo": nrm(ks[5], (L, E, E)),
        "bo": nrm(ks[6], (L, 1, E)),
        "g1": jnp.ones((L, 1, E), jnp.float32),
        "be1": jnp.zeros((L, 1, E), jnp.float32),
        "w1": nrm(ks[7], (L, E, M)),
        "b1": nrm(ks[8], (L, 1, M)),
        "w2": nrm(ks[9], (L, M, E)),
        "b2": nrm(ks[10], (L, 1, E)),
        "g2": jnp.ones((L, 1, E), jnp.float32),
        "be2": jnp.zeros((L, 1, E), jnp.float32),
    }


# ----------------------------------------------------------------------------
if __name__ == "__main__":
    # Shapes chosen so num_patches == embed_dim (required by the module's own
    # forward for the extra transpose + pos_embedding add to type-check).
    # B=4 with B_TILE=2 keeps a parallel grid axis of size 2 (both v7x TCs fed)
    # while demonstrating the batch-blocked weight reuse.
    B, C, H, W = 4, 4, 16, 16
    patch = 2
    embed_dim = 64          # == num_patches = (16 // 2) ** 2
    num_heads = 4
    mlp_dim = 128
    num_layers = 2
    num_patches = (H // patch) ** 2
    assert num_patches == embed_dim

    key = jax.random.PRNGKey(0)
    kx, kp = jax.random.split(key)
    x = jax.random.normal(kx, (B, C, H, W), jnp.float32)
    params = init_params(kp, C, patch, embed_dim, mlp_dim, num_layers, num_patches)

    out = jax.block_until_ready(vit_forward(x, params, num_heads, patch, b_tile=2))
    ref = jax.block_until_ready(ref_forward(x, params, num_heads, patch))

    assert out.shape == (B, embed_dim, num_patches)
    np.testing.assert_allclose(np.asarray(out), np.asarray(ref), rtol=2e-2, atol=2e-2)

    print("KERNEL_OK")
</pallas_src>

<mosaic_0001>
module attributes {stable_mosaic.version = 11 : i64} {
  func.func @_vit_kernel(%arg0: i32, %arg1: i32, %arg2: memref<2x16x64xbf16, #tpu.memory_space<vmem>>, %arg3: memref<64x16xbf16, #tpu.memory_space<vmem>>, %arg4: memref<64x1xf32, #tpu.memory_space<vmem>>, %arg5: memref<64x64xf32, #tpu.memory_space<vmem>>, %arg6: memref<1x64x192xbf16, #tpu.memory_space<vmem>>, %arg7: memref<1x1x192xf32, #tpu.memory_space<vmem>>, %arg8: memref<1x64x64xbf16, #tpu.memory_space<vmem>>, %arg9: memref<1x1x64xf32, #tpu.memory_space<vmem>>, %arg10: memref<1x1x64xf32, #tpu.memory_space<vmem>>, %arg11: memref<1x1x64xf32, #tpu.memory_space<vmem>>, %arg12: memref<1x64x128xbf16, #tpu.memory_space<vmem>>, %arg13: memref<1x1x128xf32, #tpu.memory_space<vmem>>, %arg14: memref<1x128x64xbf16, #tpu.memory_space<vmem>>, %arg15: memref<1x1x64xf32, #tpu.memory_space<vmem>>, %arg16: memref<1x1x64xf32, #tpu.memory_space<vmem>>, %arg17: memref<1x1x64xf32, #tpu.memory_space<vmem>>, %arg18: memref<128x64xf32, #tpu.memory_space<vmem>>, %arg19: memref<128x64xf32, #tpu.memory_space<vmem>>, %arg20: memref<128x192xbf16, #tpu.memory_space<vmem>>, %arg21: memref<128x64xbf16, #tpu.memory_space<vmem>>) attributes {dimension_semantics = [#tpu.dimension_semantics<parallel>, #tpu.dimension_semantics<arbitrary>], iteration_bounds = array<i64: 2, 2>, scalar_prefetch = 0 : i64, scratch_operands = 3 : i64, tpu.core_type = #tpu.core_type<tc>, window_params = [{transform_indices = @transform_0, window_bounds = array<i64: 2, 16, 64>}, {pipeline_mode = #tpu.pipeline_mode<synchronous>, transform_indices = @transform_1, window_bounds = array<i64: 64, 16>}, {pipeline_mode = #tpu.pipeline_mode<synchronous>, transform_indices = @transform_2, window_bounds = array<i64: 64, 1>}, {pipeline_mode = #tpu.pipeline_mode<synchronous>, transform_indices = @transform_3, window_bounds = array<i64: 64, 64>}, {transform_indices = @transform_4, window_bounds = array<i64: 1, 64, 192>}, {transform_indices = @transform_5, window_bounds = array<i64: 1, 1, 192>}, {transform_indices = @transform_6, window_bounds = array<i64: 1, 64, 64>}, {transform_indices = @transform_7, window_bounds = array<i64: 1, 1, 64>}, {transform_indices = @transform_8, window_bounds = array<i64: 1, 1, 64>}, {transform_indices = @transform_9, window_bounds = array<i64: 1, 1, 64>}, {transform_indices = @transform_10, window_bounds = array<i64: 1, 64, 128>}, {transform_indices = @transform_11, window_bounds = array<i64: 1, 1, 128>}, {transform_indices = @transform_12, window_bounds = array<i64: 1, 128, 64>}, {transform_indices = @transform_13, window_bounds = array<i64: 1, 1, 64>}, {transform_indices = @transform_14, window_bounds = array<i64: 1, 1, 64>}, {transform_indices = @transform_15, window_bounds = array<i64: 1, 1, 64>}, {transform_indices = @transform_16, window_bounds = array<i64: 128, 64>}]} {
    %c0_i32 = arith.constant 0 : i32
    %0 = arith.cmpi eq, %arg1, %c0_i32 : i32
    %1 = arith.extui %0 : i1 to i32
    %c0_i32_0 = arith.constant 0 : i32
    %2 = arith.cmpi ne, %1, %c0_i32_0 : i32
    scf.if %2 {
      %c0_152 = arith.constant 0 : index
      %c0_153 = arith.constant 0 : index
      %258 = vector.load %arg3[%c0_152, %c0_153] : memref<64x16xbf16, #tpu.memory_space<vmem>>, vector<64x16xbf16>
      %c0_154 = arith.constant 0 : index
      %c0_155 = arith.constant 0 : index
      %c0_156 = arith.constant 0 : index
      %259 = vector.load %arg2[%c0_154, %c0_155, %c0_156] : memref<2x16x64xbf16, #tpu.memory_space<vmem>>, vector<1x16x64xbf16>
      %260 = vector.shape_cast %259 : vector<1x16x64xbf16> to vector<16x64xbf16>
      %cst_157 = arith.constant dense<0.000000e+00> : vector<64x64xf32>
      %261 = tpu.matmul %258, %260, %cst_157 {dimension_numbers = #tpu.dot_dimension_numbers<[1], [0], [0], [1], [0, 0, 1, 1], [], []>} : vector<64x16xbf16>, vector<16x64xbf16>, vector<64x64xf32> -> vector<64x64xf32>
      %c0_158 = arith.constant 0 : index
      %c0_159 = arith.constant 0 : index
      %262 = vector.load %arg4[%c0_158, %c0_159] : memref<64x1xf32, #tpu.memory_space<vmem>>, vector<64x1xf32>
      %263 = vector.broadcast %262 : vector<64x1xf32> to vector<64x64xf32>
      %264 = arith.addf %261, %263 : vector<64x64xf32>
      %c0_160 = arith.constant 0 : index
      %c0_161 = arith.constant 0 : index
      %265 = vector.load %arg5[%c0_160, %c0_161] : memref<64x64xf32, #tpu.memory_space<vmem>>, vector<64x64xf32>
      %266 = arith.addf %264, %265 : vector<64x64xf32>
      %c0_162 = arith.constant 0 : index
      %c0_163 = arith.constant 0 : index
      %267 = vector.load %arg19[%c0_162, %c0_163] : memref<128x64xf32, #tpu.memory_space<vmem>>, vector<64x64xf32>
      tpu.vector_store %arg19[%c0_162, %c0_163], %266 {strides = array<i32>} : memref<128x64xf32, #tpu.memory_space<vmem>>, vector<64x64xf32>,
      %c0_164 = arith.constant 0 : index
      %c0_165 = arith.constant 0 : index
      %268 = vector.load %arg3[%c0_164, %c0_165] : memref<64x16xbf16, #tpu.memory_space<vmem>>, vector<64x16xbf16>
      %c1 = arith.constant 1 : index
      %c0_166 = arith.constant 0 : index
      %c0_167 = arith.constant 0 : index
      %269 = vector.load %arg2[%c1, %c0_166, %c0_167] : memref<2x16x64xbf16, #tpu.memory_space<vmem>>, vector<1x16x64xbf16>
      %270 = vector.shape_cast %269 : vector<1x16x64xbf16> to vector<16x64xbf16>
      %cst_168 = arith.constant dense<0.000000e+00> : vector<64x64xf32>
      %271 = tpu.matmul %268, %270, %cst_168 {dimension_numbers = #tpu.dot_dimension_numbers<[1], [0], [0], [1], [0, 0, 1, 1], [], []>} : vector<64x16xbf16>, vector<16x64xbf16>, vector<64x64xf32> -> vector<64x64xf32>
      %c0_169 = arith.constant 0 : index
      %c0_170 = arith.constant 0 : index
      %272 = vector.load %arg4[%c0_169, %c0_170] : memref<64x1xf32, #tpu.memory_space<vmem>>, vector<64x1xf32>
      %273 = vector.broadcast %272 : vector<64x1xf32> to vector<64x64xf32>
      %274 = arith.addf %271, %273 : vector<64x64xf32>
      %c0_171 = arith.constant 0 : index
      %c0_172 = arith.constant 0 : index
      %275 = vector.load %arg5[%c0_171, %c0_172] : memref<64x64xf32, #tpu.memory_space<vmem>>, vector<64x64xf32>
      %276 = arith.addf %274, %275 : vector<64x64xf32>
      %c64_173 = arith.constant 64 : index
      %c0_174 = arith.constant 0 : index
      %277 = vector.load %arg19[%c64_173, %c0_174] : memref<128x64xf32, #tpu.memory_space<vmem>>, vector<64x64xf32>
      tpu.vector_store %arg19[%c64_173, %c0_174], %276 {strides = array<i32>} : memref<128x64xf32, #tpu.memory_space<vmem>>, vector<64x64xf32>,
    } else {
    }
    %c0 = arith.constant 0 : index
    %c0_1 = arith.constant 0 : index
    %3 = vector.load %arg19[%c0, %c0_1] : memref<128x64xf32, #tpu.memory_space<vmem>>, vector<128x64xf32>
    %4 = arith.truncf %3 : vector<128x64xf32> to vector<128x64xbf16>
    %c0_2 = arith.constant 0 : index
    %c0_3 = arith.constant 0 : index
    %c0_4 = arith.constant 0 : index
    %5 = vector.load %arg6[%c0_2, %c0_3, %c0_4] : memref<1x64x192xbf16, #tpu.memory_space<vmem>>, vector<1x64x192xbf16>
    %6 = vector.shape_cast %5 : vector<1x64x192xbf16> to vector<64x192xbf16>
    %cst = arith.constant dense<0.000000e+00> : vector<128x192xf32>
    %7 = tpu.matmul %4, %6, %cst {dimension_numbers = #tpu.dot_dimension_numbers<[1], [0], [0], [1], [0, 0, 1, 1], [], []>} : vector<128x64xbf16>, vector<64x192xbf16>, vector<128x192xf32> -> vector<128x192xf32>
    %c0_5 = arith.constant 0 : index
    %c0_6 = arith.constant 0 : index
    %c0_7 = arith.constant 0 : index
    %8 = vector.load %arg7[%c0_5, %c0_6, %c0_7] : memref<1x1x192xf32, #tpu.memory_space<vmem>>, vector<1x1x192xf32>
    %9 = vector.shape_cast %8 : vector<1x1x192xf32> to vector<1x192xf32>
    %10 = vector.broadcast %9 : vector<1x192xf32> to vector<128x192xf32>
    %11 = arith.addf %7, %10 : vector<128x192xf32>
    %12 = arith.truncf %11 : vector<128x192xf32> to vector<128x192xbf16>
    %c0_8 = arith.constant 0 : index
    %c0_9 = arith.constant 0 : index
    %13 = vector.load %arg20[%c0_8, %c0_9] : memref<128x192xbf16, #tpu.memory_space<vmem>>, vector<128x192xbf16>
    tpu.vector_store %arg20[%c0_8, %c0_9], %12 {strides = array<i32>} : memref<128x192xbf16, #tpu.memory_space<vmem>>, vector<128x192xbf16>,
    %c0_10 = arith.constant 0 : index
    %c0_11 = arith.constant 0 : index
    %14 = vector.load %arg20[%c0_10, %c0_11] : memref<128x192xbf16, #tpu.memory_space<vmem>>, vector<64x16xbf16>
    %c0_12 = arith.constant 0 : index
    %c64 = arith.constant 64 : index
    %15 = vector.load %arg20[%c0_12, %c64] : memref<128x192xbf16, #tpu.memory_space<vmem>>, vector<64x16xbf16>
    %c0_13 = arith.constant 0 : index
    %c128 = arith.constant 128 : index
    %16 = vector.load %arg20[%c0_13, %c128] : memref<128x192xbf16, #tpu.memory_space<vmem>>, vector<64x16xbf16>
    %cst_14 = arith.constant dense<0.000000e+00> : vector<64x64xf32>
    %17 = tpu.matmul %14, %15, %cst_14 {dimension_numbers = #tpu.dot_dimension_numbers<[1], [1], [0], [0], [0, 0, 1, 0], [], []>} : vector<64x16xbf16>, vector<64x16xbf16>, vector<64x64xf32> -> vector<64x64xf32>
    %cst_15 = arith.constant 2.500000e-01 : f32
    %18 = vector.broadcast %cst_15 : f32 to vector<64x64xf32>
    %19 = arith.mulf %17, %18 : vector<64x64xf32>
    %cst_16 = arith.constant dense<0xFF800000> : vector<64xf32>
    %20 = vector.multi_reduction <maximumf>, %19, %cst_16 [1] : vector<64x64xf32> to vector<64xf32>
    %21 = vector.shape_cast %20 : vector<64xf32> to vector<64x1xf32>
    %22 = vector.broadcast %21 : vector<64x1xf32> to vector<64x64xf32>
    %23 = arith.subf %19, %22 : vector<64x64xf32>
    %24 = math.exp %23 : vector<64x64xf32>
    %cst_17 = arith.constant dense<0.000000e+00> : vector<64xf32>
    %25 = vector.multi_reduction <add>, %24, %cst_17 [1] : vector<64x64xf32> to vector<64xf32>
    %26 = vector.shape_cast %25 : vector<64xf32> to vector<64x1xf32>
    %27 = tpu.reciprocal %26 {approx = true} : vector<64x1xf32> -> vector<64x1xf32>
    %28 = vector.broadcast %27 : vector<64x1xf32> to vector<64x64xf32>
    %29 = arith.mulf %24, %28 : vector<64x64xf32>
    %30 = arith.truncf %29 : vector<64x64xf32> to vector<64x64xbf16>
    %cst_18 = arith.constant dense<0.000000e+00> : vector<64x16xf32>
    %31 = tpu.matmul %30, %16, %cst_18 {dimension_numbers = #tpu.dot_dimension_numbers<[1], [0], [0], [1], [0, 0, 1, 1], [], []>} : vector<64x64xbf16>, vector<64x16xbf16>, vector<64x16xf32> -> vector<64x16xf32>
    %32 = arith.truncf %31 : vector<64x16xf32> to vector<64x16xbf16>
    %c0_19 = arith.constant 0 : index
    %c0_20 = arith.constant 0 : index
    %33 = vector.load %arg21[%c0_19, %c0_20] : memref<128x64xbf16, #tpu.memory_space<vmem>>, vector<64x16xbf16>
    tpu.vector_store %arg21[%c0_19, %c0_20], %32 {strides = array<i32>} : memref<128x64xbf16, #tpu.memory_space<vmem>>, vector<64x16xbf16>,
    %c0_21 = arith.constant 0 : index
    %c16 = arith.constant 16 : index
    %34 = vector.load %arg20[%c0_21, %c16] : memref<128x192xbf16, #tpu.memory_space<vmem>>, vector<64x16xbf16>
    %c0_22 = arith.constant 0 : index
    %c80 = arith.constant 80 : index
    %35 = vector.load %arg20[%c0_22, %c80] : memref<128x192xbf16, #tpu.memory_space<vmem>>, vector<64x16xbf16>
    %c0_23 = arith.constant 0 : index
    %c144 = arith.constant 144 : index
    %36 = vector.load %arg20[%c0_23, %c144] : memref<128x192xbf16, #tpu.memory_space<vmem>>, vector<64x16xbf16>
    %cst_24 = arith.constant dense<0.000000e+00> : vector<64x64xf32>
    %37 = tpu.matmul %34, %35, %cst_24 {dimension_numbers = #tpu.dot_dimension_numbers<[1], [1], [0], [0], [0, 0, 1, 0], [], []>} : vector<64x16xbf16>, vector<64x16xbf16>, vector<64x64xf32> -> vector<64x64xf32>
    %cst_25 = arith.constant 2.500000e-01 : f32
    %38 = vector.broadcast %cst_25 : f32 to vector<64x64xf32>
    %39 = arith.mulf %37, %38 : vector<64x64xf32>
    %cst_26 = arith.constant dense<0xFF800000> : vector<64xf32>
    %40 = vector.multi_reduction <maximumf>, %39, %cst_26 [1] : vector<64x64xf32> to vector<64xf32>
    %41 = vector.shape_cast %40 : vector<64xf32> to vector<64x1xf32>
    %42 = vector.broadcast %41 : vector<64x1xf32> to vector<64x64xf32>
    %43 = arith.subf %39, %42 : vector<64x64xf32>
    %44 = math.exp %43 : vector<64x64xf32>
    %cst_27 = arith.constant dense<0.000000e+00> : vector<64xf32>
    %45 = vector.multi_reduction <add>, %44, %cst_27 [1] : vector<64x64xf32> to vector<64xf32>
    %46 = vector.shape_cast %45 : vector<64xf32> to vector<64x1xf32>
    %47 = tpu.reciprocal %46 {approx = true} : vector<64x1xf32> -> vector<64x1xf32>
    %48 = vector.broadcast %47 : vector<64x1xf32> to vector<64x64xf32>
    %49 = arith.mulf %44, %48 : vector<64x64xf32>
    %50 = arith.truncf %49 : vector<64x64xf32> to vector<64x64xbf16>
    %cst_28 = arith.constant dense<0.000000e+00> : vector<64x16xf32>
    %51 = tpu.matmul %50, %36, %cst_28 {dimension_numbers = #tpu.dot_dimension_numbers<[1], [0], [0], [1], [0, 0, 1, 1], [], []>} : vector<64x64xbf16>, vector<64x16xbf16>, vector<64x16xf32> -> vector<64x16xf32>
    %52 = arith.truncf %51 : vector<64x16xf32> to vector<64x16xbf16>
    %c0_29 = arith.constant 0 : index
    %c16_30 = arith.constant 16 : index
    %53 = vector.load %arg21[%c0_29, %c16_30] : memref<128x64xbf16, #tpu.memory_space<vmem>>, vector<64x16xbf16>
    tpu.vector_store %arg21[%c0_29, %c16_30], %52 {strides = array<i32>} : memref<128x64xbf16, #tpu.memory_space<vmem>>, vector<64x16xbf16>,
    %c0_31 = arith.constant 0 : index
    %c32 = arith.constant 32 : index
    %54 = vector.load %arg20[%c0_31, %c32] : memref<128x192xbf16, #tpu.memory_space<vmem>>, vector<64x16xbf16>
    %c0_32 = arith.constant 0 : index
    %c96 = arith.constant 96 : index
    %55 = vector.load %arg20[%c0_32, %c96] : memref<128x192xbf16, #tpu.memory_space<vmem>>, vector<64x16xbf16>
    %c0_33 = arith.constant 0 : index
    %c160 = arith.constant 160 : index
    %56 = vector.load %arg20[%c0_33, %c160] : memref<128x192xbf16, #tpu.memory_space<vmem>>, vector<64x16xbf16>
    %cst_34 = arith.constant dense<0.000000e+00> : vector<64x64xf32>
    %57 = tpu.matmul %54, %55, %cst_34 {dimension_numbers = #tpu.dot_dimension_numbers<[1], [1], [0], [0], [0, 0, 1, 0], [], []>} : vector<64x16xbf16>, vector<64x16xbf16>, vector<64x64xf32> -> vector<64x64xf32>
    %cst_35 = arith.constant 2.500000e-01 : f32
    %58 = vector.broadcast %cst_35 : f32 to vector<64x64xf32>
    %59 = arith.mulf %57, %58 : vector<64x64xf32>
    %cst_36 = arith.constant dense<0xFF800000> : vector<64xf32>
    %60 = vector.multi_reduction <maximumf>, %59, %cst_36 [1] : vector<64x64xf32> to vector<64xf32>
    %61 = vector.shape_cast %60 : vector<64xf32> to vector<64x1xf32>
    %62 = vector.broadcast %61 : vector<64x1xf32> to vector<64x64xf32>
    %63 = arith.subf %59, %62 : vector<64x64xf32>
    %64 = math.exp %63 : vector<64x64xf32>
    %cst_37 = arith.constant dense<0.000000e+00> : vector<64xf32>
    %65 = vector.multi_reduction <add>, %64, %cst_37 [1] : vector<64x64xf32> to vector<64xf32>
    %66 = vector.shape_cast %65 : vector<64xf32> to vector<64x1xf32>
    %67 = tpu.reciprocal %66 {approx = true} : vector<64x1xf32> -> vector<64x1xf32>
    %68 = vector.broadcast %67 : vector<64x1xf32> to vector<64x64xf32>
    %69 = arith.mulf %64, %68 : vector<64x64xf32>
    %70 = arith.truncf %69 : vector<64x64xf32> to vector<64x64xbf16>
    %cst_38 = arith.constant dense<0.000000e+00> : vector<64x16xf32>
    %71 = tpu.matmul %70, %56, %cst_38 {dimension_numbers = #tpu.dot_dimension_numbers<[1], [0], [0], [1], [0, 0, 1, 1], [], []>} : vector<64x64xbf16>, vector<64x16xbf16>, vector<64x16xf32> -> vector<64x16xf32>
    %72 = arith.truncf %71 : vector<64x16xf32> to vector<64x16xbf16>
    %c0_39 = arith.constant 0 : index
    %c32_40 = arith.constant 32 : index
    %73 = vector.load %arg21[%c0_39, %c32_40] : memref<128x64xbf16, #tpu.memory_space<vmem>>, vector<64x16xbf16>
    tpu.vector_store %arg21[%c0_39, %c32_40], %72 {strides = array<i32>} : memref<128x64xbf16, #tpu.memory_space<vmem>>, vector<64x16xbf16>,
    %c0_41 = arith.constant 0 : index
    %c48 = arith.constant 48 : index
    %74 = vector.load %arg20[%c0_41, %c48] : memref<128x192xbf16, #tpu.memory_space<vmem>>, vector<64x16xbf16>
    %c0_42 = arith.constant 0 : index
    %c112 = arith.constant 112 : index
    %75 = vector.load %arg20[%c0_42, %c112] : memref<128x192xbf16, #tpu.memory_space<vmem>>, vector<64x16xbf16>
    %c0_43 = arith.constant 0 : index
    %c176 = arith.constant 176 : index
    %76 = vector.load %arg20[%c0_43, %c176] : memref<128x192xbf16, #tpu.memory_space<vmem>>, vector<64x16xbf16>
    %cst_44 = arith.constant dense<0.000000e+00> : vector<64x64xf32>
    %77 = tpu.matmul %74, %75, %cst_44 {dimension_numbers = #tpu.dot_dimension_numbers<[1], [1], [0], [0], [0, 0, 1, 0], [], []>} : vector<64x16xbf16>, vector<64x16xbf16>, vector<64x64xf32> -> vector<64x64xf32>
    %cst_45 = arith.constant 2.500000e-01 : f32
    %78 = vector.broadcast %cst_45 : f32 to vector<64x64xf32>
    %79 = arith.mulf %77, %78 : vector<64x64xf32>
    %cst_46 = arith.constant dense<0xFF800000> : vector<64xf32>
    %80 = vector.multi_reduction <maximumf>, %79, %cst_46 [1] : vector<64x64xf32> to vector<64xf32>
    %81 = vector.shape_cast %80 : vector<64xf32> to vector<64x1xf32>
    %82 = vector.broadcast %81 : vector<64x1xf32> to vector<64x64xf32>
    %83 = arith.subf %79, %82 : vector<64x64xf32>
    %84 = math.exp %83 : vector<64x64xf32>
    %cst_47 = arith.constant dense<0.000000e+00> : vector<64xf32>
    %85 = vector.multi_reduction <add>, %84, %cst_47 [1] : vector<64x64xf32> to vector<64xf32>
    %86 = vector.shape_cast %85 : vector<64xf32> to vector<64x1xf32>
    %87 = tpu.reciprocal %86 {approx = true} : vector<64x1xf32> -> vector<64x1xf32>
    %88 = vector.broadcast %87 : vector<64x1xf32> to vector<64x64xf32>
    %89 = arith.mulf %84, %88 : vector<64x64xf32>
    %90 = arith.truncf %89 : vector<64x64xf32> to vector<64x64xbf16>
    %cst_48 = arith.constant dense<0.000000e+00> : vector<64x16xf32>
    %91 = tpu.matmul %90, %76, %cst_48 {dimension_numbers = #tpu.dot_dimension_numbers<[1], [0], [0], [1], [0, 0, 1, 1], [], []>} : vector<64x64xbf16>, vector<64x16xbf16>, vector<64x16xf32> -> vector<64x16xf32>
    %92 = arith.truncf %91 : vector<64x16xf32> to vector<64x16xbf16>
    %c0_49 = arith.constant 0 : index
    %c48_50 = arith.constant 48 : index
    %93 = vector.load %arg21[%c0_49, %c48_50] : memref<128x64xbf16, #tpu.memory_space<vmem>>, vector<64x16xbf16>
    tpu.vector_store %arg21[%c0_49, %c48_50], %92 {strides = array<i32>} : memref<128x64xbf16, #tpu.memory_space<vmem>>, vector<64x16xbf16>,
    %c64_51 = arith.constant 64 : index
    %c0_52 = arith.constant 0 : index
    %94 = vector.load %arg20[%c64_51, %c0_52] : memref<128x192xbf16, #tpu.memory_space<vmem>>, vector<64x16xbf16>
    %c64_53 = arith.constant 64 : index
    %c64_54 = arith.constant 64 : index
    %95 = vector.load %arg20[%c64_53, %c64_54] : memref<128x192xbf16, #tpu.memory_space<vmem>>, vector<64x16xbf16>
    %c64_55 = arith.constant 64 : index
    %c128_56 = arith.constant 128 : index
    %96 = vector.load %arg20[%c64_55, %c128_56] : memref<128x192xbf16, #tpu.memory_space<vmem>>, vector<64x16xbf16>
    %cst_57 = arith.constant dense<0.000000e+00> : vector<64x64xf32>
    %97 = tpu.matmul %94, %95, %cst_57 {dimension_numbers = #tpu.dot_dimension_numbers<[1], [1], [0], [0], [0, 0, 1, 0], [], []>} : vector<64x16xbf16>, vector<64x16xbf16>, vector<64x64xf32> -> vector<64x64xf32>
    %cst_58 = arith.constant 2.500000e-01 : f32
    %98 = vector.broadcast %cst_58 : f32 to vector<64x64xf32>
    %99 = arith.mulf %97, %98 : vector<64x64xf32>
    %cst_59 = arith.constant dense<0xFF800000> : vector<64xf32>
    %100 = vector.multi_reduction <maximumf>, %99, %cst_59 [1] : vector<64x64xf32> to vector<64xf32>
    %101 = vector.shape_cast %100 : vector<64xf32> to vector<64x1xf32>
    %102 = vector.broadcast %101 : vector<64x1xf32> to vector<64x64xf32>
    %103 = arith.subf %99, %102 : vector<64x64xf32>
    %104 = math.exp %103 : vector<64x64xf32>
    %cst_60 = arith.constant dense<0.000000e+00> : vector<64xf32>
    %105 = vector.multi_reduction <add>, %104, %cst_60 [1] : vector<64x64xf32> to vector<64xf32>
    %106 = vector.shape_cast %105 : vector<64xf32> to vector<64x1xf32>
    %107 = tpu.reciprocal %106 {approx = true} : vector<64x1xf32> -> vector<64x1xf32>
    %108 = vector.broadcast %107 : vector<64x1xf32> to vector<64x64xf32>
    %109 = arith.mulf %104, %108 : vector<64x64xf32>
    %110 = arith.truncf %109 : vector<64x64xf32> to vector<64x64xbf16>
    %cst_61 = arith.constant dense<0.000000e+00> : vector<64x16xf32>
    %111 = tpu.matmul %110, %96, %cst_61 {dimension_numbers = #tpu.dot_dimension_numbers<[1], [0], [0], [1], [0, 0, 1, 1], [], []>} : vector<64x64xbf16>, vector<64x16xbf16>, vector<64x16xf32> -> vector<64x16xf32>
    %112 = arith.truncf %111 : vector<64x16xf32> to vector<64x16xbf16>
    %c64_62 = arith.constant 64 : index
    %c0_63 = arith.constant 0 : index
    %113 = vector.load %arg21[%c64_62, %c0_63] : memref<128x64xbf16, #tpu.memory_space<vmem>>, vector<64x16xbf16>
    tpu.vector_store %arg21[%c64_62, %c0_63], %112 {strides = array<i32>} : memref<128x64xbf16, #tpu.memory_space<vmem>>, vector<64x16xbf16>,
    %c64_64 = arith.constant 64 : index
    %c16_65 = arith.constant 16 : index
    %114 = vector.load %arg20[%c64_64, %c16_65] : memref<128x192xbf16, #tpu.memory_space<vmem>>, vector<64x16xbf16>
    %c64_66 = arith.constant 64 : index
    %c80_67 = arith.constant 80 : index
    %115 = vector.load %arg20[%c64_66, %c80_67] : memref<128x192xbf16, #tpu.memory_space<vmem>>, vector<64x16xbf16>
    %c64_68 = arith.constant 64 : index
    %c144_69 = arith.constant 144 : index
    %116 = vector.load %arg20[%c64_68, %c144_69] : memref<128x192xbf16, #tpu.memory_space<vmem>>, vector<64x16xbf16>
    %cst_70 = arith.constant dense<0.000000e+00> : vector<64x64xf32>
    %117 = tpu.matmul %114, %115, %cst_70 {dimension_numbers = #tpu.dot_dimension_numbers<[1], [1], [0], [0], [0, 0, 1, 0], [], []>} : vector<64x16xbf16>, vector<64x16xbf16>, vector<64x64xf32> -> vector<64x64xf32>
    %cst_71 = arith.constant 2.500000e-01 : f32
    %118 = vector.broadcast %cst_71 : f32 to vector<64x64xf32>
    %119 = arith.mulf %117, %118 : vector<64x64xf32>
    %cst_72 = arith.constant dense<0xFF800000> : vector<64xf32>
    %120 = vector.multi_reduction <maximumf>, %119, %cst_72 [1] : vector<64x64xf32> to vector<64xf32>
    %121 = vector.shape_cast %120 : vector<64xf32> to vector<64x1xf32>
    %122 = vector.broadcast %121 : vector<64x1xf32> to vector<64x64xf32>
    %123 = arith.subf %119, %122 : vector<64x64xf32>
    %124 = math.exp %123 : vector<64x64xf32>
    %cst_73 = arith.constant dense<0.000000e+00> : vector<64xf32>
    %125 = vector.multi_reduction <add>, %124, %cst_73 [1] : vector<64x64xf32> to vector<64xf32>
    %126 = vector.shape_cast %125 : vector<64xf32> to vector<64x1xf32>
    %127 = tpu.reciprocal %126 {approx = true} : vector<64x1xf32> -> vector<64x1xf32>
    %128 = vector.broadcast %127 : vector<64x1xf32> to vector<64x64xf32>
    %129 = arith.mulf %124, %128 : vector<64x64xf32>
    %130 = arith.truncf %129 : vector<64x64xf32> to vector<64x64xbf16>
    %cst_74 = arith.constant dense<0.000000e+00> : vector<64x16xf32>
    %131 = tpu.matmul %130, %116, %cst_74 {dimension_numbers = #tpu.dot_dimension_numbers<[1], [0], [0], [1], [0, 0, 1, 1], [], []>} : vector<64x64xbf16>, vector<64x16xbf16>, vector<64x16xf32> -> vector<64x16xf32>
    %132 = arith.truncf %131 : vector<64x16xf32> to vector<64x16xbf16>
    %c64_75 = arith.constant 64 : index
    %c16_76 = arith.constant 16 : index
    %133 = vector.load %arg21[%c64_75, %c16_76] : memref<128x64xbf16, #tpu.memory_space<vmem>>, vector<64x16xbf16>
    tpu.vector_store %arg21[%c64_75, %c16_76], %132 {strides = array<i32>} : memref<128x64xbf16, #tpu.memory_space<vmem>>, vector<64x16xbf16>,
    %c64_77 = arith.constant 64 : index
    %c32_78 = arith.constant 32 : index
    %134 = vector.load %arg20[%c64_77, %c32_78] : memref<128x192xbf16, #tpu.memory_space<vmem>>, vector<64x16xbf16>
    %c64_79 = arith.constant 64 : index
    %c96_80 = arith.constant 96 : index
    %135 = vector.load %arg20[%c64_79, %c96_80] : memref<128x192xbf16, #tpu.memory_space<vmem>>, vector<64x16xbf16>
    %c64_81 = arith.constant 64 : index
    %c160_82 = arith.constant 160 : index
    %136 = vector.load %arg20[%c64_81, %c160_82] : memref<128x192xbf16, #tpu.memory_space<vmem>>, vector<64x16xbf16>
    %cst_83 = arith.constant dense<0.000000e+00> : vector<64x64xf32>
    %137 = tpu.matmul %134, %135, %cst_83 {dimension_numbers = #tpu.dot_dimension_numbers<[1], [1], [0], [0], [0, 0, 1, 0], [], []>} : vector<64x16xbf16>, vector<64x16xbf16>, vector<64x64xf32> -> vector<64x64xf32>
    %cst_84 = arith.constant 2.500000e-01 : f32
    %138 = vector.broadcast %cst_84 : f32 to vector<64x64xf32>
    %139 = arith.mulf %137, %138 : vector<64x64xf32>
    %cst_85 = arith.constant dense<0xFF800000> : vector<64xf32>
    %140 = vector.multi_reduction <maximumf>, %139, %cst_85 [1] : vector<64x64xf32> to vector<64xf32>
    %141 = vector.shape_cast %140 : vector<64xf32> to vector<64x1xf32>
    %142 = vector.broadcast %141 : vector<64x1xf32> to vector<64x64xf32>
    %143 = arith.subf %139, %142 : vector<64x64xf32>
    %144 = math.exp %143 : vector<64x64xf32>
    %cst_86 = arith.constant dense<0.000000e+00> : vector<64xf32>
    %145 = vector.multi_reduction <add>, %144, %cst_86 [1] : vector<64x64xf32> to vector<64xf32>
    %146 = vector.shape_cast %145 : vector<64xf32> to vector<64x1xf32>
    %147 = tpu.reciprocal %146 {approx = true} : vector<64x1xf32> -> vector<64x1xf32>
    %148 = vector.broadcast %147 : vector<64x1xf32> to vector<64x64xf32>
    %149 = arith.mulf %144, %148 : vector<64x64xf32>
    %150 = arith.truncf %149 : vector<64x64xf32> to vector<64x64xbf16>
    %cst_87 = arith.constant dense<0.000000e+00> : vector<64x16xf32>
    %151 = tpu.matmul %150, %136, %cst_87 {dimension_numbers = #tpu.dot_dimension_numbers<[1], [0], [0], [1], [0, 0, 1, 1], [], []>} : vector<64x64xbf16>, vector<64x16xbf16>, vector<64x16xf32> -> vector<64x16xf32>
    %152 = arith.truncf %151 : vector<64x16xf32> to vector<64x16xbf16>
    %c64_88 = arith.constant 64 : index
    %c32_89 = arith.constant 32 : index
    %153 = vector.load %arg21[%c64_88, %c32_89] : memref<128x64xbf16, #tpu.memory_space<vmem>>, vector<64x16xbf16>
    tpu.vector_store %arg21[%c64_88, %c32_89], %152 {strides = array<i32>} : memref<128x64xbf16, #tpu.memory_space<vmem>>, vector<64x16xbf16>,
    %c64_90 = arith.constant 64 : index
    %c48_91 = arith.constant 48 : index
    %154 = vector.load %arg20[%c64_90, %c48_91] : memref<128x192xbf16, #tpu.memory_space<vmem>>, vector<64x16xbf16>
    %c64_92 = arith.constant 64 : index
    %c112_93 = arith.constant 112 : index
    %155 = vector.load %arg20[%c64_92, %c112_93] : memref<128x192xbf16, #tpu.memory_space<vmem>>, vector<64x16xbf16>
    %c64_94 = arith.constant 64 : index
    %c176_95 = arith.constant 176 : index
    %156 = vector.load %arg20[%c64_94, %c176_95] : memref<128x192xbf16, #tpu.memory_space<vmem>>, vector<64x16xbf16>
    %cst_96 = arith.constant dense<0.000000e+00> : vector<64x64xf32>
    %157 = tpu.matmul %154, %155, %cst_96 {dimension_numbers = #tpu.dot_dimension_numbers<[1], [1], [0], [0], [0, 0, 1, 0], [], []>} : vector<64x16xbf16>, vector<64x16xbf16>, vector<64x64xf32> -> vector<64x64xf32>
    %cst_97 = arith.constant 2.500000e-01 : f32
    %158 = vector.broadcast %cst_97 : f32 to vector<64x64xf32>
    %159 = arith.mulf %157, %158 : vector<64x64xf32>
    %cst_98 = arith.constant dense<0xFF800000> : vector<64xf32>
    %160 = vector.multi_reduction <maximumf>, %159, %cst_98 [1] : vector<64x64xf32> to vector<64xf32>
    %161 = vector.shape_cast %160 : vector<64xf32> to vector<64x1xf32>
    %162 = vector.broadcast %161 : vector<64x1xf32> to vector<64x64xf32>
    %163 = arith.subf %159, %162 : vector<64x64xf32>
    %164 = math.exp %163 : vector<64x64xf32>
    %cst_99 = arith.constant dense<0.000000e+00> : vector<64xf32>
    %165 = vector.multi_reduction <add>, %164, %cst_99 [1] : vector<64x64xf32> to vector<64xf32>
    %166 = vector.shape_cast %165 : vector<64xf32> to vector<64x1xf32>
    %167 = tpu.reciprocal %166 {approx = true} : vector<64x1xf32> -> vector<64x1xf32>
    %168 = vector.broadcast %167 : vector<64x1xf32> to vector<64x64xf32>
    %169 = arith.mulf %164, %168 : vector<64x64xf32>
    %170 = arith.truncf %169 : vector<64x64xf32> to vector<64x64xbf16>
    %cst_100 = arith.constant dense<0.000000e+00> : vector<64x16xf32>
    %171 = tpu.matmul %170, %156, %cst_100 {dimension_numbers = #tpu.dot_dimension_numbers<[1], [0], [0], [1], [0, 0, 1, 1], [], []>} : vector<64x64xbf16>, vector<64x16xbf16>, vector<64x16xf32> -> vector<64x16xf32>
    %172 = arith.truncf %171 : vector<64x16xf32> to vector<64x16xbf16>
    %c64_101 = arith.constant 64 : index
    %c48_102 = arith.constant 48 : index
    %173 = vector.load %arg21[%c64_101, %c48_102] : memref<128x64xbf16, #tpu.memory_space<vmem>>, vector<64x16xbf16>
    tpu.vector_store %arg21[%c64_101, %c48_102], %172 {strides = array<i32>} : memref<128x64xbf16, #tpu.memory_space<vmem>>, vector<64x16xbf16>,
    %c0_103 = arith.constant 0 : index
    %c0_104 = arith.constant 0 : index
    %174 = vector.load %arg21[%c0_103, %c0_104] : memref<128x64xbf16, #tpu.memory_space<vmem>>, vector<128x64xbf16>
    %c0_105 = arith.constant 0 : index
    %c0_106 = arith.constant 0 : index
    %c0_107 = arith.constant 0 : index
    %175 = vector.load %arg8[%c0_105, %c0_106, %c0_107] : memref<1x64x64xbf16, #tpu.memory_space<vmem>>, vector<1x64x64xbf16>
    %176 = vector.shape_cast %175 : vector<1x64x64xbf16> to vector<64x64xbf16>
    %cst_108 = arith.constant dense<0.000000e+00> : vector<128x64xf32>
    %177 = tpu.matmul %174, %176, %cst_108 {dimension_numbers = #tpu.dot_dimension_numbers<[1], [0], [0], [1], [0, 0, 1, 1], [], []>} : vector<128x64xbf16>, vector<64x64xbf16>, vector<128x64xf32> -> vector<128x64xf32>
    %c0_109 = arith.constant 0 : index
    %c0_110 = arith.constant 0 : index
    %c0_111 = arith.constant 0 : index
    %178 = vector.load %arg9[%c0_109, %c0_110, %c0_111] : memref<1x1x64xf32, #tpu.memory_space<vmem>>, vector<1x1x64xf32>
    %179 = vector.shape_cast %178 : vector<1x1x64xf32> to vector<1x64xf32>
    %180 = vector.broadcast %179 : vector<1x64xf32> to vector<128x64xf32>
    %181 = arith.addf %177, %180 : vector<128x64xf32>
    %182 = arith.addf %3, %181 : vector<128x64xf32>
    %c0_112 = arith.constant 0 : index
    %c0_113 = arith.constant 0 : index
    %c0_114 = arith.constant 0 : index
    %183 = vector.load %arg10[%c0_112, %c0_113, %c0_114] : memref<1x1x64xf32, #tpu.memory_space<vmem>>, vector<1x1x64xf32>
    %184 = vector.shape_cast %183 : vector<1x1x64xf32> to vector<1x64xf32>
    %c0_115 = arith.constant 0 : index
    %c0_116 = arith.constant 0 : index
    %c0_117 = arith.constant 0 : index
    %185 = vector.load %arg11[%c0_115, %c0_116, %c0_117] : memref<1x1x64xf32, #tpu.memory_space<vmem>>, vector<1x1x64xf32>
    %186 = vector.shape_cast %185 : vector<1x1x64xf32> to vector<1x64xf32>
    %cst_118 = arith.constant dense<0.000000e+00> : vector<128xf32>
    %187 = vector.multi_reduction <add>, %182, %cst_118 [1] : vector<128x64xf32> to vector<128xf32>
    %188 = vector.shape_cast %187 : vector<128xf32> to vector<128x1xf32>
    %cst_119 = arith.constant 6.400000e+01 : f32
    %189 = vector.broadcast %cst_119 : f32 to vector<128x1xf32>
    %190 = arith.divf %188, %189 : vector<128x1xf32>
    %191 = vector.broadcast %190 : vector<128x1xf32> to vector<128x64xf32>
    %192 = arith.subf %182, %191 : vector<128x64xf32>
    %193 = arith.mulf %192, %192 : vector<128x64xf32>
    %cst_120 = arith.constant dense<0.000000e+00> : vector<128xf32>
    %194 = vector.multi_reduction <add>, %193, %cst_120 [1] : vector<128x64xf32> to vector<128xf32>
    %195 = vector.shape_cast %194 : vector<128xf32> to vector<128x1xf32>
    %cst_121 = arith.constant 6.400000e+01 : f32
    %196 = vector.broadcast %cst_121 : f32 to vector<128x1xf32>
    %197 = arith.divf %195, %196 : vector<128x1xf32>
    %198 = vector.broadcast %190 : vector<128x1xf32> to vector<128x64xf32>
    %199 = arith.subf %182, %198 : vector<128x64xf32>
    %cst_122 = arith.constant 9.99999974E-6 : f32
    %200 = vector.broadcast %cst_122 : f32 to vector<128x1xf32>
    %201 = arith.addf %197, %200 : vector<128x1xf32>
    %202 = math.rsqrt %201 : vector<128x1xf32>
    %203 = vector.broadcast %202 : vector<128x1xf32> to vector<128x64xf32>
    %204 = arith.mulf %199, %203 : vector<128x64xf32>
    %205 = vector.broadcast %184 : vector<1x64xf32> to vector<128x64xf32>
    %206 = arith.mulf %204, %205 : vector<128x64xf32>
    %207 = vector.broadcast %186 : vector<1x64xf32> to vector<128x64xf32>
    %208 = arith.addf %206, %207 : vector<128x64xf32>
    %209 = arith.truncf %208 : vector<128x64xf32> to vector<128x64xbf16>
    %c0_123 = arith.constant 0 : index
    %c0_124 = arith.constant 0 : index
    %c0_125 = arith.constant 0 : index
    %210 = vector.load %arg12[%c0_123, %c0_124, %c0_125] : memref<1x64x128xbf16, #tpu.memory_space<vmem>>, vector<1x64x128xbf16>
    %211 = vector.shape_cast %210 : vector<1x64x128xbf16> to vector<64x128xbf16>
    %cst_126 = arith.constant dense<0.000000e+00> : vector<128x128xf32>
    %212 = tpu.matmul %209, %211, %cst_126 {dimension_numbers = #tpu.dot_dimension_numbers<[1], [0], [0], [1], [0, 0, 1, 1], [], []>} : vector<128x64xbf16>, vector<64x128xbf16>, vector<128x128xf32> -> vector<128x128xf32>
    %c0_127 = arith.constant 0 : index
    %c0_128 = arith.constant 0 : index
    %c0_129 = arith.constant 0 : index
    %213 = vector.load %arg13[%c0_127, %c0_128, %c0_129] : memref<1x1x128xf32, #tpu.memory_space<vmem>>, vector<1x1x128xf32>
    %214 = vector.shape_cast %213 : vector<1x1x128xf32> to vector<1x128xf32>
    %215 = vector.broadcast %214 : vector<1x128xf32> to vector<128x128xf32>
    %216 = arith.addf %212, %215 : vector<128x128xf32>
    %cst_130 = arith.constant 0.000000e+00 : f32
    %217 = vector.broadcast %cst_130 : f32 to vector<128x128xf32>
    %218 = arith.maximumf %216, %217 : vector<128x128xf32>
    %219 = arith.truncf %218 : vector<128x128xf32> to vector<128x128xbf16>
    %c0_131 = arith.constant 0 : index
    %c0_132 = arith.constant 0 : index
    %c0_133 = arith.constant 0 : index
    %220 = vector.load %arg14[%c0_131, %c0_132, %c0_133] : memref<1x128x64xbf16, #tpu.memory_space<vmem>>, vector<1x128x64xbf16>
    %221 = vector.shape_cast %220 : vector<1x128x64xbf16> to vector<128x64xbf16>
    %cst_134 = arith.constant dense<0.000000e+00> : vector<128x64xf32>
    %222 = tpu.matmul %219, %221, %cst_134 {dimension_numbers = #tpu.dot_dimension_numbers<[1], [0], [0], [1], [0, 0, 1, 1], [], []>} : vector<128x128xbf16>, vector<128x64xbf16>, vector<128x64xf32> -> vector<128x64xf32>
    %c0_135 = arith.constant 0 : index
    %c0_136 = arith.constant 0 : index
    %c0_137 = arith.constant 0 : index
    %223 = vector.load %arg15[%c0_135, %c0_136, %c0_137] : memref<1x1x64xf32, #tpu.memory_space<vmem>>, vector<1x1x64xf32>
    %224 = vector.shape_cast %223 : vector<1x1x64xf32> to vector<1x64xf32>
    %225 = vector.broadcast %224 : vector<1x64xf32> to vector<128x64xf32>
    %226 = arith.addf %222, %225 : vector<128x64xf32>
    %227 = arith.addf %208, %226 : vector<128x64xf32>
    %c0_138 = arith.constant 0 : index
    %c0_139 = arith.constant 0 : index
    %c0_140 = arith.constant 0 : index
    %228 = vector.load %arg16[%c0_138, %c0_139, %c0_140] : memref<1x1x64xf32, #tpu.memory_space<vmem>>, vector<1x1x64xf32>
    %229 = vector.shape_cast %228 : vector<1x1x64xf32> to vector<1x64xf32>
    %c0_141 = arith.constant 0 : index
    %c0_142 = arith.constant 0 : index
    %c0_143 = arith.constant 0 : index
    %230 = vector.load %arg17[%c0_141, %c0_142, %c0_143] : memref<1x1x64xf32, #tpu.memory_space<vmem>>, vector<1x1x64xf32>
    %231 = vector.shape_cast %230 : vector<1x1x64xf32> to vector<1x64xf32>
    %cst_144 = arith.constant dense<0.000000e+00> : vector<128xf32>
    %232 = vector.multi_reduction <add>, %227, %cst_144 [1] : vector<128x64xf32> to vector<128xf32>
    %233 = vector.shape_cast %232 : vector<128xf32> to vector<128x1xf32>
    %cst_145 = arith.constant 6.400000e+01 : f32
    %234 = vector.broadcast %cst_145 : f32 to vector<128x1xf32>
    %235 = arith.divf %233, %234 : vector<128x1xf32>
    %236 = vector.broadcast %235 : vector<128x1xf32> to vector<128x64xf32>
    %237 = arith.subf %227, %236 : vector<128x64xf32>
    %238 = arith.mulf %237, %237 : vector<128x64xf32>
    %cst_146 = arith.constant dense<0.000000e+00> : vector<128xf32>
    %239 = vector.multi_reduction <add>, %238, %cst_146 [1] : vector<128x64xf32> to vector<128xf32>
    %240 = vector.shape_cast %239 : vector<128xf32> to vector<128x1xf32>
    %cst_147 = arith.constant 6.400000e+01 : f32
    %241 = vector.broadcast %cst_147 : f32 to vector<128x1xf32>
    %242 = arith.divf %240, %241 : vector<128x1xf32>
    %243 = vector.broadcast %235 : vector<128x1xf32> to vector<128x64xf32>
    %244 = arith.subf %227, %243 : vector<128x64xf32>
    %cst_148 = arith.constant 9.99999974E-6 : f32
    %245 = vector.broadcast %cst_148 : f32 to vector<128x1xf32>
    %246 = arith.addf %242, %245 : vector<128x1xf32>
    %247 = math.rsqrt %246 : vector<128x1xf32>
    %248 = vector.broadcast %247 : vector<128x1xf32> to vector<128x64xf32>
    %249 = arith.mulf %244, %248 : vector<128x64xf32>
    %250 = vector.broadcast %229 : vector<1x64xf32> to vector<128x64xf32>
    %251 = arith.mulf %249, %250 : vector<128x64xf32>
    %252 = vector.broadcast %231 : vector<1x64xf32> to vector<128x64xf32>
    %253 = arith.addf %251, %252 : vector<128x64xf32>
    %c0_149 = arith.constant 0 : index
    %c0_150 = arith.constant 0 : index
    %254 = vector.load %arg19[%c0_149, %c0_150] : memref<128x64xf32, #tpu.memory_space<vmem>>, vector<128x64xf32>
    tpu.vector_store %arg19[%c0_149, %c0_150], %253 {strides = array<i32>} : memref<128x64xf32, #tpu.memory_space<vmem>>, vector<128x64xf32>,
    %c1_i32 = arith.constant 1 : i32
    %255 = arith.cmpi eq, %arg1, %c1_i32 : i32
    %256 = arith.extui %255 : i1 to i32
    %c0_i32_151 = arith.constant 0 : i32
    %257 = arith.cmpi ne, %256, %c0_i32_151 : i32
    scf.if %257 {
      %c0_152 = arith.constant 0 : index
      %c0_153 = arith.constant 0 : index
      %258 = vector.load %arg18[%c0_152, %c0_153] : memref<128x64xf32, #tpu.memory_space<vmem>>, vector<128x64xf32>
      tpu.vector_store %arg18[%c0_152, %c0_153], %253 {strides = array<i32>} : memref<128x64xf32, #tpu.memory_space<vmem>>, vector<128x64xf32>,
    } else {
    }
    return
  }
  func.func @transform_0(%arg0: i32, %arg1: i32) -> (i32, i32, i32) {
    %c0_i32 = arith.constant 0 : i32
    %c0_i32_0 = arith.constant 0 : i32
    %c0_i32_1 = arith.constant 0 : i32
    return %arg0, %c0_i32, %c0_i32_0 : i32, i32, i32
  }
  func.func @transform_1(%arg0: i32, %arg1: i32) -> (i32, i32) {
    %c0_i32 = arith.constant 0 : i32
    %c0_i32_0 = arith.constant 0 : i32
    %c0_i32_1 = arith.constant 0 : i32
    return %c0_i32, %c0_i32_0 : i32, i32
  }
  func.func @transform_2(%arg0: i32, %arg1: i32) -> (i32, i32) {
    %c0_i32 = arith.constant 0 : i32
    %c0_i32_0 = arith.constant 0 : i32
    %c0_i32_1 = arith.constant 0 : i32
    return %c0_i32, %c0_i32_0 : i32, i32
  }
  func.func @transform_3(%arg0: i32, %arg1: i32) -> (i32, i32) {
    %c0_i32 = arith.constant 0 : i32
    %c0_i32_0 = arith.constant 0 : i32
    %c0_i32_1 = arith.constant 0 : i32
    return %c0_i32, %c0_i32_0 : i32, i32
  }
  func.func @transform_4(%arg0: i32, %arg1: i32) -> (i32, i32, i32) {
    %c0_i32 = arith.constant 0 : i32
    %c0_i32_0 = arith.constant 0 : i32
    %c0_i32_1 = arith.constant 0 : i32
    return %arg1, %c0_i32, %c0_i32_0 : i32, i32, i32
  }
  func.func @transform_5(%arg0: i32, %arg1: i32) -> (i32, i32, i32) {
    %c0_i32 = arith.constant 0 : i32
    %c0_i32_0 = arith.constant 0 : i32
    %c0_i32_1 = arith.constant 0 : i32
    return %arg1, %c0_i32, %c0_i32_0 : i32, i32, i32
  }
  func.func @transform_6(%arg0: i32, %arg1: i32) -> (i32, i32, i32) {
    %c0_i32 = arith.constant 0 : i32
    %c0_i32_0 = arith.constant 0 : i32
    %c0_i32_1 = arith.constant 0 : i32
    return %arg1, %c0_i32, %c0_i32_0 : i32, i32, i32
  }
  func.func @transform_7(%arg0: i32, %arg1: i32) -> (i32, i32, i32) {
    %c0_i32 = arith.constant 0 : i32
    %c0_i32_0 = arith.constant 0 : i32
    %c0_i32_1 = arith.constant 0 : i32
    return %arg1, %c0_i32, %c0_i32_0 : i32, i32, i32
  }
  func.func @transform_8(%arg0: i32, %arg1: i32) -> (i32, i32, i32) {
    %c0_i32 = arith.constant 0 : i32
    %c0_i32_0 = arith.constant 0 : i32
    %c0_i32_1 = arith.constant 0 : i32
    return %arg1, %c0_i32, %c0_i32_0 : i32, i32, i32
  }
  func.func @transform_9(%arg0: i32, %arg1: i32) -> (i32, i32, i32) {
    %c0_i32 = arith.constant 0 : i32
    %c0_i32_0 = arith.constant 0 : i32
    %c0_i32_1 = arith.constant 0 : i32
    return %arg1, %c0_i32, %c0_i32_0 : i32, i32, i32
  }
  func.func @transform_10(%arg0: i32, %arg1: i32) -> (i32, i32, i32) {
    %c0_i32 = arith.constant 0 : i32
    %c0_i32_0 = arith.constant 0 : i32
    %c0_i32_1 = arith.constant 0 : i32
    return %arg1, %c0_i32, %c0_i32_0 : i32, i32, i32
  }
  func.func @transform_11(%arg0: i32, %arg1: i32) -> (i32, i32, i32) {
    %c0_i32 = arith.constant 0 : i32
    %c0_i32_0 = arith.constant 0 : i32
    %c0_i32_1 = arith.constant 0 : i32
    return %arg1, %c0_i32, %c0_i32_0 : i32, i32, i32
  }
  func.func @transform_12(%arg0: i32, %arg1: i32) -> (i32, i32, i32) {
    %c0_i32 = arith.constant 0 : i32
    %c0_i32_0 = arith.constant 0 : i32
    %c0_i32_1 = arith.constant 0 : i32
    return %arg1, %c0_i32, %c0_i32_0 : i32, i32, i32
  }
  func.func @transform_13(%arg0: i32, %arg1: i32) -> (i32, i32, i32) {
    %c0_i32 = arith.constant 0 : i32
    %c0_i32_0 = arith.constant 0 : i32
    %c0_i32_1 = arith.constant 0 : i32
    return %arg1, %c0_i32, %c0_i32_0 : i32, i32, i32
  }
  func.func @transform_14(%arg0: i32, %arg1: i32) -> (i32, i32, i32) {
    %c0_i32 = arith.constant 0 : i32
    %c0_i32_0 = arith.constant 0 : i32
    %c0_i32_1 = arith.constant 0 : i32
    return %arg1, %c0_i32, %c0_i32_0 : i32, i32, i32
  }
  func.func @transform_15(%arg0: i32, %arg1: i32) -> (i32, i32, i32) {
    %c0_i32 = arith.constant 0 : i32
    %c0_i32_0 = arith.constant 0 : i32
    %c0_i32_1 = arith.constant 0 : i32
    return %arg1, %c0_i32, %c0_i32_0 : i32, i32, i32
  }
  func.func @transform_16(%arg0: i32, %arg1: i32) -> (i32, i32) {
    %c0_i32 = arith.constant 0 : i32
    %c0_i32_0 = arith.constant 0 : i32
    return %arg0, %c0_i32 : i32, i32
  }
}

</mosaic_0001>

<bundles_post_ra>
// kernel: tpu_custom_call.1
= control target key start
LH: loop header
LB: loop body
LE: loop exit
PB: predicated region body
PF: predicated region fallthrough
CT: control target
= control target key end

     0   :  { %s9187_s0 = inlined_call_operand.vmem [shape: bf16[4,16,64], index: 0, kind: input, shape index: {}]   ;;  %s9188_s1 = inlined_call_operand.vmem [shape: bf16[64,16], index: 1, kind: input, shape index: {}]   ;;  %s9189_s2 = inlined_call_operand.vmem [shape: f32[64,1], index: 2, kind: input, shape index: {}]   ;;  %s9190_s3 = inlined_call_operand.vmem [shape: f32[64,64], index: 3, kind: input, shape index: {}]   ;;  %s9191_s4 = inlined_call_operand.vmem [shape: bf16[2,64,192], index: 4, kind: input, shape index: {}]   ;;  %s9192_s5 = inlined_call_operand.vmem [shape: f32[2,1,192], index: 5, kind: input, shape index: {}]   ;;  %s9193_s6 = inlined_call_operand.hbm [shape: bf16[2,64,64], index: 6, kind: input, shape index: {}]   ;;  %s9194_s7 = inlined_call_operand.vmem [shape: f32[2,1,64], index: 7, kind: input, shape index: {}]   ;;  %s9195_s8 = inlined_call_operand.vmem [shape: f32[2,1,64], index: 8, kind: input, shape index: {}]   ;;  %s9196_s9 = inlined_call_operand.vmem [shape: f32[2,1,64], index: 9, kind: input, shape index: {}]   ;;  %s9197_s10 = inlined_call_operand.hbm [shape: bf16[2,64,128], index: 10, kind: input, shape index: {}]   ;;  %s9198_s11 = inlined_call_operand.vmem [shape: f32[2,1,128], index: 11, kind: input, shape index: {}]   ;;  %s9199_s12 = inlined_call_operand.vmem [shape: bf16[2,128,64], index: 12, kind: input, shape index: {}]   ;;  %s9200_s13 = inlined_call_operand.vmem [shape: f32[2,1,64], index: 13, kind: input, shape index: {}]   ;;  %s9201_s14 = inlined_call_operand.vmem [shape: f32[2,1,64], index: 14, kind: input, shape index: {}]   ;;  %s9202_s15 = inlined_call_operand.vmem [shape: f32[2,1,64], index: 15, kind: input, shape index: {}]   ;;  %s9203_s16 = inlined_call_operand.vmem [shape: f32[256,64], index: 16, kind: output, shape index: {}]  }
   0x1   :  { %9226 = sst [smem:[#allocation50_spill]] %s9187_s0 }
   0x2   :  { %9227 = sst [smem:[#allocation51_spill]] %s9188_s1 }
   0x3   :  { %9228 = sst [smem:[#allocation52_spill]] %s9189_s2 }
   0x4   :  { %9229 = sst [smem:[#allocation53_spill]] %s9190_s3 }
   0x5   :  { %9230 = sst [smem:[#allocation54_spill]] %s9191_s4 }
   0x6   :  { %9231 = sst [smem:[#allocation55_spill]] %s9192_s5 }
   0x7   :  { %9232 = sst [smem:[#allocation56_spill]] %s9193_s6 }
   0x8   :  { %9233 = sst [smem:[#allocation57_spill]] %s9197_s10 }
   0x9   :  { %9234 = sst [smem:[#allocation58_spill]] %s9200_s13 }
   0xa   :  { %9235 = sst [smem:[#allocation59_spill]] %s9201_s14 }
   0xb   :  { %9236 = sst [smem:[#allocation60_spill]] %s9202_s15 }
   0xc   :  { %9237 = sst [smem:[#allocation61_spill]] %s9203_s16 }
   0xd   :  { %21 = vsyncpa [#allocation6], 0 }
   0xe   :  { %23 = vsyncpa [#allocation6 + $0x1], 0 }
   0xf   :  { %24 = vsyncpa [#allocation8], 0 }
  0x10   :  { %26 = vsyncpa [#allocation8 + $0x1], 0  ;;  %s6678_s21 = smov 0   ;;  %s6680_s22 = smov 0  }
  0x11   :  { %s6682_s23 = smov 0   ;;  %s6684_s24 = smov 0  }
  0x12   :  { %s6686_s25 = smov 0   ;;  %s6688_s26 = smov 0  }
  0x13   :  { %s6690_s27 = smov 0   ;;  %s6692_s28 = smov 0  }
  0x14 LB: > { %9238 = sst [smem:[#allocation11_spill]] %s6556_s22  ;;  %s5333_s29 = sadd.s32 4294967295, %s6580_s28   ;;  %s6580_s28 = sphi %s6692_s28, %s32_s28   ;;  %s6576_s27 = sphi %s6690_s27, %s9340_s27   ;;  %s6572_s26 = sphi %s6688_s26, %s9339_s26   ;;  %s6568_s25 = sphi %s6686_s25, %s9338_s25   ;;  %s6564_s24 = sphi %s6684_s24, %s9337_s24   ;;  %s6560_s23 = sphi %s6682_s23, %s9336_s23   ;;  %s6556_s22 = sphi %s6680_s22, %s9335_s22   ;;  %s6552_s21 = sphi %s6678_s21, %s9334_s21  }
  0x15   : > { %9239 = sst [smem:[#allocation12_spill]] %s6560_s23  ;;  %s41_s30 = sadd.s32 1, %s6572_s26 }
  0x16   : > { %9240 = sst [smem:[#allocation13_spill]] %s6572_s26  ;;  %p42_p0 = scmp.ge.s32.totalorder %s41_s30, 2 }
  0x17   : > { %9241 = sst [smem:[#allocation14_spill]] %s6576_s27  ;;  %s44_s0 = sadd.s32 1, %s6576_s27 }
  0x18   : > { %9242 = sst [smem:[#allocation15_spill]] %s6580_s28  ;;  %s192_s17 = sadd.s32 1, %s6560_s23 }
  0x19   : > { %p199_p1 = scmp.ne.s32.totalorder %s6560_s23, %s6556_s22  ;;  %s9342_s30 = smov (%p42_p0, %s41_s30), 0 }
  0x1a   : > { %9243 = sst [smem:[#allocation16_spill]] %s9342_s30  ;;  %s9344_s0 = smov (!%p42_p0, %s44_s0), %s6576_s27 }
  0x1b   : > { %s189_s18 = ssub.s32 %s6572_s26, %s9342_s30  ;;  %p200_p2 = scmp.eq.s32.totalorder %s6580_s28, 0 }
  0x1c   : > { %p46_p3 = scmp.ge.s32.totalorder %s9344_s0, 2  ;;  %p190_p4 = scmp.eq.s32.totalorder %s189_s18, 0 }
  0x1d   : > { %p6728_p5 = por %p200_p2, %p199_p1  ;;  %p205_p6 = scmp.ne.s32.totalorder %s6556_s22, %s6552_s21 }
  0x1e   : > { %s9346_s0 = smov (%p46_p3, %s9344_s0), 0  ;;  %p206_p7 = scmp.eq.s32.totalorder %s5333_s29, 0 }
  0x1f   : > { %9245 = sst [smem:[#allocation17_spill]] %s9346_s0  ;;  %p6026_p8 = scmp.lt.s32.totalorder %s6580_s28, 4 }
  0x20   : > { %s6736_s20 = scalar_select %p190_p4, %s6560_s23, %s192_s17  }
  0x21   : > { %s6740_s3 = sand.u32 1, %s6560_s23   ;;  %p6742_p9 = por %p206_p7, %p205_p6 }
  0x22   : > { %9246 = sst [smem:[#allocation18_spill]] %s6736_s20  ;;  %s5337_s30 = sshll.u32 %s6740_s3, 5 }
  0x23   : > { %s5890_s27 = sshll.u32 %s6572_s26, 5  ;;  %s9248_s6 = sld [smem:[#allocation56_spill]] }
  0x24   : > { %s527_s16 = scalar_lea.vmem [#allocation5], %s5337_s30  ;;  %p6753_p10 = pnand %p6026_p8, %p6728_p5 }
  0x25   : > { %s535_s17 = sshll.u32 %s527_s16, 4  ;;  %p5343_p11 = scmp.ge.s32.totalorder %s6580_s28, 1  ;;  %s536_s17 = int_to_ptr.vmem [resolvable:$true] %s535_s17 }
  0x26   : > { %p615_p12 = scmp.lt.s32.totalorder %s6580_s28, 5  ;;  %s524_s26 = scalar_lea.sflag [#allocation6], %s6740_s3 }
  0x27   : > { %s6582_s20 = smov 64   ;;  %s6583_s23 = smov 4  }
  0x28   : > { %p616_p13 = pnand %p5343_p11, %p615_p12  ;;  %s9250_s10 = sld [smem:[#allocation57_spill]] }
  0x29   : > { %s532_s2 = scalar_lea.hbm %s9248_s6, %s5890_s27  ;;  %s567_s19 = scalar_lea.vmem [#allocation7], %s5337_s30 }
  0x2a   : > { %s533_s0 = sshll.u32 %s532_s2, 4  ;;  %s575_s6 = sshll.u32 %s567_s19, 4  ;;  %s534_s0 = int_to_ptr.hbm [resolvable:$true] %s533_s0  ;;  %s576_s6 = int_to_ptr.vmem [resolvable:$true] %s575_s6 }
  0x2b   : > { %6022 = dma.hbm_to_vmem [thread:$0]  (!%p6753_p10), %s534_s0, 512, %s536_s17, %s524_s26, %s6582_s20, %s6582_s20, %s6583_s23  }
  0x2c   : > { %s564_s15 = scalar_lea.sflag [#allocation8], %s6740_s3  ;;  %619 = sbr.rel (%p616_p13) target bundleno = 4073 (0xfe9), region = 84 }
  0x2e   : > { %s572_s16 = scalar_lea.hbm %s9250_s10, %s5890_s27 }
  0x2f   : > { %s573_s21 = sshll.u32 %s572_s16, 4  ;;  %s574_s21 = int_to_ptr.hbm [resolvable:$true] %s573_s21 }
  0x30   : > { %6025 = dma.hbm_to_vmem [thread:$0]  (!%p6753_p10), %s574_s21, 512, %s576_s6, %s564_s15, %s6582_s20, %s6582_s20, %s6583_s23  }
  0x31   : > { %s621_s28 = sand.u32 1, %s6556_s22  }
  0x32   : > { %s5344_s14 = sshll.u32 %s621_s28, 5  ;;  %s622_s13 = scalar_lea.sflag [#allocation6], %s621_s28 }
  0x33   : > { %s6769_s26 = scalar_lea.vmem [#allocation5], %s5344_s14 }
  0x34   : > { %6543 = dma.done.wait (%p6742_p9), %s622_s13, 512  }
  0x35   : > { %6545 = vsyncadd (%p6742_p9), %s622_s13, 4294966784  ;;  %s632_s27 = scalar_lea.sflag [#allocation8], %s621_s28  ;;  %s6775_s30 = scalar_lea.vmem [#allocation7], %s5344_s14 }
  0x36   : > { %9251 = sst [smem:[#allocation19_spill]] %s6775_s30 }
  0x37   : > { %6547 = dma.done.wait (%p6742_p9), %s632_s27, 512  }
  0x38   : > { %6549 = vsyncadd (%p6742_p9), %s632_s27, 4294966784  ;;  %s5346_s3 = sshll.u32 %s6568_s25, 1  ;;  %p738_p0 = scmp.lt.s32.totalorder %s6564_s24, 1 }
  0x39   : > { %p732_p1 = scmp.lt.s32.totalorder %s5346_s3, 3  ;;  %s5354_s6 = sshll.u32 %s6568_s25, 4 }
  0x3a   : > { %s6785_s15 = scalar_select %p738_p0, %s6564_s24, 1 }
  0x3b   : > { %s9348_s3 = smov (!%p732_p1, %s5346_s3), 3  ;;  %s9252_s4 = sld [smem:[#allocation54_spill]] }
  0x3c   : > { %s5893_s13 = sshll.u32 %s6785_s15, 6  ;;  %s5351_s14 = sshll.u32 %s6785_s15, 1 }
  0x3d   : > { %s5892_s23 = sshll.u32 %s9348_s3, 3  ;;  %s9253_s17 = sld [smem:[#allocation50_spill]] }
  0x3e   : > { %s9254_s5 = sld [smem:[#allocation55_spill]]  ;;  %p774_p2 = scmp.lt.s32.totalorder %s5354_s6, 31 }
  0x3f   : > { %s9255_s21 = sld [smem:[#allocation58_spill]]  ;;  %p5356_p3 = scmp.ne.s32.totalorder %s6564_s24, 0 }
  0x40   : > { %s9256_s3 = sld [smem:[#allocation59_spill]]  ;;  %s9350_s6 = smov (!%p774_p2, %s5354_s6), 31 }
  0x41   : > { %s6792_s20 = scalar_lea.vmem %s9252_s4, %s5893_s13  ;;  %s9257_s0 = sld [smem:[#allocation60_spill]] }
  0x42   : > { %s5355_s30 = sshll.u32 %s9350_s6, 3  ;;  %s9258_s18 = sld [smem:[#allocation61_spill]] }
  0x43   : > { %s736_s29 = scalar_lea.vmem %s9253_s17, %s5892_s23  ;;  %s9259_s2 = sld [smem:[#allocation52_spill]] (!%p5356_p3) }
  0x44   : > { %s6800_s16 = scalar_lea.vmem %s9254_s5, %s5351_s14  ;;  %s6821_s14 = scalar_lea.vmem %s9199_s12, %s5893_s13 }
  0x45   : > { %s766_s19 = scalar_lea.vmem %s9255_s21, %s6785_s15  ;;  %783 = sbr.rel (%p5356_p3) target bundleno = 242 (0xf2), region = 96 }
  0x46   : > { %s769_s22 = scalar_lea.vmem %s9256_s3, %s6785_s15  ;;  %s9260_s23 = sld [smem:[#allocation51_spill]] (!%p5356_p3) }
  0x47   : > { %s772_s4 = scalar_lea.vmem %s9257_s0, %s6785_s15  ;;  %s9262_s3 = sld [smem:[#allocation53_spill]] (!%p5356_p3) }
  0x48   : > { %s6838_s13 = scalar_lea.vmem %s9258_s18, %s5355_s30 }
  0x4a   : > { %v796_v0 = vld [vmem:[%s9259_s2 + $0x10] sm:$0xff]  ;;  %v794_v1 = vld [vmem:[%s9259_s2] sm:$0xff]  ;;  %v6584_v3 = vmov 0   ;;  %v5904_v4 = vld [vmem:[%s736_s29 + $0x8] sm:$0xff]  ;;  %vm868_vm0 = vcmask 130048   ;;  %vm926_vm1 = vcmask 523264  }
  0x4b   : > { %v5899_v2 = vld [vmem:[%s736_s29] sm:$0xff]  ;;  %6103 = vset.pattern.permute.xlu1 %v6584_v3  ;;  %6102 = vset.pattern.permute.xlu0 %v6584_v3  ;;  %v797_v10 = vld [vmem:[%s9259_s2 + $0x18] sm:$0xff]  ;;  %v795_v11 = vld [vmem:[%s9259_s2 + $0x8] sm:$0xff] }
  0x4c   : > { %814 = vperm.xlu1 %6103, %v796_v0   ;;  %804 = vperm.xlu0 %6102, %v794_v1   ;;  %s9261_s10 = smov %s9260_s23  ;;  %v5895_v5 = vld [vmem:[%s9260_s23] sm:$0xff]  ;;  %v799_v12 = vld [vmem:[%s9259_s2 + $0x28] sm:$0xff]  ;;  %v801_v13 = vld [vmem:[%s9259_s2 + $0x38] sm:$0xff] }
  0x4d   : > { %v5897_v6 = vld [vmem:[%s9261_s10 + $0x10] sm:$0xff]  ;;  %888 = vmatpush.bf16.msra.mxu0 %v5899_v2  ;;  %6001 = vmatpush.bf16.msra.mxu2 %v5899_v2  ;;  %v5900_v7 = vld [vmem:[%s9261_s10] sm:$0xff]  ;;  %v5896_v15 = vld [vmem:[%s9261_s10 + $0x8] sm:$0xff] }
  0x4e   : > { %v5902_v8 = vld [vmem:[%s9261_s10 + $0x10] sm:$0xff]  ;;  %1039 = vmatpush.bf16.msra.mxu1 %v5904_v4  ;;  %6002 = vmatpush.bf16.msra.mxu3 %v5904_v4  ;;  %v798_v9 = vld [vmem:[%s9259_s2 + $0x20] sm:$0xff]  ;;  %v5898_v16 = vld [vmem:[%s9261_s10 + $0x18] sm:$0xff] }
  0x4f   : > { %6104 = vset.pattern.permute.xlu2 %v6584_v3  ;;  %v800_v14 = vld [vmem:[%s9259_s2 + $0x30] sm:$0xff]  ;;  %v5901_v17 = vld [vmem:[%s9261_s10 + $0x8] sm:$0xff]  ;;  %v5903_v18 = vld [vmem:[%s9261_s10 + $0x18] sm:$0xff] }
  0x50   : > { %5377 = vmatmul.msk.bf16.vlgmr.msra.gmra.mxu0 %vm868_vm0, %v5895_v5  ;;  %5379 = vmatmul.msk.bf16.vlgmr.msra.gmra.mxu2 %vm868_vm0, %v5897_v6  ;;  %v910_v27 = vld [vmem:[%s9262_s3] sm:$0xff]  ;;  %v911_v40 = vld [vmem:[%s9262_s3 + $0x8] sm:$0xff]  ;;  %v912_v55 = vld [vmem:[%s9262_s3 + $0x10] sm:$0xff] }
  0x51   : > { %5403 = vmatmul.msk.bf16.vlgmr.msra.gmra.mxu1 %vm868_vm0, %v5900_v7  ;;  %5405 = vmatmul.msk.bf16.vlgmr.msra.gmra.mxu3 %vm868_vm0, %v5902_v8  ;;  %v914_v36 = vld [vmem:[%s9262_s3 + $0x20] sm:$0xff]  ;;  %v915_v51 = vld [vmem:[%s9262_s3 + $0x28] sm:$0xff]  ;;  %v916_v5 = vld [vmem:[%s9262_s3 + $0x30] sm:$0xff] }
  0x52   : > { %824 = vperm.xlu2 %6104, %v798_v9  }
  0x54   : > { %819 = vperm.xlu1 %6103, %v797_v10   ;;  %809 = vperm.xlu0 %6102, %v795_v11  }
  0x5a   : > { %829 = vperm.xlu2 %6104, %v799_v12  }
  0x5c   : > { %839 = vperm.xlu1 %6103, %v801_v13   ;;  %834 = vperm.xlu0 %6102, %v800_v14  }
  0x60   : > { %5378 = vmatmul.msk.bf16.gmra.mxu0 %vm868_vm0, %v5896_v15  ;;  %5380 = vmatmul.msk.bf16.gmra.mxu2 %vm868_vm0, %v5898_v16 }
  0x61   : > { %5404 = vmatmul.msk.bf16.gmra.mxu1 %vm868_vm0, %v5901_v17  ;;  %5406 = vmatmul.msk.bf16.gmra.mxu3 %vm868_vm0, %v5903_v18 }
  0x62   : > { %956 = vperm.xlu2 %6104, %v794_v1  }
  0x64   : > { %966 = vperm.xlu1 %6103, %v796_v0   ;;  %961 = vperm.xlu0 %6102, %v795_v11   ;;  %v913_v11 = vld [vmem:[%s9262_s3 + $0x18] sm:$0xff] }
  0x6a   : > { %971 = vperm.xlu2 %6104, %v797_v10  }
  0x6c   : > { %981 = vperm.xlu1 %6103, %v799_v12   ;;  %976 = vperm.xlu0 %6102, %v798_v9  }
  0x72   : > { %986 = vperm.xlu2 %6104, %v800_v14  }
  0x74   : > { %991 = vperm.xlu0 %6102, %v801_v13  }
  0xac   : > { %v825_v19 = vpop.permute.xlu2 %824 }
  0xb4   : > { %v830_v22 = vpop.permute.xlu2 %829 }
  0xbc   : > { %v957_v25 = vpop.permute.xlu2 %956 }
  0xbe   : > { %v815_v20 = vpop.permute.xlu1 %814  ;;  %v805_v21 = vpop.permute.xlu0 %804 }
  0xc4   : > { %v972_v48 = vpop.permute.xlu2 %971 }
  0xc6   : > { %v6897_v23 = vpop.permute.xlu1 %819  ;;  %v810_v24 = vpop.permute.xlu0 %809 }
  0xcc   : > { %v987_v6 = vpop.permute.xlu2 %986 }
  0xcd   : > { %v890_v26 = vpop.f32.mrf.mxu0 }
  0xce   : > { %v891_v28 = vadd.f32 %v890_v26, %v805_v21  ;;  %v1041_v29 = vpop.f32.mrf.mxu1  ;;  %v6902_v30 = vpop.permute.xlu1 %839 }
  0xcf   : > { %v1042_v31 = vadd.f32 %v1041_v29, %v957_v25  ;;  %v835_v32 = vpop.permute.xlu0 %834 }
  0xd0   : > { %v918_v33 = vadd.f32 %v910_v27, %v891_v28 }
  0xd1   : > { %v1069_v34 = vadd.f32 %v1042_v31, %v910_v27 }
  0xd2   : > { %927 = vst.msk [vmem:[#allocation2] sm:$0xff] %vm926_vm1, %v918_v33 }
  0xd3   : > { %1077 = vst.msk [vmem:[#allocation2 + $0x40] sm:$0xff] %vm926_vm1, %v1069_v34  ;;  %v900_v35 = vpop.f32.mrf.mxu2 }
  0xd4   : > { %v901_v37 = vadd.f32 %v900_v35, %v825_v19  ;;  %v1051_v38 = vpop.f32.mrf.mxu3 }
  0xd5   : > { %v892_v39 = vpop.f32.mrf.mxu0 }
  0xd6   : > { %v922_v41 = vadd.f32 %v914_v36, %v901_v37  ;;  %v893_v42 = vadd.f32 %v892_v39, %v810_v24  ;;  %v1043_v43 = vpop.f32.mrf.mxu1  ;;  %v967_v44 = vpop.permute.xlu1 %966 }
  0xd7   : > { %v962_v45 = vpop.permute.xlu0 %961 }
  0xd8   : > { %931 = vst.msk [vmem:[#allocation2 + $0x20] sm:$0xff] %vm926_vm1, %v922_v41  ;;  %v919_v46 = vadd.f32 %v911_v40, %v893_v42  ;;  %v1044_v47 = vadd.f32 %v1043_v43, %v962_v45 }
  0xda   : > { %928 = vst.msk [vmem:[#allocation2 + $0x8] sm:$0xff] %vm926_vm1, %v919_v46  ;;  %v1070_v49 = vadd.f32 %v1044_v47, %v911_v40 }
  0xdb   : > { %v902_v50 = vpop.f32.mrf.mxu2 }
  0xdc   : > { %1078 = vst.msk [vmem:[#allocation2 + $0x48] sm:$0xff] %vm926_vm1, %v1070_v49  ;;  %v903_v52 = vadd.f32 %v902_v50, %v830_v22  ;;  %v1053_v53 = vpop.f32.mrf.mxu3 }
  0xdd   : > { %v895_v54 = vpop.f32.mrf.mxu0 }
  0xde   : > { %v923_v56 = vadd.f32 %v915_v51, %v903_v52  ;;  %v896_v57 = vadd.f32 %v895_v54, %v815_v20  ;;  %v1046_v58 = vpop.f32.mrf.mxu1  ;;  %v982_v59 = vpop.permute.xlu1 %981  ;;  %v917_v20 = vld [vmem:[%s9262_s3 + $0x38] sm:$0xff] }
  0xdf   : > { %v1047_v60 = vadd.f32 %v1046_v58, %v967_v44  ;;  %v1054_v61 = vadd.f32 %v1053_v53, %v982_v59  ;;  %v977_v62 = vpop.permute.xlu0 %976 }
  0xe0   : > { %932 = vst.msk [vmem:[#allocation2 + $0x28] sm:$0xff] %vm926_vm1, %v923_v56  ;;  %v920_v63 = vadd.f32 %v912_v55, %v896_v57  ;;  %v1052_v0 = vadd.f32 %v1051_v38, %v977_v62 }
  0xe1   : > { %v1071_v1 = vadd.f32 %v1047_v60, %v912_v55  ;;  %v1074_v2 = vadd.f32 %v1054_v61, %v915_v51 }
  0xe2   : > { %929 = vst.msk [vmem:[#allocation2 + $0x10] sm:$0xff] %vm926_vm1, %v920_v63  ;;  %v1073_v3 = vadd.f32 %v1052_v0, %v914_v36 }
  0xe3   : > { %1079 = vst.msk [vmem:[#allocation2 + $0x50] sm:$0xff] %vm926_vm1, %v1071_v1  ;;  %v905_v4 = vpop.f32.mrf.mxu2 }
  0xe4   : > { %1082 = vst.msk [vmem:[#allocation2 + $0x68] sm:$0xff] %vm926_vm1, %v1074_v2  ;;  %v906_v7 = vadd.f32 %v905_v4, %v835_v32  ;;  %v1056_v8 = vpop.f32.mrf.mxu3 }
  0xe5   : > { %1081 = vst.msk [vmem:[#allocation2 + $0x60] sm:$0xff] %vm926_vm1, %v1073_v3  ;;  %v1057_v9 = vadd.f32 %v1056_v8, %v987_v6  ;;  %v897_v10 = vpop.f32.mrf.mxu0 }
  0xe6   : > { %v924_v12 = vadd.f32 %v916_v5, %v906_v7  ;;  %v898_v13 = vadd.f32 %v897_v10, %v6897_v23  ;;  %v1048_v14 = vpop.f32.mrf.mxu1 }
  0xe7   : > { %v1075_v15 = vadd.f32 %v1057_v9, %v916_v5  ;;  %v1049_v16 = vadd.f32 %v1048_v14, %v972_v48  ;;  %v992_v21 = vpop.permute.xlu0 %991 }
  0xe8   : > { %933 = vst.msk [vmem:[#allocation2 + $0x30] sm:$0xff] %vm926_vm1, %v924_v12  ;;  %v921_v17 = vadd.f32 %v913_v11, %v898_v13 }
  0xe9   : > { %1083 = vst.msk [vmem:[#allocation2 + $0x70] sm:$0xff] %vm926_vm1, %v1075_v15  ;;  %v1072_v18 = vadd.f32 %v1049_v16, %v913_v11 }
  0xea   : > { %930 = vst.msk [vmem:[#allocation2 + $0x18] sm:$0xff] %vm926_vm1, %v921_v17 }
  0xeb   : > { %1080 = vst.msk [vmem:[#allocation2 + $0x58] sm:$0xff] %vm926_vm1, %v1072_v18  ;;  %v907_v19 = vpop.f32.mrf.mxu2 }
  0xec   : > { %v908_v22 = vadd.f32 %v907_v19, %v6902_v30  ;;  %v1058_v23 = vpop.f32.mrf.mxu3 }
  0xed   : > { %v1059_v24 = vadd.f32 %v1058_v23, %v992_v21 }
  0xee   : > { %v925_v25 = vadd.f32 %v917_v20, %v908_v22 }
  0xef   : > { %v1076_v26 = vadd.f32 %v1059_v24, %v917_v20 }
  0xf0   : > { %934 = vst.msk [vmem:[#allocation2 + $0x38] sm:$0xff] %vm926_vm1, %v925_v25 }
  0xf1   : > { %1084 = vst.msk [vmem:[#allocation2 + $0x78] sm:$0xff] %vm926_vm1, %v1076_v26 }
  0xf2 PF: > { %v5433_v27 = vld [vmem:[%s6792_s20 + $0x30] sm:$0xf]  ;;  %v5912_v28 = vld [vmem:[%s6792_s20 + $0x34] sm:$0xf0]  ;;  %v5911_v29 = vld [vmem:[%s6792_s20 + $0x34] sm:$0xf]  ;;  %s9325_s1 = scalar_lea.vmem %s9194_s7, %s6785_s15  ;;  %s9327_s6 = scalar_lea.vmem %s9195_s8, %s6785_s15 }
  0xf3   : > { %v5434_v30 = vor.u32 %v5912_v28, %v5433_v27  ;;  %v5435_v31 = vld [vmem:[%s6792_s20 + $0x38] sm:$0xf0]  ;;  %v5425_v32 = vld [vmem:[%s6792_s20 + $0x20] sm:$0xf]  ;;  %v5910_v33 = vld [vmem:[%s6792_s20 + $0x24] sm:$0xf0] }
  0xf4   : > { %v5438_v34 = vor.u32 %v5911_v29, %v5435_v31  ;;  %v5909_v35 = vld [vmem:[%s6792_s20 + $0x24] sm:$0xf]  ;;  %v5427_v36 = vld [vmem:[%s6792_s20 + $0x28] sm:$0xf0]  ;;  %v5426_v37 = vor.u32 %v5910_v33, %v5425_v32  ;;  %v5417_v39 = vld [vmem:[%s6792_s20 + $0x10] sm:$0xf] }
  0xf5   : > { %1192 = vmatpush.bf16.msra.mxu0 %v5434_v30  ;;  %v5430_v38 = vor.u32 %v5909_v35, %v5427_v36  ;;  %v5908_v40 = vld [vmem:[%s6792_s20 + $0x14] sm:$0xf0]  ;;  %v5907_v41 = vld [vmem:[%s6792_s20 + $0x14] sm:$0xf]  ;;  %v5419_v42 = vld [vmem:[%s6792_s20 + $0x18] sm:$0xf0] }
  0xf6   : > { %1241 = vmatpush.bf16.msra.mxu1 %v5438_v34  ;;  %v5409_v43 = vld [vmem:[%s6792_s20] sm:$0xf]  ;;  %v5906_v44 = vld [vmem:[%s6792_s20 + $0x4] sm:$0xf0]  ;;  %v5418_v45 = vor.u32 %v5908_v40, %v5417_v39  ;;  %v5905_v46 = vld [vmem:[%s6792_s20 + $0x4] sm:$0xf]  ;;  %v5422_v47 = vor.u32 %v5907_v41, %v5419_v42 }
  0xf7   : > { %v5411_v48 = vld [vmem:[%s6792_s20 + $0x8] sm:$0xf0]  ;;  %v5410_v49 = vor.u32 %v5906_v44, %v5409_v43  ;;  %v1085_v50 = vld [vmem:[#allocation2] sm:$0xff]  ;;  %vm1163_vm2 = vcmask 523264   ;;  %v1087_v54 = vld [vmem:[#allocation2 + $0x10] sm:$0xff]  ;;  %vm1302_vm3 = vcmask 1043456  }
  0xf8   : > { %v1086_v51 = vld [vmem:[#allocation2 + $0x8] sm:$0xff]  ;;  %v5414_v52 = vor.u32 %v5905_v46, %v5411_v48  ;;  %v1088_v55 = vld [vmem:[#allocation2 + $0x18] sm:$0xff]  ;;  %v1089_v57 = vld [vmem:[#allocation2 + $0x20] sm:$0xff]  ;;  %vm1303_vm4 = vcmask 523268   ;;  %s6585_s20 = smov 64   ;;  %vm1365_vm6 = vcmask 130048  }
  0xf9   : > { %1193 = vmatpush.bf16.msra.mxu0 %v5426_v37  ;;  %v1101_v53 = vpack.c.bf16 %v1086_v51, %v1085_v50  ;;  %v1102_v56 = vpack.c.bf16 %v1088_v55, %v1087_v54  ;;  %v1090_v58 = vld [vmem:[#allocation2 + $0x28] sm:$0xff]  ;;  %v1091_v60 = vld [vmem:[#allocation2 + $0x30] sm:$0xff]  ;;  %v1092_v61 = vld [vmem:[#allocation2 + $0x38] sm:$0xff]  ;;  %s6587_s0 = smov 112   ;;  %s6588_s30 = smov 32   ;;  %vm1592_vm7 = vcmask 125952  }
  0xfa   : > { %1242 = vmatpush.bf16.msra.mxu1 %v5430_v38  ;;  %v1103_v59 = vpack.c.bf16 %v1090_v58, %v1089_v57  ;;  %v1104_v62 = vpack.c.bf16 %v1092_v61, %v1091_v60  ;;  %v1117_v63 = vld [vmem:[%s6800_s16] sm:$0x3]  ;;  %vm6974_vm5 = vmor %vm1303_vm4, %vm1302_vm3  ;;  %s6586_s16 = smov 48   ;;  %s6589_s25 = smov 96   ;;  %vm1919_vm8 = vcmask 257152   ;;  %vm2246_vm9 = vcmask 388352  }
  0xfb   : > { %v6968_v0 = vperm.slane %v1117_v63, 0  ;;  %v6970_v1 = vperm.slane %v1117_v63, 1  ;;  %s6590_s18 = smov 16   ;;  %s6591_s29 = smov 80   ;;  %vm2573_vm10 = vcmask 519552  }
  0xfc   : > { %s9326_s27 = sld [smem:[#allocation19_spill]]  ;;  %p5887_p4 = scmp.ne.s32.totalorder %s6564_s24, 1 }
  0xfd   : > { %1194 = vmatpush.bf16.msra.mxu0 %v5418_v45 }
  0xfe   : > { %1243 = vmatpush.bf16.msra.mxu1 %v5422_v47 }
 0x101   : > { %1195 = vmatpush.bf16.msra.mxu0 %v5410_v49 }
 0x102   : > { %1244 = vmatpush.bf16.msra.mxu1 %v5414_v52 }
 0x104   : > { %5439 = vmatmul.msk.bf16.vlgmr.msra.gmra.mxu0 %vm1163_vm2, %v1101_v53 }
 0x105   : > { %5447 = vmatmul.msk.bf16.vlgmr.msra.gmra.mxu1 %vm1163_vm2, %v1101_v53 }
 0x114   : > { %5440 = vmatmul.msk.bf16.gmra.mxu0 %vm1163_vm2, %v1102_v56 }
 0x115   : > { %5448 = vmatmul.msk.bf16.gmra.mxu1 %vm1163_vm2, %v1102_v56 }
 0x124   : > { %5441 = vmatmul.msk.bf16.gmra.mxu0 %vm1163_vm2, %v1103_v59 }
 0x125   : > { %5449 = vmatmul.msk.bf16.gmra.mxu1 %vm1163_vm2, %v1103_v59 }
 0x134   : > { %5442 = vmatmul.msk.bf16.gmra.mxu0 %vm1163_vm2, %v1104_v62 }
 0x135   : > { %5450 = vmatmul.msk.bf16.gmra.mxu1 %vm1163_vm2, %v1104_v62 }
 0x181   : > { %v1197_v2 = vpop.f32.mrf.mxu0 }
 0x182   : > { %v1198_v3 = vadd.f32 %v1197_v2, %v6968_v0  ;;  %v1246_v4 = vpop.f32.mrf.mxu1 }
 0x183   : > { %v1247_v5 = vadd.f32 %v1246_v4, %v6970_v1 }
 0x185   : > { %v1286_v7 = vpack.c.bf16 %v1247_v5, %v1198_v3 }
 0x187   : > { %1305 = vst.msk [vmem:[#allocation3] sm:$0xff] %vm6974_vm5, %v1286_v7 }
 0x189   : > { %v1199_v8 = vpop.f32.mrf.mxu0 }
 0x18a   : > { %v1200_v9 = vadd.f32 %v1199_v8, %v6968_v0  ;;  %v1248_v10 = vpop.f32.mrf.mxu1 }
 0x18b   : > { %v1249_v11 = vadd.f32 %v1248_v10, %v6970_v1 }
 0x18d   : > { %v1287_v12 = vpack.c.bf16 %v1249_v11, %v1200_v9 }
 0x18e   : > { %v5457_v37 = vld [vmem:[#allocation3] sm:$0xf]  ;;  %v5477_v3 = vld [vmem:[#allocation3 + $0x4] sm:$0xf] }
 0x18f   : > { %1306 = vst.msk [vmem:[#allocation3 + $0x8] sm:$0xff] %vm6974_vm5, %v1287_v12 }
 0x191   : > { %v1202_v13 = vpop.f32.mrf.mxu0 }
 0x192   : > { %v1203_v14 = vadd.f32 %v1202_v13, %v6968_v0  ;;  %v1251_v15 = vpop.f32.mrf.mxu1 }
 0x193   : > { %v1252_v16 = vadd.f32 %v1251_v15, %v6970_v1 }
 0x195   : > { %v1288_v17 = vpack.c.bf16 %v1252_v16, %v1203_v14 }
 0x196   : > { %v5913_v35 = vld [vmem:[#allocation3 + $0x4] sm:$0xf0]  ;;  %v5917_v2 = vld [vmem:[#allocation3 + $0x8] sm:$0xf0] }
 0x197   : > { %1307 = vst.msk [vmem:[#allocation3 + $0x10] sm:$0xff] %vm6974_vm5, %v1288_v17  ;;  %v5458_v38 = vor.u32 %v5913_v35, %v5457_v37  ;;  %v5478_v4 = vor.u32 %v5917_v2, %v5477_v3 }
 0x199   : > { %v1204_v18 = vpop.f32.mrf.mxu0 }
 0x19a   : > { %v1205_v19 = vadd.f32 %v1204_v18, %v6968_v0  ;;  %v1253_v20 = vpop.f32.mrf.mxu1 }
 0x19b   : > { %v1254_v21 = vadd.f32 %v1253_v20, %v6970_v1 }
 0x19d   : > { %v1289_v22 = vpack.c.bf16 %v1254_v21, %v1205_v19 }
 0x19e   : > { %v5461_v28 = vld [vmem:[#allocation3 + $0x10] sm:$0xf]  ;;  %v5481_v60 = vld [vmem:[#allocation3 + $0x14] sm:$0xf] }
 0x19f   : > { %1308 = vst.msk [vmem:[#allocation3 + $0x18] sm:$0xff] %vm6974_vm5, %v1289_v22  ;;  %v5581_v6 = vld [vmem:[#allocation3 + $0x10] sm:$0xf] }
 0x1a1   : > { %v1207_v23 = vpop.f32.mrf.mxu0 }
 0x1a2   : > { %v1208_v24 = vadd.f32 %v1207_v23, %v6968_v0  ;;  %v1256_v25 = vpop.f32.mrf.mxu1 }
 0x1a3   : > { %v1257_v26 = vadd.f32 %v1256_v25, %v6970_v1 }
 0x1a5   : > { %v1290_v27 = vpack.c.bf16 %v1257_v26, %v1208_v24 }
 0x1a6   : > { %v5914_v29 = vld [vmem:[#allocation3 + $0x14] sm:$0xf0]  ;;  %v5918_v58 = vld [vmem:[#allocation3 + $0x18] sm:$0xf0] }
 0x1a7   : > { %1309 = vst.msk [vmem:[#allocation3 + $0x20] sm:$0xff] %vm6974_vm5, %v1290_v27  ;;  %v6996_v30 = vor.u32 %v5914_v29, %v5461_v28  ;;  %v5482_v62 = vor.u32 %v5918_v58, %v5481_v60 }
 0x1a9   : > { %1359 = vrot.lane.b32.xlu1 %v6996_v30, %s6585_s20  ;;  %v1209_v31 = vpop.f32.mrf.mxu0 }
 0x1aa   : > { %v1210_v32 = vadd.f32 %v1209_v31, %v6968_v0  ;;  %v1258_v33 = vpop.f32.mrf.mxu1 }
 0x1ab   : > { %v1259_v34 = vadd.f32 %v1258_v33, %v6970_v1  ;;  %v5922_v33 = vld [vmem:[#allocation3 + $0x14] sm:$0xf0] }
 0x1ad   : > { %v1291_v36 = vpack.c.bf16 %v1259_v34, %v1210_v32  ;;  %v5501_v34 = vld [vmem:[#allocation3 + $0x10] sm:$0xf] }
 0x1ae   : > { %v5485_v56 = vld [vmem:[#allocation3 + $0x24] sm:$0xf]  ;;  %v5465_v61 = vld [vmem:[#allocation3 + $0x20] sm:$0xf]  ;;  %v5502_v35 = vor.u32 %v5922_v33, %v5501_v34 }
 0x1af   : > { %1310 = vst.msk [vmem:[#allocation3 + $0x28] sm:$0xff] %vm6974_vm5, %v1291_v36  ;;  %v5505_v37 = vld [vmem:[#allocation3 + $0x20] sm:$0xf] }
 0x1b1   : > { %1357 = vrot.lane.b32.xlu1 %v5458_v38, %s6585_s20  ;;  %v1212_v39 = vpop.f32.mrf.mxu0 }
 0x1b2   : > { %v1213_v40 = vadd.f32 %v1212_v39, %v6968_v0  ;;  %v1261_v41 = vpop.f32.mrf.mxu1  ;;  %v5921_v39 = vld [vmem:[#allocation3 + $0x4] sm:$0xf0] }
 0x1b3   : > { %v1262_v42 = vadd.f32 %v1261_v41, %v6970_v1 }
 0x1b5   : > { %v1292_v43 = vpack.c.bf16 %v1262_v42, %v1213_v40  ;;  %v5497_v40 = vld [vmem:[#allocation3] sm:$0xf]  ;;  %v5926_v42 = vld [vmem:[#allocation3 + $0x18] sm:$0xf0] }
 0x1b6   : > { %v5919_v55 = vld [vmem:[#allocation3 + $0x28] sm:$0xf0]  ;;  %v5915_v59 = vld [vmem:[#allocation3 + $0x24] sm:$0xf0]  ;;  %v5498_v41 = vor.u32 %v5921_v39, %v5497_v40 }
 0x1b7   : > { %1311 = vst.msk [vmem:[#allocation3 + $0x30] sm:$0xff] %vm6974_vm5, %v1292_v43  ;;  %v5486_v57 = vor.u32 %v5919_v55, %v5485_v56  ;;  %v5466_v63 = vor.u32 %v5915_v59, %v5465_v61  ;;  %v5923_v36 = vld [vmem:[#allocation3 + $0x24] sm:$0xf0]  ;;  %v5521_v43 = vld [vmem:[#allocation3 + $0x14] sm:$0xf] }
 0x1b9   : > { %v1214_v44 = vpop.f32.mrf.mxu0 }
 0x1ba   : > { %v1215_v45 = vadd.f32 %v1214_v44, %v6968_v0  ;;  %v1263_v46 = vpop.f32.mrf.mxu1  ;;  %v5522_v44 = vor.u32 %v5926_v42, %v5521_v43 }
 0x1bb   : > { %v1264_v47 = vadd.f32 %v1263_v46, %v6970_v1 }
 0x1bd   : > { %v1293_v48 = vpack.c.bf16 %v1264_v47, %v1215_v45 }
 0x1be   : > { %v5489_v49 = vld [vmem:[#allocation3 + $0x34] sm:$0xf]  ;;  %v5469_v51 = vld [vmem:[#allocation3 + $0x30] sm:$0xf] }
 0x1bf   : > { %1312 = vst.msk [vmem:[#allocation3 + $0x38] sm:$0xff] %vm6974_vm5, %v1293_v48  ;;  %v5509_v31 = vld [vmem:[#allocation3 + $0x30] sm:$0xf] }
 0x1c6   : > { %v5920_v50 = vld [vmem:[#allocation3 + $0x38] sm:$0xf0]  ;;  %v5916_v52 = vld [vmem:[#allocation3 + $0x34] sm:$0xf0] }
 0x1c7   : > { %v5490_v53 = vor.u32 %v5920_v50, %v5489_v49  ;;  %v5470_v54 = vor.u32 %v5916_v52, %v5469_v51 }
 0x1c9   : > { %1559 = vmatpush.bf16.msrb.mxu1 %v5490_v53  ;;  %6003 = vmatpush.bf16.msra.mxu3 %v5490_v53 }
 0x1ca   : > { %1363 = vrot.lane.b32.xlu0 %v5470_v54, %s6585_s20 }
 0x1cd   : > { %1560 = vmatpush.bf16.msrb.mxu1 %v5486_v57  ;;  %6004 = vmatpush.bf16.msra.mxu3 %v5486_v57 }
 0x1d1   : > { %1561 = vmatpush.bf16.msrb.mxu1 %v5482_v62  ;;  %6005 = vmatpush.bf16.msra.mxu3 %v5482_v62 }
 0x1d2   : > { %1361 = vrot.lane.b32.xlu0 %v5466_v63, %s6585_s20 }
 0x1d5   : > { %1562 = vmatpush.bf16.msrb.mxu1 %v5478_v4  ;;  %6006 = vmatpush.bf16.msra.mxu3 %v5478_v4 }
 0x21b   : > { %v1360_v10 = vpop.permute.xlu1 %1359 }
 0x21c   : > { %v1382_v11 = vsel %vm1365_vm6, %v1360_v10, 0 }
 0x223   : > { %v1358_v12 = vpop.permute.xlu1 %1357 }
 0x224   : > { %v1379_v13 = vsel %vm1365_vm6, %v1358_v12, 0 }
 0x23c   : > { %v1364_v5 = vpop.permute.xlu0 %1363 }
 0x23d   : > { %v1388_v7 = vsel %vm1365_vm6, %v1364_v5, 0 }
 0x23e   : > { %1394 = vmatpush.bf16.xpose.msra.mxu2 %v1388_v7 }
 0x244   : > { %v1362_v8 = vpop.permute.xlu0 %1361 }
 0x245   : > { %v1385_v9 = vsel %vm1365_vm6, %v1362_v8, 0 }
 0x246   : > { %1395 = vmatpush.bf16.xpose.msra.mxu2 %v1385_v9  ;;  %v5927_v9 = vld [vmem:[#allocation3 + $0x28] sm:$0xf0] }
 0x24e   : > { %1396 = vmatpush.bf16.xpose.msra.mxu2 %v1382_v11  ;;  %v5525_v11 = vld [vmem:[#allocation3 + $0x24] sm:$0xf] }
 0x24f   : > { %v5526_v12 = vor.u32 %v5927_v9, %v5525_v11  ;;  %v1094_v11 = vld [vmem:[#allocation2 + $0x48] sm:$0xff] }
 0x256   : > { %1397 = vmatpush.bf16.xpose.msra.mxu2 %v1379_v13 }
 0x25d   : > { %5471 = vmatmul.msk.bf16.vlgmr.msra.gmra.mxu2 %vm1365_vm6, %v5458_v38  ;;  %v5506_v38 = vor.u32 %v5923_v36, %v5505_v37 }
 0x26d   : > { %5472 = vmatmul.msk.bf16.gmra.mxu2 %vm1365_vm6, %v6996_v30  ;;  %v5924_v30 = vld [vmem:[#allocation3 + $0x34] sm:$0xf0] }
 0x26e   : > { %v5510_v32 = vor.u32 %v5924_v30, %v5509_v31 }
 0x27d   : > { %5473 = vmatmul.msk.bf16.gmra.mxu2 %vm1365_vm6, %v5466_v63 }
 0x28d   : > { %5474 = vmatmul.msk.bf16.gmra.mxu2 %vm1365_vm6, %v5470_v54 }
 0x2e0   : > { %v7024_v14 = vpop.f32.mrf.mxu2 }
 0x2e8   : > { %v7026_v15 = vpop.f32.mrf.mxu2 }
 0x2f0   : > { %v7028_v16 = vpop.f32.mrf.mxu2 }
 0x2f8   : > { %v7030_v17 = vpop.f32.mrf.mxu2 }
 0x300   : > { %v1409_v18 = vpop.f32.mrf.mxu2 }
 0x301   : > { %v1423_v19 = vmul.f32 0.25, %v1409_v18  ;;  %v5932_v18 = vld [vmem:[#allocation3 + $0x34] sm:$0xf0] }
 0x303   : > { %v1439_v20 = vsel %vm1163_vm2, %v1423_v19, -inf }
 0x304   : > { %1440 = vmax.xlane.f32.xlu2 %v1439_v20  ;;  %v5549_v20 = vld [vmem:[#allocation3 + $0x30] sm:$0xf] }
 0x308   : > { %v1411_v21 = vpop.f32.mrf.mxu2 }
 0x309   : > { %v1424_v22 = vmul.f32 0.25, %v1411_v21  ;;  %v7054_v21 = vor.u32 %v5932_v18, %v5549_v20 }
 0x30b   : > { %v1442_v23 = vsel %vm1163_vm2, %v1424_v22, -inf }
 0x30c   : > { %1443 = vmax.xlane.f32.xlu2 %v1442_v23  ;;  %v5529_v23 = vld [vmem:[#allocation3 + $0x34] sm:$0xf] }
 0x310   : > { %v1414_v24 = vpop.f32.mrf.mxu2 }
 0x311   : > { %v1425_v25 = vmul.f32 0.25, %v1414_v24 }
 0x313   : > { %v1445_v26 = vsel %vm1163_vm2, %v1425_v25, -inf }
 0x314   : > { %1446 = vmax.xlane.f32.xlu0 %v1445_v26  ;;  %v5517_v26 = vld [vmem:[#allocation3 + $0x4] sm:$0xf] }
 0x318   : > { %v1416_v27 = vpop.f32.mrf.mxu2 }
 0x319   : > { %v1426_v28 = vmul.f32 0.25, %v1416_v27 }
 0x31b   : > { %v1448_v29 = vsel %vm1163_vm2, %v1426_v28, -inf }
 0x31c   : > { %1449 = vmax.xlane.f32.xlu1 %v1448_v29 }
 0x324   : > { %1651 = vrot.lane.b32.xlu2 %v5510_v32, %s6586_s16 }
 0x328   : > { %1647 = vrot.lane.b32.xlu0 %v5502_v35, %s6586_s16 }
 0x335   : > { %1649 = vrot.lane.b32.xlu1 %v5506_v38, %s6586_s16 }
 0x33d   : > { %1645 = vrot.lane.b32.xlu1 %v5498_v41, %s6586_s16 }
 0x345   : > { %1639 = vrot.lane.b32.xlu1 %v5502_v35, %s6587_s0 }
 0x34d   : > { %1828 = vrot.lane.b32.xlu1 %v5522_v44, %s6587_s0 }
 0x377   : > { %v1441_v45 = vpop.xlane.xlu2 %1440 }
 0x378   : > { %v1455_v46 = vsub.f32 %v1423_v19, %v1441_v45 }
 0x37a   : > { %v1467_v47 = vmul.f32 1.442695, %v1455_v46 }
 0x37c   : > { %6112 = vpow2.f32 %v1467_v47 }
 0x37f   : > { %v1444_v48 = vpop.xlane.xlu2 %1443 }
 0x380   : > { %v1456_v49 = vsub.f32 %v1424_v22, %v1444_v48  ;;  %v5928_v22 = vld [vmem:[#allocation3 + $0x38] sm:$0xf0] }
 0x381   : > { %v5530_v24 = vor.u32 %v5928_v22, %v5529_v23  ;;  %v1095_v22 = vld [vmem:[#allocation2 + $0x50] sm:$0xff]  ;;  %v1096_v23 = vld [vmem:[#allocation2 + $0x58] sm:$0xff] }
 0x382   : > { %v6113_v50 = vpop.eup %6112  ;;  %v1469_v51 = vmul.f32 1.442695, %v1456_v49 }
 0x383   : > { %v1487_v52 = vsel %vm1163_vm2, %v6113_v50, 0.0 }
 0x384   : > { %6114 = vpow2.f32 %v1469_v51  ;;  %1488 = vadd.xlane.f32.xlu2 %v1487_v52 }
 0x387   : > { %v1652_v53 = vpop.permute.xlu2 %1651  ;;  %v1447_v54 = vpop.xlane.xlu0 %1446 }
 0x388   : > { %v1457_v55 = vsub.f32 %v1425_v25, %v1447_v54  ;;  %v1675_v56 = vsel %vm1365_vm6, %v1652_v53, 0  ;;  %v5925_v25 = vld [vmem:[#allocation3 + $0x8] sm:$0xf0] }
 0x389   : > { %1681 = vmatpush.bf16.xpose.msrb.mxu3 %v1675_v56  ;;  %v5518_v27 = vor.u32 %v5925_v25, %v5517_v26  ;;  %v1106_v25 = vpack.c.bf16 %v1096_v23, %v1095_v22 }
 0x38a   : > { %v6115_v57 = vpop.eup %6114  ;;  %v1471_v58 = vmul.f32 1.442695, %v1457_v55 }
 0x38b   : > { %v1490_v59 = vsel %vm1163_vm2, %v6115_v57, 0.0 }
 0x38c   : > { %6116 = vpow2.f32 %v1471_v58  ;;  %1491 = vadd.xlane.f32.xlu2 %v1490_v59 }
 0x38f   : > { %v1450_v60 = vpop.xlane.xlu1 %1449 }
 0x390   : > { %v1458_v61 = vsub.f32 %v1426_v28, %v1450_v60 }
 0x392   : > { %v6117_v62 = vpop.eup %6116  ;;  %v1473_v63 = vmul.f32 1.442695, %v1458_v61 }
 0x393   : > { %v1493_v2 = vsel %vm1163_vm2, %v6117_v62, 0.0 }
 0x394   : > { %6118 = vpow2.f32 %v1473_v63  ;;  %1494 = vadd.xlane.f32.xlu2 %v1493_v2 }
 0x39a   : > { %v6119_v3 = vpop.eup %6118  ;;  %v1648_v8 = vpop.permute.xlu0 %1647 }
 0x39b   : > { %v1496_v4 = vsel %vm1163_vm2, %v6119_v3, 0.0  ;;  %v1669_v10 = vsel %vm1365_vm6, %v1648_v8, 0 }
 0x39c   : > { %1497 = vadd.xlane.f32.xlu0 %v1496_v4 }
 0x3a7   : > { %v1650_v5 = vpop.permute.xlu1 %1649 }
 0x3a8   : > { %v1672_v7 = vsel %vm1365_vm6, %v1650_v5, 0 }
 0x3a9   : > { %1682 = vmatpush.bf16.xpose.msrb.mxu3 %v1672_v7 }
 0x3ac   : > { %1643 = vrot.lane.b32.xlu2 %v5510_v32, %s6587_s0 }
 0x3af   : > { %v1646_v13 = vpop.permute.xlu1 %1645 }
 0x3b0   : > { %1637 = vrot.lane.b32.xlu0 %v5498_v41, %s6587_s0  ;;  %v1666_v19 = vsel %vm1365_vm6, %v1646_v13, 0 }
 0x3b1   : > { %1683 = vmatpush.bf16.xpose.msrb.mxu3 %v1669_v10  ;;  %v1093_v10 = vld [vmem:[#allocation2 + $0x40] sm:$0xff] }
 0x3b4   : > { %1830 = vrot.lane.b32.xlu2 %v5526_v12, %s6587_s0  ;;  %v1105_v12 = vpack.c.bf16 %v1094_v11, %v1093_v10  ;;  %v5545_v11 = vld [vmem:[#allocation3 + $0x20] sm:$0xf] }
 0x3b6   : > { %5443 = vmatmul.msk.bf16.gmra.mxu0 %vm1163_vm2, %v1105_v12  ;;  %5451 = vmatmul.msk.bf16.gmra.mxu1 %vm1163_vm2, %v1105_v12 }
 0x3b7   : > { %v1640_v45 = vpop.permute.xlu1 %1639 }
 0x3b8   : > { %1641 = vrot.lane.b32.xlu0 %v5506_v38, %s6587_s0 }
 0x3b9   : > { %1684 = vmatpush.bf16.xpose.msrb.mxu3 %v1666_v19 }
 0x3bc   : > { %1978 = vrot.lane.b32.xlu2 %v7054_v21, %s6588_s30 }
 0x3bf   : > { %v1829_v48 = vpop.permute.xlu1 %1828 }
 0x3c0   : > { %1832 = vrot.lane.b32.xlu0 %v5530_v24, %s6587_s0 }
 0x3c6   : > { %5444 = vmatmul.msk.bf16.gmra.mxu0 %vm1163_vm2, %v1106_v25  ;;  %5452 = vmatmul.msk.bf16.gmra.mxu1 %vm1163_vm2, %v1106_v25 }
 0x3c8   : > { %1826 = vrot.lane.b32.xlu0 %v5518_v27, %s6587_s0 }
 0x3f7   : > { %v1489_v28 = vpop.xlane.xlu2 %1488 }
 0x3f8   : > { %6120 = vrcp.f32 %v1489_v28 }
 0x3fe   : > { %v6121_v30 = vpop.eup %6120 }
 0x3ff   : > { %v1492_v29 = vpop.xlane.xlu2 %1491  ;;  %v1511_v32 = vmul.f32 %v6121_v30, %v6113_v50 }
 0x400   : > { %6122 = vrcp.f32 %v1492_v29 }
 0x406   : > { %v6123_v31 = vpop.eup %6122 }
 0x407   : > { %v1512_v33 = vmul.f32 %v6123_v31, %v6115_v57  ;;  %v1495_v35 = vpop.xlane.xlu2 %1494  ;;  %v1097_v31 = vld [vmem:[#allocation2 + $0x60] sm:$0xff] }
 0x408   : > { %6124 = vrcp.f32 %v1495_v35 }
 0x409   : > { %v1517_v34 = vpack.c.bf16 %v1512_v33, %v1511_v32  ;;  %v1098_v32 = vld [vmem:[#allocation2 + $0x68] sm:$0xff] }
 0x40b   : > { %5493 = vmatmul.msk.bf16.vlgmr.msra.gmra.mxu3 %vm1163_vm2, %v1517_v34  ;;  %v1107_v34 = vpack.c.bf16 %v1098_v32, %v1097_v31 }
 0x40d   : > { %5445 = vmatmul.msk.bf16.gmra.mxu0 %vm1163_vm2, %v1107_v34  ;;  %5453 = vmatmul.msk.bf16.gmra.mxu1 %vm1163_vm2, %v1107_v34 }
 0x40e   : > { %v6125_v37 = vpop.eup %6124 }
 0x40f   : > { %v1498_v36 = vpop.xlane.xlu0 %1497  ;;  %v1513_v39 = vmul.f32 %v6125_v37, %v6117_v62  ;;  %v1644_v43 = vpop.permute.xlu2 %1643  ;;  %v1099_v37 = vld [vmem:[#allocation2 + $0x70] sm:$0xff] }
 0x410   : > { %6126 = vrcp.f32 %v1498_v36 }
 0x416   : > { %v6127_v38 = vpop.eup %6126 }
 0x417   : > { %v1514_v40 = vmul.f32 %v6127_v38, %v6119_v3  ;;  %v1831_v46 = vpop.permute.xlu2 %1830  ;;  %v1100_v38 = vld [vmem:[#allocation2 + $0x78] sm:$0xff] }
 0x419   : > { %v1518_v41 = vpack.c.bf16 %v1514_v40, %v1513_v39  ;;  %v1108_v39 = vpack.c.bf16 %v1100_v38, %v1099_v37 }
 0x41b   : > { %5494 = vmatmul.msk.bf16.gmra.mxu3 %vm1163_vm2, %v1518_v41 }
 0x41d   : > { %5446 = vmatmul.msk.bf16.gmra.mxu0 %vm1163_vm2, %v1108_v39  ;;  %5454 = vmatmul.msk.bf16.gmra.mxu1 %vm1163_vm2, %v1108_v39 }
 0x41f   : > { %v1979_v49 = vpop.permute.xlu2 %1978 }
 0x420   : > { %v2002_v51 = vsel %vm1365_vm6, %v1979_v49, 0 }
 0x422   : > { %v1638_v42 = vpop.permute.xlu0 %1637 }
 0x42a   : > { %v1642_v44 = vpop.permute.xlu0 %1641 }
 0x42b   : > { %5511 = vmatmul.msk.bf16.vlgmr.msrb.gmra.mxu3 %vm1365_vm6, %v1638_v42 }
 0x432   : > { %v1833_v47 = vpop.permute.xlu0 %1832 }
 0x433   : > { %1854 = vmatpush.bf16.msrb.mxu2 %v1833_v47 }
 0x437   : > { %1855 = vmatpush.bf16.msrb.mxu2 %v1831_v46 }
 0x43a   : > { %v1827_v50 = vpop.permute.xlu0 %1826 }
 0x43b   : > { %5512 = vmatmul.msk.bf16.gmra.mxu3 %vm1365_vm6, %v1640_v45  ;;  %1856 = vmatpush.bf16.msrb.mxu2 %v1829_v48 }
 0x43f   : > { %1857 = vmatpush.bf16.msrb.mxu2 %v1827_v50 }
 0x443   : > { %2008 = vmatpush.bf16.xpose.msra.mxu2 %v2002_v51 }
 0x44b   : > { %5513 = vmatmul.msk.bf16.gmra.mxu3 %vm1365_vm6, %v1642_v44 }
 0x45b   : > { %5514 = vmatmul.msk.bf16.gmra.mxu3 %vm1365_vm6, %v1644_v43 }
 0x48e   : > { %v1574_v52 = vpop.f32.mrf.mxu3 }
 0x48f   : > { %v1588_v53 = vpack.c.bf16 %v1574_v52, %v1574_v52 }
 0x491   : > { %1597 = vst.msk [vmem:[#allocation4 + $0x10] sm:$0xf] %vm1592_vm7, %v1588_v53 }
 0x496   : > { %v1576_v54 = vpop.f32.mrf.mxu3 }
 0x497   : > { %v1589_v55 = vpack.c.bf16 %v1576_v54, %v1576_v54 }
 0x499   : > { %1598 = vst.msk [vmem:[#allocation4 + $0x14] sm:$0xf] %vm1592_vm7, %v1589_v55  ;;  %v5929_v55 = vld [vmem:[#allocation3 + $0x4] sm:$0xf0] }
 0x49e   : > { %v1579_v56 = vpop.f32.mrf.mxu3 }
 0x49f   : > { %v1590_v57 = vpack.c.bf16 %v1579_v56, %v1579_v56  ;;  %v5537_v56 = vld [vmem:[#allocation3] sm:$0xf] }
 0x4a1   : > { %1599 = vst.msk [vmem:[#allocation4 + $0x18] sm:$0xf] %vm1592_vm7, %v1590_v57  ;;  %v1217_v57 = vpop.f32.mrf.mxu0 }
 0x4a6   : > { %v1581_v58 = vpop.f32.mrf.mxu3 }
 0x4a7   : > { %v1591_v59 = vpack.c.bf16 %v1581_v58, %v1581_v58  ;;  %v7114_v58 = vor.u32 %v5929_v55, %v5537_v56 }
 0x4a9   : > { %1600 = vst.msk [vmem:[#allocation4 + $0x1c] sm:$0xf] %vm1592_vm7, %v1591_v59  ;;  %v1218_v59 = vadd.f32 %v1217_v57, %v6968_v0 }
 0x4ae   : > { %v1686_v60 = vpop.f32.mrf.mxu3 }
 0x4af   : > { %v1706_v61 = vmul.f32 0.25, %v1686_v60  ;;  %v1266_v60 = vpop.f32.mrf.mxu1 }
 0x4b1   : > { %v1714_v62 = vsel %vm1163_vm2, %v1706_v61, -inf }
 0x4b2   : > { %1715 = vmax.xlane.f32.xlu1 %v1714_v62 }
 0x4b6   : > { %v1688_v63 = vpop.f32.mrf.mxu3 }
 0x4b7   : > { %v1707_v2 = vmul.f32 0.25, %v1688_v63  ;;  %v5930_v63 = vld [vmem:[#allocation3 + $0x14] sm:$0xf0] }
 0x4b9   : > { %v1717_v3 = vsel %vm1163_vm2, %v1707_v2, -inf }
 0x4ba   : > { %1718 = vmax.xlane.f32.xlu0 %v1717_v3  ;;  %v5541_v3 = vld [vmem:[#allocation3 + $0x10] sm:$0xf] }
 0x4be   : > { %v1691_v4 = vpop.f32.mrf.mxu3 }
 0x4bf   : > { %v1708_v5 = vmul.f32 0.25, %v1691_v4 }
 0x4c1   : > { %v1720_v7 = vsel %vm1163_vm2, %v1708_v5, -inf }
 0x4c2   : > { %1721 = vmax.xlane.f32.xlu2 %v1720_v7  ;;  %v7123_v7 = vor.u32 %v5930_v63, %v5541_v3 }
 0x4c6   : > { %v1693_v8 = vpop.f32.mrf.mxu3 }
 0x4c7   : > { %v7074_v9 = vmul.f32 0.25, %v1693_v8  ;;  %v5931_v8 = vld [vmem:[#allocation3 + $0x24] sm:$0xf0] }
 0x4c9   : > { %v1723_v13 = vsel %vm1163_vm2, %v7074_v9, -inf }
 0x4ca   : > { %1724 = vmax.xlane.f32.xlu1 %v1723_v13  ;;  %v7128_v13 = vor.u32 %v5931_v8, %v5545_v11 }
 0x4ce   : > { %v1696_v18 = vpop.f32.mrf.mxu3 }
 0x4cf   : > { %v7080_v19 = vmul.f32 0.25, %v1696_v18 }
 0x4d1   : > { %v1726_v20 = vsel %vm1163_vm2, %v7080_v19, -inf }
 0x4d2   : > { %1727 = vmax.xlane.f32.xlu0 %v1726_v20 }
 0x4d6   : > { %v1698_v24 = vpop.f32.mrf.mxu3 }
 0x4d7   : > { %v7084_v26 = vmul.f32 0.25, %v1698_v24 }
 0x4d9   : > { %v1729_v27 = vsel %vm1163_vm2, %v7084_v26, -inf }
 0x4da   : > { %1730 = vmax.xlane.f32.xlu1 %v1729_v27 }
 0x4de   : > { %v1701_v28 = vpop.f32.mrf.mxu3 }
 0x4df   : > { %v7090_v29 = vmul.f32 0.25, %v1701_v28 }
 0x4e1   : > { %v1732_v30 = vsel %vm1163_vm2, %v7090_v29, -inf }
 0x4e2   : > { %1733 = vmax.xlane.f32.xlu0 %v1732_v30 }
 0x4e6   : > { %v1703_v33 = vpop.f32.mrf.mxu3 }
 0x4e7   : > { %v7094_v35 = vmul.f32 0.25, %v1703_v33 }
 0x4e9   : > { %v1735_v36 = vsel %vm1163_vm2, %v7094_v35, -inf }
 0x4ea   : > { %1736 = vmax.xlane.f32.xlu1 %v1735_v36 }
 0x525   : > { %v1716_v40 = vpop.xlane.xlu1 %1715 }
 0x526   : > { %v1738_v41 = vsub.f32 %v1706_v61, %v1716_v40  ;;  %v1267_v61 = vadd.f32 %v1266_v60, %v6970_v1 }
 0x528   : > { %v1746_v42 = vmul.f32 1.442695, %v1738_v41  ;;  %v1294_v62 = vpack.c.bf16 %v1267_v61, %v1218_v59 }
 0x52a   : > { %6128 = vpow2.f32 %v1746_v42  ;;  %1313 = vst.msk [vmem:[#allocation3 + $0x40] sm:$0xff] %vm6974_vm5, %v1294_v62 }
 0x52d   : > { %v1719_v43 = vpop.xlane.xlu0 %1718 }
 0x52e   : > { %v1739_v44 = vsub.f32 %v1707_v2, %v1719_v43  ;;  %v1219_v2 = vpop.f32.mrf.mxu0 }
 0x52f   : > { %v1220_v4 = vadd.f32 %v1219_v2, %v6968_v0 }
 0x530   : > { %v7102_v45 = vpop.eup %6128  ;;  %v1748_v46 = vmul.f32 1.442695, %v1739_v44 }
 0x531   : > { %v1762_v47 = vsel %vm1163_vm2, %v7102_v45, 0.0 }
 0x532   : > { %6130 = vpow2.f32 %v1748_v46  ;;  %1763 = vadd.xlane.f32.xlu2 %v1762_v47 }
 0x535   : > { %v1722_v48 = vpop.xlane.xlu2 %1721 }
 0x536   : > { %v1740_v49 = vsub.f32 %v1708_v5, %v1722_v48  ;;  %v1268_v5 = vpop.f32.mrf.mxu1  ;;  %v1222_v18 = vpop.f32.mrf.mxu0 }
 0x537   : > { %v1269_v10 = vadd.f32 %v1268_v5, %v6970_v1  ;;  %v1223_v20 = vadd.f32 %v1222_v18, %v6968_v0 }
 0x538   : > { %v7106_v50 = vpop.eup %6130  ;;  %v1750_v51 = vmul.f32 1.442695, %v1740_v49 }
 0x539   : > { %v1765_v52 = vsel %vm1163_vm2, %v7106_v50, 0.0  ;;  %v1295_v12 = vpack.c.bf16 %v1269_v10, %v1220_v4 }
 0x53a   : > { %6132 = vpow2.f32 %v1750_v51  ;;  %1766 = vadd.xlane.f32.xlu1 %v1765_v52 }
 0x53b   : > { %1314 = vst.msk [vmem:[#allocation3 + $0x48] sm:$0xff] %vm6974_vm5, %v1295_v12 }
 0x53d   : > { %v1725_v25 = vpop.xlane.xlu1 %1724 }
 0x53e   : > { %v1271_v22 = vpop.f32.mrf.mxu1  ;;  %v1224_v27 = vpop.f32.mrf.mxu0  ;;  %v1741_v31 = vsub.f32 %v7074_v9, %v1725_v25  ;;  %v5935_v25 = vld [vmem:[#allocation3 + $0x28] sm:$0xf0] }
 0x53f   : > { %v1272_v23 = vadd.f32 %v1271_v22, %v6970_v1  ;;  %v1225_v28 = vadd.f32 %v1224_v27, %v6968_v0  ;;  %v5585_v22 = vld [vmem:[#allocation3 + $0x20] sm:$0xf] }
 0x540   : > { %v7110_v53 = vpop.eup %6132  ;;  %v1752_v34 = vmul.f32 1.442695, %v1741_v31 }
 0x541   : > { %v1768_v54 = vsel %vm1163_vm2, %v7110_v53, 0.0  ;;  %v1296_v24 = vpack.c.bf16 %v1272_v23, %v1223_v20  ;;  %v5939_v20 = vld [vmem:[#allocation3 + $0x24] sm:$0xf0] }
 0x542   : > { %1769 = vadd.xlane.f32.xlu0 %v1768_v54  ;;  %6134 = vpow2.f32 %v1752_v34 }
 0x543   : > { %1315 = vst.msk [vmem:[#allocation3 + $0x50] sm:$0xff] %vm6974_vm5, %v1296_v24  ;;  %v5589_v24 = vld [vmem:[#allocation3 + $0x30] sm:$0xf] }
 0x545   : > { %v1728_v37 = vpop.xlane.xlu0 %1727 }
 0x546   : > { %v1273_v30 = vpop.f32.mrf.mxu1  ;;  %v1227_v36 = vpop.f32.mrf.mxu0  ;;  %v1742_v41 = vsub.f32 %v7080_v19, %v1728_v37 }
 0x547   : > { %v1274_v32 = vadd.f32 %v1273_v30, %v6970_v1  ;;  %v1228_v38 = vadd.f32 %v1227_v36, %v6968_v0 }
 0x548   : > { %v7149_v44 = vpop.eup %6134  ;;  %v1754_v46 = vmul.f32 1.442695, %v1742_v41 }
 0x549   : > { %v1297_v33 = vpack.c.bf16 %v1274_v32, %v1225_v28  ;;  %v1771_v19 = vsel %vm1163_vm2, %v7149_v44, 0.0  ;;  %v5577_v32 = vld [vmem:[#allocation3] sm:$0xf] }
 0x54a   : > { %1972 = vrot.lane.b32.xlu2 %v7114_v58, %s6588_s30  ;;  %6136 = vpow2.f32 %v1754_v46 }
 0x54b   : > { %1316 = vst.msk [vmem:[#allocation3 + $0x58] sm:$0xff] %vm6974_vm5, %v1297_v33 }
 0x54d   : > { %v1731_v42 = vpop.xlane.xlu1 %1730 }
 0x54e   : > { %v1276_v39 = vpop.f32.mrf.mxu1  ;;  %v1743_v9 = vsub.f32 %v7084_v26, %v1731_v42  ;;  %v1229_v47 = vpop.f32.mrf.mxu0 }
 0x54f   : > { %v1277_v40 = vadd.f32 %v1276_v39, %v6970_v1  ;;  %v1230_v48 = vadd.f32 %v1229_v47, %v6968_v0  ;;  %v5569_v39 = vld [vmem:[#allocation3 + $0x34] sm:$0xf] }
 0x550   : > { %v1756_v52 = vmul.f32 1.442695, %v1743_v9  ;;  %v7159_v60 = vpop.eup %6136 }
 0x551   : > { %v1298_v43 = vpack.c.bf16 %v1277_v40, %v1228_v38  ;;  %v1774_v3 = vsel %vm1163_vm2, %v7159_v60, 0.0  ;;  %v5936_v38 = vld [vmem:[#allocation3 + $0x38] sm:$0xf0] }
 0x552   : > { %6138 = vpow2.f32 %v1756_v52  ;;  %v5934_v40 = vld [vmem:[#allocation3 + $0x18] sm:$0xf0]  ;;  %v5570_v42 = vor.u32 %v5936_v38, %v5569_v39 }
 0x553   : > { %1974 = vrot.lane.b32.xlu1 %v7123_v7, %s6588_s30  ;;  %1317 = vst.msk [vmem:[#allocation3 + $0x60] sm:$0xff] %vm6974_vm5, %v1298_v43  ;;  %v5561_v43 = vld [vmem:[#allocation3 + $0x14] sm:$0xf] }
 0x554   : > { %v5562_v46 = vor.u32 %v5934_v40, %v5561_v43  ;;  %v5962_v43 = vld [vmem:[#allocation3 + $0x54] sm:$0xf0] }
 0x555   : > { %v1734_v54 = vpop.xlane.xlu0 %1733 }
 0x556   : > { %1976 = vrot.lane.b32.xlu0 %v7128_v13, %s6588_s30  ;;  %v1278_v49 = vpop.f32.mrf.mxu1  ;;  %v1744_v26 = vsub.f32 %v7090_v29, %v1734_v54  ;;  %v1232_v56 = vpop.f32.mrf.mxu0  ;;  %v5954_v54 = vld [vmem:[#allocation3 + $0x54] sm:$0xf0] }
 0x557   : > { %v1279_v51 = vadd.f32 %v1278_v49, %v6970_v1  ;;  %v1233_v57 = vadd.f32 %v1232_v56, %v6968_v0 }
 0x558   : > { %v1758_v62 = vmul.f32 1.442695, %v1744_v26  ;;  %v7162_v2 = vpop.eup %6138  ;;  %v5933_v26 = vld [vmem:[#allocation3 + $0x8] sm:$0xf0] }
 0x559   : > { %v1299_v55 = vpack.c.bf16 %v1279_v51, %v1230_v48  ;;  %v1777_v29 = vsel %vm1163_vm2, %v7162_v2, 0.0 }
 0x55a   : > { %6140 = vpow2.f32 %v1758_v62  ;;  %v5665_v49 = vld [vmem:[#allocation3 + $0x60] sm:$0xf] }
 0x55b   : > { %1318 = vst.msk [vmem:[#allocation3 + $0x68] sm:$0xff] %vm6974_vm5, %v1299_v55 }
 0x55d   : > { %v7193_v28 = vpop.xlane.xlu1 %1736 }
 0x55e   : > { %v1281_v59 = vpop.f32.mrf.mxu1  ;;  %v1234_v4 = vpop.f32.mrf.mxu0  ;;  %v1745_v40 = vsub.f32 %v7094_v35, %v7193_v28 }
 0x55f   : > { %v1282_v61 = vadd.f32 %v1281_v59, %v6970_v1  ;;  %v1235_v5 = vadd.f32 %v1234_v4, %v6968_v0  ;;  %v5586_v0 = vor.u32 %v5939_v20, %v5585_v22  ;;  %v5953_v59 = vld [vmem:[#allocation3 + $0x44] sm:$0xf0]  ;;  %v5705_v4 = vld [vmem:[#allocation3 + $0x60] sm:$0xf] }
 0x560   : > { %v7172_v12 = vpop.eup %6140  ;;  %v5737_v20 = vld [vmem:[#allocation3 + $0x40] sm:$0xf]  ;;  %v5969_v22 = vld [vmem:[#allocation3 + $0x44] sm:$0xf0] }
 0x561   : > { %v1300_v63 = vpack.c.bf16 %v1282_v61, %v1233_v57  ;;  %v1780_v18 = vsel %vm1163_vm2, %v7172_v12, 0.0  ;;  %v5557_v57 = vld [vmem:[#allocation3 + $0x4] sm:$0xf] }
 0x562   : > { %v5955_v51 = vld [vmem:[#allocation3 + $0x64] sm:$0xf0] }
 0x563   : > { %1319 = vst.msk [vmem:[#allocation3 + $0x70] sm:$0xff] %vm6974_vm5, %v1300_v63  ;;  %v5666_v55 = vor.u32 %v5955_v51, %v5665_v49 }
 0x566   : > { %v1283_v8 = vpop.f32.mrf.mxu1 }
 0x567   : > { %v1284_v10 = vadd.f32 %v1283_v8, %v6970_v1  ;;  %v5938_v1 = vld [vmem:[#allocation3 + $0x14] sm:$0xf0] }
 0x568   : > { %v5582_v23 = vor.u32 %v5938_v1, %v5581_v6  ;;  %v5971_v1 = vld [vmem:[#allocation3 + $0x64] sm:$0xf0] }
 0x569   : > { %v1301_v11 = vpack.c.bf16 %v1284_v10, %v1235_v5  ;;  %v5963_v5 = vld [vmem:[#allocation3 + $0x64] sm:$0xf0] }
 0x56a   : > { %v5669_v30 = vld [vmem:[#allocation3 + $0x70] sm:$0xf] }
 0x56b   : > { %1320 = vst.msk [vmem:[#allocation3 + $0x78] sm:$0xff] %vm6974_vm5, %v1301_v11  ;;  %v5629_v62 = vld [vmem:[#allocation3 + $0x70] sm:$0xf]  ;;  %v7221_v11 = vor.u32 %v5963_v5, %v5705_v4 }
 0x56c   : > { %v5709_v35 = vld [vmem:[#allocation3 + $0x70] sm:$0xf] }
 0x56d   : > { %v5621_v5 = vld [vmem:[#allocation3 + $0x50] sm:$0xf] }
 0x572   : > { %v5956_v31 = vld [vmem:[#allocation3 + $0x74] sm:$0xf0] }
 0x573   : > { %1772 = vadd.xlane.f32.xlu2 %v1771_v19  ;;  %v7196_v36 = vor.u32 %v5956_v31, %v5669_v30  ;;  %v5661_v19 = vld [vmem:[#allocation3 + $0x50] sm:$0xf]  ;;  %v5948_v63 = vld [vmem:[#allocation3 + $0x74] sm:$0xf0] }
 0x574   : > { %v5662_v56 = vor.u32 %v5954_v54, %v5661_v19 }
 0x57d   : > { %1775 = vadd.xlane.f32.xlu1 %v1774_v3 }
 0x580   : > { %1778 = vadd.xlane.f32.xlu0 %v1777_v29  ;;  %v7216_v29 = vor.u32 %v5948_v63, %v5629_v62 }
 0x588   : > { %1781 = vadd.xlane.f32.xlu0 %v1780_v18 }
 0x58b   : > { %1966 = vrot.lane.b32.xlu2 %v7123_v7, %s6589_s25  ;;  %v5940_v7 = vld [vmem:[#allocation3 + $0x34] sm:$0xf0] }
 0x58c   : > { %v7188_v27 = vor.u32 %v5940_v7, %v5589_v24  ;;  %v5625_v7 = vld [vmem:[#allocation3 + $0x60] sm:$0xf]  ;;  %v5947_v24 = vld [vmem:[#allocation3 + $0x64] sm:$0xf0] }
 0x593   : > { %2303 = vrot.lane.b32.xlu2 %v5586_v0, %s6590_s18 }
 0x596   : > { %1968 = vrot.lane.b32.xlu1 %v7128_v13, %s6589_s25  ;;  %v5565_v13 = vld [vmem:[#allocation3 + $0x24] sm:$0xf] }
 0x59b   : > { %1970 = vrot.lane.b32.xlu2 %v7054_v21, %s6589_s25  ;;  %v5566_v21 = vor.u32 %v5935_v25, %v5565_v13  ;;  %v7234_v13 = vor.u32 %v5947_v24, %v5625_v7 }
 0x59c   : > { %1964 = vrot.lane.b32.xlu0 %v7114_v58, %s6589_s25  ;;  %v5937_v58 = vld [vmem:[#allocation3 + $0x4] sm:$0xf0] }
 0x59d   : > { %v5578_v34 = vor.u32 %v5937_v58, %v5577_v32  ;;  %v5970_v58 = vld [vmem:[#allocation3 + $0x54] sm:$0xf0] }
 0x59e   : > { %2293 = vrot.lane.b32.xlu1 %v5582_v23, %s6591_s29 }
 0x5a3   : > { %2301 = vrot.lane.b32.xlu2 %v5582_v23, %s6590_s18  ;;  %v5738_v23 = vor.u32 %v5969_v22, %v5737_v20 }
 0x5a4   : > { %2305 = vrot.lane.b32.xlu0 %v7188_v27, %s6590_s18 }
 0x5a5   : > { %v1764_v33 = vpop.xlane.xlu2 %1763 }
 0x5a6   : > { %2157 = vrot.lane.b32.xlu1 %v5566_v21, %s6589_s25  ;;  %6142 = vrcp.f32 %v1764_v33  ;;  %v5741_v21 = vld [vmem:[#allocation3 + $0x50] sm:$0xf]  ;;  %v5697_v33 = vld [vmem:[#allocation3 + $0x40] sm:$0xf] }
 0x5a7   : > { %v7239_v31 = vor.u32 %v5970_v58, %v5741_v21  ;;  %v5749_v58 = vld [vmem:[#allocation3 + $0x70] sm:$0xf] }
 0x5ab   : > { %2299 = vrot.lane.b32.xlu2 %v5578_v34, %s6590_s18 }
 0x5ac   : > { %2291 = vrot.lane.b32.xlu0 %v5578_v34, %s6591_s29  ;;  %v6143_v41 = vpop.eup %6142  ;;  %v5961_v34 = vld [vmem:[#allocation3 + $0x44] sm:$0xf0] }
 0x5ad   : > { %v1767_v37 = vpop.xlane.xlu1 %1766  ;;  %v1794_v47 = vmul.f32 %v6143_v41, %v7102_v45  ;;  %v5558_v45 = vor.u32 %v5933_v26, %v5557_v57 }
 0x5ae   : > { %6144 = vrcp.f32 %v1767_v37  ;;  %2910 = vrot.lane.b32.xlu1 %v7196_v36, %s6586_s16  ;;  %v7246_v37 = vor.u32 %v5961_v34, %v5697_v33 }
 0x5b3   : > { %2295 = vrot.lane.b32.xlu2 %v5586_v0, %s6591_s29  ;;  %v5745_v0 = vld [vmem:[#allocation3 + $0x60] sm:$0xf] }
 0x5b4   : > { %v6145_v9 = vpop.eup %6144  ;;  %2159 = vrot.lane.b32.xlu0 %v5570_v42, %s6589_s25  ;;  %v7229_v25 = vor.u32 %v5971_v1, %v5745_v0  ;;  %v5701_v42 = vld [vmem:[#allocation3 + $0x50] sm:$0xf]  ;;  %v7287_v0 = vmul.f32 0.25, %v7024_v14 }
 0x5b5   : > { %v1795_v48 = vmul.f32 %v6145_v9, %v7106_v50  ;;  %v5657_v50 = vld [vmem:[#allocation3 + $0x40] sm:$0xf]  ;;  %v1770_v61 = vpop.xlane.xlu0 %1769 }
 0x5b6   : > { %2155 = vrot.lane.b32.xlu1 %v5562_v46, %s6589_s25  ;;  %v7211_v3 = vor.u32 %v5953_v59, %v5657_v50  ;;  %6146 = vrcp.f32 %v1770_v61  ;;  %v1760_v46 = vmul.f32 1.442695, %v1745_v40 }
 0x5b7   : > { %v1802_v52 = vpack.c.bf16 %v1795_v48, %v1794_v47  ;;  %v7255_v48 = vor.u32 %v5962_v43, %v5701_v42 }
 0x5b9   : > { %5531 = vmatmul.msk.bf16.vlgmr.msrb.gmra.mxu2 %vm1163_vm2, %v1802_v52 }
 0x5bb   : > { %2908 = vrot.lane.b32.xlu2 %v5666_v55, %s6586_s16 }
 0x5bc   : > { %2906 = vrot.lane.b32.xlu0 %v5662_v56, %s6586_s16  ;;  %v6147_v38 = vpop.eup %6146 }
 0x5bd   : > { %v1796_v41 = vmul.f32 %v6147_v38, %v7110_v53  ;;  %v5964_v53 = vld [vmem:[#allocation3 + $0x74] sm:$0xf0] }
 0x5be   : > { %2153 = vrot.lane.b32.xlu1 %v5558_v45, %s6589_s25  ;;  %v7261_v51 = vor.u32 %v5964_v53, %v5709_v35 }
 0x5c3   : > { %2898 = vrot.lane.b32.xlu2 %v5662_v56, %s6587_s0 }
 0x5c4   : > { %2896 = vrot.lane.b32.xlu0 %v7211_v3, %s6587_s0 }
 0x5c5   : > { %v1975_v18 = vpop.permute.xlu1 %1974 }
 0x5c6   : > { %2624 = vrot.lane.b32.xlu1 %v7216_v29, %s6585_s20  ;;  %v1996_v6 = vsel %vm1365_vm6, %v1975_v18, 0 }
 0x5c8   : > { %v1977_v8 = vpop.permute.xlu0 %1976 }
 0x5c9   : > { %v1999_v10 = vsel %vm1365_vm6, %v1977_v8, 0  ;;  %v5946_v8 = vld [vmem:[#allocation3 + $0x54] sm:$0xf0] }
 0x5ca   : > { %2009 = vmatpush.bf16.xpose.msra.mxu2 %v1999_v10  ;;  %v7284_v20 = vor.u32 %v5946_v8, %v5621_v5 }
 0x5cb   : > { %3234 = vrot.lane.b32.xlu2 %v7221_v11, %s6588_s30 }
 0x5cc   : > { %2900 = vrot.lane.b32.xlu0 %v5666_v55, %s6587_s0 }
 0x5ce   : > { %2297 = vrot.lane.b32.xlu1 %v7188_v27, %s6591_s29  ;;  %v1973_v27 = vpop.permute.xlu2 %1972 }
 0x5cf   : > { %v1993_v30 = vsel %vm1365_vm6, %v1973_v27, 0 }
 0x5d2   : > { %2010 = vmatpush.bf16.xpose.msra.mxu2 %v1996_v6  ;;  %v5617_v6 = vld [vmem:[#allocation3 + $0x40] sm:$0xf] }
 0x5d3   : > { %3548 = vrot.lane.b32.xlu2 %v5738_v23, %s6591_s29 }
 0x5d4   : > { %3560 = vrot.lane.b32.xlu0 %v7229_v25, %s6590_s18 }
 0x5d6   : > { %2622 = vrot.lane.b32.xlu1 %v7234_v13, %s6585_s20 }
 0x5da   : > { %2011 = vmatpush.bf16.xpose.msra.mxu2 %v1993_v30  ;;  %v5972_v30 = vld [vmem:[#allocation3 + $0x74] sm:$0xf0] }
 0x5db   : > { %3550 = vrot.lane.b32.xlu2 %v7239_v31, %s6591_s29  ;;  %v5750_v33 = vor.u32 %v5972_v30, %v5749_v58 }
 0x5dc   : > { %2902 = vrot.lane.b32.xlu0 %v7196_v36, %s6587_s0 }
 0x5e4   : > { %3556 = vrot.lane.b32.xlu0 %v5738_v23, %s6590_s18  ;;  %v5945_v23 = vld [vmem:[#allocation3 + $0x44] sm:$0xf0] }
 0x5e5   : > { %v7294_v27 = vor.u32 %v5945_v23, %v5617_v6 }
 0x5e6   : > { %v1773_v32 = vpop.xlane.xlu2 %1772 }
 0x5e7   : > { %6148 = vrcp.f32 %v1773_v32 }
 0x5ec   : > { %3230 = vrot.lane.b32.xlu0 %v7246_v37, %s6588_s30 }
 0x5ed   : > { %v6149_v39 = vpop.eup %6148 }
 0x5ee   : > { %v1797_v36 = vmul.f32 %v6149_v39, %v7149_v44  ;;  %v7259_v28 = vpop.permute.xlu2 %1966 }
 0x5f0   : > { %v1803_v9 = vpack.c.bf16 %v1797_v36, %v1796_v41  ;;  %v1776_v47 = vpop.xlane.xlu1 %1775 }
 0x5f2   : > { %5532 = vmatmul.msk.bf16.gmra.mxu2 %vm1163_vm2, %v1803_v9 }
 0x5f3   : > { %v1779_v49 = vpop.xlane.xlu0 %1778 }
 0x5f4   : > { %6150 = vrcp.f32 %v1779_v49  ;;  %3224 = vrot.lane.b32.xlu0 %v7255_v48, %s6589_s25 }
 0x5f5   : > { %6152 = vrcp.f32 %v1776_v47 }
 0x5f6   : > { %6154 = vpow2.f32 %v1760_v46  ;;  %v2304_v57 = vpop.permute.xlu2 %2303 }
 0x5f7   : > { %v2326_v18 = vsel %vm1365_vm6, %v2304_v57, 0 }
 0x5fa   : > { %v6151_v44 = vpop.eup %6150 }
 0x5fb   : > { %v6153_v52 = vpop.eup %6152  ;;  %v1799_v54 = vmul.f32 %v6151_v44, %v7162_v2  ;;  %v7272_v45 = vpop.xlane.xlu0 %1781 }
 0x5fc   : > { %v7263_v19 = vpop.eup %6154  ;;  %3228 = vrot.lane.b32.xlu0 %v7261_v51, %s6589_s25  ;;  %v1798_v55 = vmul.f32 %v6153_v52, %v7159_v60  ;;  %6156 = vrcp.f32 %v7272_v45 }
 0x5fd   : > { %v1783_v26 = vsel %vm1163_vm2, %v7263_v19, 0.0 }
 0x5fe   : > { %v1804_v56 = vpack.c.bf16 %v1799_v54, %v1798_v55  ;;  %v7276_v59 = vpop.permute.xlu2 %1970 }
 0x600   : > { %1784 = vadd.xlane.f32.xlu1 %v1783_v26 }
 0x602   : > { %5533 = vmatmul.msk.bf16.gmra.mxu2 %vm1163_vm2, %v1804_v56 }
 0x606   : > { %v2302_v63 = vpop.permute.xlu2 %2301 }
 0x607   : > { %v2323_v24 = vsel %vm1365_vm6, %v2302_v63, 0 }
 0x608   : > { %v7274_v50 = vpop.permute.xlu1 %1968 }
 0x60e   : > { %v7278_v61 = vpop.permute.xlu0 %1964  ;;  %v2300_v1 = vpop.permute.xlu2 %2299 }
 0x60f   : > { %v2320_v32 = vsel %vm1365_vm6, %v2300_v1, 0 }
 0x610   : > { %v2294_v62 = vpop.permute.xlu1 %2293 }
 0x616   : > { %v2306_v2 = vpop.permute.xlu0 %2305  ;;  %v2296_v21 = vpop.permute.xlu2 %2295 }
 0x617   : > { %v2329_v60 = vsel %vm1365_vm6, %v2306_v2, 0 }
 0x618   : > { %2335 = vmatpush.bf16.xpose.msra.mxu3 %v2329_v60  ;;  %v2158_v4 = vpop.permute.xlu1 %2157 }
 0x619   : > { %2904 = vrot.lane.b32.xlu1 %v7211_v3, %s6586_s16  ;;  %v1427_v3 = vsel %vm1163_vm2, %v7287_v0, -inf }
 0x61e   : > { %v2292_v10 = vpop.permute.xlu0 %2291  ;;  %v2909_v39 = vpop.permute.xlu2 %2908 }
 0x61f   : > { %v2931_v41 = vsel %vm1365_vm6, %v2909_v39, 0  ;;  %v7384_v39 = vmul.f32 0.25, %v7028_v16  ;;  %v7398_v16 = vmul.f32 0.25, %v7030_v17 }
 0x620   : > { %2336 = vmatpush.bf16.xpose.msra.mxu3 %v2326_v18  ;;  %v2911_v22 = vpop.permute.xlu1 %2910 }
 0x621   : > { %2620 = vrot.lane.b32.xlu1 %v7284_v20, %s6585_s20  ;;  %v2934_v34 = vsel %vm1365_vm6, %v2911_v22, 0 }
 0x626   : > { %1428 = vmax.xlane.f32.xlu0 %v1427_v3  ;;  %v2160_v7 = vpop.permute.xlu0 %2159  ;;  %v2899_v55 = vpop.permute.xlu2 %2898 }
 0x627   : > { %2181 = vmatpush.bf16.msrb.mxu0 %v2160_v7  ;;  %6007 = vmatpush.bf16.msra.mxu1 %v2160_v7 }
 0x628   : > { %6008 = vmatpush.bf16.msrb.mxu2 %v2160_v7  ;;  %2337 = vmatpush.bf16.xpose.msra.mxu3 %v2323_v24  ;;  %v2156_v14 = vpop.permute.xlu1 %2155 }
 0x629   : > { %2618 = vrot.lane.b32.xlu1 %v7294_v27, %s6585_s20  ;;  %s9328_s20 = scalar_lea.vmem %s9196_s9, %s6785_s15 }
 0x62b   : > { %2182 = vmatpush.bf16.msrb.mxu0 %v2158_v4  ;;  %6009 = vmatpush.bf16.msra.mxu1 %v2158_v4 }
 0x62c   : > { %6010 = vmatpush.bf16.msrb.mxu2 %v2158_v4 }
 0x62e   : > { %v2907_v42 = vpop.permute.xlu0 %2906  ;;  %v7360_v6 = vpop.permute.xlu2 %3234 }
 0x62f   : > { %2183 = vmatpush.bf16.msrb.mxu0 %v2156_v14  ;;  %6011 = vmatpush.bf16.msra.mxu1 %v2156_v14  ;;  %v2928_v9 = vsel %vm1365_vm6, %v2907_v42, 0 }
 0x630   : > { %6012 = vmatpush.bf16.msrb.mxu2 %v2156_v14  ;;  %2338 = vmatpush.bf16.xpose.msra.mxu3 %v2320_v32  ;;  %v2154_v38 = vpop.permute.xlu1 %2153 }
 0x631   : > { %3562 = vrot.lane.b32.xlu1 %v5750_v33, %s6590_s18 }
 0x633   : > { %2184 = vmatpush.bf16.msrb.mxu0 %v2154_v38  ;;  %6013 = vmatpush.bf16.msra.mxu1 %v2154_v38 }
 0x634   : > { %6014 = vmatpush.bf16.msrb.mxu2 %v2154_v38 }
 0x636   : > { %v2897_v44 = vpop.permute.xlu0 %2896  ;;  %v3549_v24 = vpop.permute.xlu2 %3548 }
 0x637   : > { %5591 = vmatmul.msk.bf16.vlgmr.msra.gmra.mxu3 %vm1365_vm6, %v2292_v10 }
 0x638   : > { %2940 = vmatpush.bf16.xpose.msrb.mxu3 %v2934_v34  ;;  %v2625_v40 = vpop.permute.xlu1 %2624 }
 0x639   : > { %v2648_v36 = vsel %vm1365_vm6, %v2625_v40, 0  ;;  %3236 = vrot.lane.b32.xlu1 %v7261_v51, %s6588_s30 }
 0x63a   : > { %2654 = vmatpush.bf16.xpose.msra.mxu0 %v2648_v36 }
 0x63c   : > { %v7362_v23 = vpop.f32.mrf.mxu2 }
 0x63d   : > { %9265 = vst [vmem:[#allocation20_spill] sm:$0xff] %v7362_v23 }
 0x640   : > { %2941 = vmatpush.bf16.xpose.msrb.mxu3 %v2931_v41  ;;  %v2298_v43 = vpop.permute.xlu1 %2297  ;;  %v3551_v41 = vpop.permute.xlu2 %3550 }
 0x641   : > { %3558 = vrot.lane.b32.xlu1 %v7239_v31, %s6590_s18 }
 0x647   : > { %5592 = vmatmul.msk.bf16.gmra.mxu3 %vm1365_vm6, %v2294_v62 }
 0x648   : > { %2942 = vmatpush.bf16.xpose.msrb.mxu3 %v2928_v9  ;;  %v2623_v46 = vpop.permute.xlu1 %2622 }
 0x649   : > { %3232 = vrot.lane.b32.xlu1 %v7255_v48, %s6588_s30  ;;  %v2645_v47 = vsel %vm1365_vm6, %v2623_v46, 0  ;;  %v6157_v48 = vpop.eup %6156 }
 0x64a   : > { %2655 = vmatpush.bf16.xpose.msra.mxu0 %v2645_v47 }
 0x651   : > { %3222 = vrot.lane.b32.xlu1 %v7246_v37, %s6589_s25  ;;  %v1800_v37 = vmul.f32 %v6157_v48, %v7172_v12  ;;  %v2901_v12 = vpop.permute.xlu0 %2900  ;;  %v1436_v48 = vsel %vm1163_vm2, %v7398_v16, -inf }
 0x657   : > { %5593 = vmatmul.msk.bf16.gmra.mxu3 %vm1365_vm6, %v2296_v21  ;;  %v7370_v21 = vpop.f32.mrf.mxu2 }
 0x658   : > { %9266 = vst [vmem:[#allocation21_spill] sm:$0xff] %v7370_v21 }
 0x659   : > { %3552 = vrot.lane.b32.xlu1 %v7229_v25, %s6591_s29  ;;  %v3561_v57 = vpop.permute.xlu0 %3560 }
 0x661   : > { %3226 = vrot.lane.b32.xlu1 %v7221_v11, %s6589_s25  ;;  %v2903_v62 = vpop.permute.xlu0 %2902 }
 0x667   : > { %5594 = vmatmul.msk.bf16.gmra.mxu3 %vm1365_vm6, %v2298_v43  ;;  %v1433_v43 = vsel %vm1163_vm2, %v7384_v39, -inf }
 0x669   : > { %3554 = vrot.lane.b32.xlu1 %v5750_v33, %s6591_s29  ;;  %v3557_v63 = vpop.permute.xlu0 %3556 }
 0x66a   : > { %v3577_v5 = vsel %vm1365_vm6, %v3557_v63, 0 }
 0x673   : > { %v1785_v31 = vpop.xlane.xlu1 %1784 }
 0x674   : > { %6158 = vrcp.f32 %v1785_v31 }
 0x675   : > { %v7379_v34 = vpop.f32.mrf.mxu2 }
 0x676   : > { %9267 = vst [vmem:[#allocation22_spill] sm:$0xff] %v7379_v34 }
 0x67a   : > { %v6159_v49 = vpop.eup %6158 }
 0x67b   : > { %v1801_v35 = vmul.f32 %v6159_v49, %v7263_v19 }
 0x67d   : > { %v1805_v53 = vpack.c.bf16 %v1801_v35, %v1800_v37  ;;  %v7395_v46 = vpop.f32.mrf.mxu2 }
 0x67e   : > { %9268 = vst [vmem:[#allocation23_spill] sm:$0xff] %v7395_v46 }
 0x67f   : > { %5534 = vmatmul.msk.bf16.gmra.mxu2 %vm1163_vm2, %v1805_v53 }
 0x685   : > { %v7406_v35 = vpop.f32.mrf.mxu2 }
 0x686   : > { %9269 = vst [vmem:[#allocation24_spill] sm:$0xff] %v7406_v35 }
 0x68b   : > { %v2905_v25 = vpop.permute.xlu1 %2904 }
 0x68c   : > { %v2925_v11 = vsel %vm1365_vm6, %v2905_v25, 0 }
 0x68d   : > { %2943 = vmatpush.bf16.xpose.msrb.mxu3 %v2925_v11 }
 0x68f   : > { %5551 = vmatmul.msk.bf16.vlgmr.msra.gmra.mxu2 %vm1365_vm6, %v7278_v61  ;;  %v3583_v61 = vsel %vm1365_vm6, %v3561_v57, 0 }
 0x693   : > { %v2621_v51 = vpop.permute.xlu1 %2620 }
 0x694   : > { %5671 = vmatmul.msk.bf16.vlgmr.msrb.gmra.mxu3 %vm1365_vm6, %v2897_v44  ;;  %v2642_v52 = vsel %vm1365_vm6, %v2621_v51, 0  ;;  %v7415_v44 = vpop.f32.mrf.mxu2  ;;  %v5944_v51 = vld [vmem:[#allocation3 + $0x38] sm:$0xf0] }
 0x695   : > { %2656 = vmatpush.bf16.xpose.msra.mxu0 %v2642_v52  ;;  %9270 = vst [vmem:[#allocation25_spill] sm:$0xff] %v7415_v44  ;;  %v5605_v44 = vld [vmem:[#allocation3 + $0x24] sm:$0xf] }
 0x69b   : > { %v2619_v54 = vpop.permute.xlu1 %2618 }
 0x69c   : > { %v2639_v19 = vsel %vm1365_vm6, %v2619_v54, 0  ;;  %v5609_v54 = vld [vmem:[#allocation3 + $0x34] sm:$0xf] }
 0x69d   : > { %2657 = vmatpush.bf16.xpose.msra.mxu0 %v2639_v19  ;;  %v5610_v19 = vor.u32 %v5944_v51, %v5609_v54 }
 0x69f   : > { %5552 = vmatmul.msk.bf16.gmra.mxu2 %vm1365_vm6, %v7259_v28 }
 0x6a3   : > { %v3563_v26 = vpop.permute.xlu1 %3562 }
 0x6a4   : > { %v3586_v56 = vsel %vm1365_vm6, %v3563_v26, 0  ;;  %5672 = vmatmul.msk.bf16.gmra.mxu3 %vm1365_vm6, %v2899_v55 }
 0x6a5   : > { %3592 = vmatpush.bf16.xpose.msra.mxu3 %v3586_v56 }
 0x6ab   : > { %v7336_v45 = vpop.permute.xlu1 %3236 }
 0x6ad   : > { %3593 = vmatpush.bf16.xpose.msra.mxu3 %v3583_v61 }
 0x6af   : > { %5553 = vmatmul.msk.bf16.gmra.mxu2 %vm1365_vm6, %v7274_v50  ;;  %v7351_v50 = vmul.f32 0.25, %v7026_v15 }
 0x6b1   : > { %v1430_v1 = vsel %vm1163_vm2, %v7351_v50, -inf }
 0x6b3   : > { %v3559_v2 = vpop.permute.xlu1 %3558 }
 0x6b4   : > { %5673 = vmatmul.msk.bf16.gmra.mxu3 %vm1365_vm6, %v2901_v12  ;;  %v3580_v28 = vsel %vm1365_vm6, %v3559_v2, 0 }
 0x6b5   : > { %3594 = vmatpush.bf16.xpose.msra.mxu3 %v3580_v28 }
 0x6ba   : > { %v2340_v60 = vpop.f32.mrf.mxu3 }
 0x6bb   : > { %v7343_v4 = vmul.f32 0.25, %v2340_v60  ;;  %v7375_v32 = vpop.permute.xlu1 %3232 }
 0x6bd   : > { %3595 = vmatpush.bf16.xpose.msra.mxu3 %v3577_v5  ;;  %v2368_v8 = vsel %vm1163_vm2, %v7343_v4, -inf }
 0x6be   : > { %2369 = vmax.xlane.f32.xlu1 %v2368_v8 }
 0x6bf   : > { %5554 = vmatmul.msk.bf16.gmra.mxu2 %vm1365_vm6, %v7276_v59 }
 0x6c2   : > { %v2342_v10 = vpop.f32.mrf.mxu3 }
 0x6c3   : > { %v7353_v18 = vmul.f32 0.25, %v2342_v10  ;;  %v7389_v42 = vpop.permute.xlu1 %3222 }
 0x6c4   : > { %5674 = vmatmul.msk.bf16.gmra.mxu3 %vm1365_vm6, %v2903_v62 }
 0x6c5   : > { %v2371_v22 = vsel %vm1163_vm2, %v7353_v18, -inf }
 0x6c6   : > { %2372 = vmax.xlane.f32.xlu2 %v2371_v22  ;;  %1431 = vmax.xlane.f32.xlu1 %v1430_v1 }
 0x6ca   : > { %v2345_v59 = vpop.f32.mrf.mxu3 }
 0x6cb   : > { %v7364_v15 = vmul.f32 0.25, %v2345_v59  ;;  %v3553_v37 = vpop.permute.xlu1 %3552 }
 0x6cd   : > { %v2374_v3 = vsel %vm1163_vm2, %v7364_v15, -inf }
 0x6ce   : > { %2375 = vmax.xlane.f32.xlu2 %v2374_v3 }
 0x6d2   : > { %v2347_v7 = vpop.f32.mrf.mxu3 }
 0x6d3   : > { %v7368_v14 = vmul.f32 0.25, %v2347_v7  ;;  %v7413_v11 = vpop.permute.xlu1 %3226 }
 0x6d4   : > { %5751 = vmatmul.msk.bf16.vlgmr.msra.gmra.mxu3 %vm1365_vm6, %v3549_v24 }
 0x6d5   : > { %v2377_v58 = vsel %vm1163_vm2, %v7368_v14, -inf }
 0x6d6   : > { %2378 = vmax.xlane.f32.xlu2 %v2377_v58 }
 0x6da   : > { %v2350_v30 = vpop.f32.mrf.mxu3 }
 0x6db   : > { %v7377_v33 = vmul.f32 0.25, %v2350_v30  ;;  %v3555_v12 = vpop.permute.xlu1 %3554 }
 0x6dd   : > { %v2380_v38 = vsel %vm1163_vm2, %v7377_v33, -inf }
 0x6de   : > { %2381 = vmax.xlane.f32.xlu2 %v2380_v38 }
 0x6e2   : > { %v2352_v40 = vpop.f32.mrf.mxu3 }
 0x6e3   : > { %v7386_v36 = vmul.f32 0.25, %v2352_v40 }
 0x6e4   : > { %5752 = vmatmul.msk.bf16.gmra.mxu3 %vm1365_vm6, %v3551_v41 }
 0x6e5   : > { %v2383_v9 = vsel %vm1163_vm2, %v7386_v36, -inf }
 0x6e6   : > { %1434 = vmax.xlane.f32.xlu2 %v1433_v43  ;;  %2384 = vmax.xlane.f32.xlu1 %v2383_v9 }
 0x6ea   : > { %v2355_v47 = vpop.f32.mrf.mxu3 }
 0x6eb   : > { %v7400_v31 = vmul.f32 0.25, %v2355_v47 }
 0x6ed   : > { %v2386_v49 = vsel %vm1163_vm2, %v7400_v31, -inf }
 0x6ee   : > { %1437 = vmax.xlane.f32.xlu1 %v1436_v48  ;;  %2387 = vmax.xlane.f32.xlu2 %v2386_v49 }
 0x6f2   : > { %v2357_v53 = vpop.f32.mrf.mxu3 }
 0x6f3   : > { %v7408_v25 = vmul.f32 0.25, %v2357_v53 }
 0x6f4   : > { %5753 = vmatmul.msk.bf16.gmra.mxu3 %vm1365_vm6, %v3553_v37 }
 0x6f5   : > { %v2389_v17 = vsel %vm1163_vm2, %v7408_v25, -inf }
 0x6f6   : > { %2390 = vmax.xlane.f32.xlu1 %v2389_v17 }
 0x702   : > { %v7417_v52 = vpop.f32.mrf.mxu2 }
 0x703   : > { %9271 = vst [vmem:[#allocation26_spill] sm:$0xff] %v7417_v52 }
 0x704   : > { %5754 = vmatmul.msk.bf16.gmra.mxu3 %vm1365_vm6, %v3555_v12 }
 0x706   : > { %2486 = vrot.lane.b32.xlu2 %v5610_v19, %s6591_s29 }
 0x70a   : > { %v7421_v55 = vpop.f32.mrf.mxu2 }
 0x70b   : > { %9272 = vst [vmem:[#allocation27_spill] sm:$0xff] %v7421_v55 }
 0x712   : > { %v2013_v26 = vpop.f32.mrf.mxu2 }
 0x713   : > { %v7423_v56 = vmul.f32 0.25, %v2013_v26 }
 0x715   : > { %v2041_v57 = vsel %vm1163_vm2, %v7423_v56, -inf }
 0x716   : > { %2042 = vmax.xlane.f32.xlu1 %v2041_v57 }
 0x71a   : > { %v2015_v61 = vpop.f32.mrf.mxu2 }
 0x71b   : > { %v7427_v62 = vmul.f32 0.25, %v2015_v61 }
 0x71d   : > { %v2044_v2 = vsel %vm1163_vm2, %v7427_v62, -inf }
 0x71e   : > { %2045 = vmax.xlane.f32.xlu0 %v2044_v2 }
 0x722   : > { %v2018_v28 = vpop.f32.mrf.mxu2 }
 0x723   : > { %v7431_v63 = vmul.f32 0.25, %v2018_v28  ;;  %v5942_v28 = vld [vmem:[#allocation3 + $0x18] sm:$0xf0] }
 0x725   : > { %v2047_v5 = vsel %vm1163_vm2, %v7431_v63, -inf }
 0x72a   : > { %v2020_v60 = vpop.f32.mrf.mxu2 }
 0x72b   : > { %v7453_v48 = vmul.f32 0.25, %v2020_v60  ;;  %v5601_v60 = vld [vmem:[#allocation3 + $0x14] sm:$0xf] }
 0x72d   : > { %v2050_v17 = vsel %vm1163_vm2, %v7453_v48, -inf }
 0x72f   : > { %2048 = vmax.xlane.f32.xlu2 %v2047_v5  ;;  %v7471_v5 = vpop.permute.xlu0 %3230 }
 0x731   : > { %v2370_v8 = vpop.xlane.xlu1 %2369 }
 0x732   : > { %v2392_v10 = vsub.f32 %v7343_v4, %v2370_v8  ;;  %v2023_v22 = vpop.f32.mrf.mxu2 }
 0x733   : > { %v7441_v40 = vmul.f32 0.25, %v2023_v22  ;;  %v7476_v22 = vpop.f32.mrf.mxu3 }
 0x734   : > { %v2400_v1 = vmul.f32 1.442695, %v2392_v10  ;;  %v5602_v10 = vor.u32 %v5942_v28, %v5601_v60 }
 0x735   : > { %v2053_v47 = vsel %vm1163_vm2, %v7441_v40, -inf }
 0x736   : > { %6160 = vpow2.f32 %v2400_v1 }
 0x737   : > { %v7478_v1 = vpop.permute.xlu0 %3224 }
 0x739   : > { %v2373_v59 = vpop.xlane.xlu2 %2372  ;;  %v1432_v61 = vpop.xlane.xlu1 %1431 }
 0x73a   : > { %v2393_v3 = vsub.f32 %v7353_v18, %v2373_v59  ;;  %v2025_v7 = vpop.f32.mrf.mxu2 }
 0x73b   : > { %v7463_v12 = vmul.f32 0.25, %v2025_v7 }
 0x73c   : > { %v7437_v24 = vpop.eup %6160  ;;  %v2402_v58 = vmul.f32 1.442695, %v2393_v3  ;;  %v7482_v3 = vpop.f32.mrf.mxu3 }
 0x73d   : > { %v2416_v30 = vsel %vm1163_vm2, %v7437_v24, 0.0  ;;  %v2056_v19 = vsel %vm1163_vm2, %v7463_v12, -inf }
 0x73e   : > { %6162 = vpow2.f32 %v2402_v58  ;;  %2417 = vadd.xlane.f32.xlu0 %v2416_v30 }
 0x73f   : > { %v7484_v7 = vpop.permute.xlu0 %3228 }
 0x741   : > { %v2376_v38 = vpop.xlane.xlu2 %2375 }
 0x742   : > { %v2028_v41 = vpop.f32.mrf.mxu2 }
 0x743   : > { %v7443_v4 = vmul.f32 0.25, %v2028_v41  ;;  %v2394_v41 = vsub.f32 %v7364_v15, %v2376_v38 }
 0x744   : > { %v7445_v43 = vpop.eup %6162  ;;  %v7486_v30 = vpop.f32.mrf.mxu3 }
 0x745   : > { %v2419_v18 = vsel %vm1163_vm2, %v7445_v43, 0.0  ;;  %v2059_v9 = vsel %vm1163_vm2, %v7443_v4, -inf }
 0x746   : > { %2420 = vadd.xlane.f32.xlu1 %v2419_v18  ;;  %2060 = vmax.xlane.f32.xlu2 %v2059_v9 }
 0x747   : > { %2054 = vmax.xlane.f32.xlu0 %v2053_v47  ;;  %v7489_v18 = vpop.xlane.xlu0 %1428 }
 0x749   : > { %v7455_v49 = vpop.xlane.xlu2 %2378 }
 0x74a   : > { %v2030_v37 = vpop.f32.mrf.mxu2 }
 0x74b   : > { %v7457_v53 = vmul.f32 0.25, %v2030_v37  ;;  %v2404_v37 = vmul.f32 1.442695, %v2394_v41 }
 0x74d   : > { %v2062_v51 = vsel %vm1163_vm2, %v7457_v53, -inf }
 0x74e   : > { %2051 = vmax.xlane.f32.xlu1 %v2050_v17 }
 0x74f   : > { %2063 = vmax.xlane.f32.xlu0 %v2062_v51  ;;  %v1452_v51 = vsub.f32 %v7351_v50, %v1432_v61 }
 0x751   : > { %v2382_v54 = vpop.xlane.xlu2 %2381  ;;  %v1461_v60 = vmul.f32 1.442695, %v1452_v51 }
 0x752   : > { %v2396_v50 = vsub.f32 %v7377_v33, %v2382_v54 }
 0x756   : > { %2057 = vmax.xlane.f32.xlu1 %v2056_v19  ;;  %v7493_v19 = vpop.f32.mrf.mxu3 }
 0x759   : > { %v7467_v26 = vpop.xlane.xlu2 %1434  ;;  %v7473_v8 = vpop.xlane.xlu1 %2384 }
 0x75e   : > { %v2955_v41 = vpop.f32.mrf.mxu3 }
 0x761   : > { %v7469_v57 = vpop.xlane.xlu2 %2387  ;;  %v7480_v59 = vpop.xlane.xlu1 %1437 }
 0x769   : > { %v2487_v2 = vpop.permute.xlu2 %2486  ;;  %v2391_v58 = vpop.xlane.xlu1 %2390 }
 0x76a   : > { %2508 = vmatpush.bf16.msra.mxu2 %v2487_v2 }
 0x76f   : > { %2482 = vrot.lane.b32.xlu1 %v5602_v10, %s6591_s29 }
 0x789   : > { %v2043_v9 = vpop.xlane.xlu1 %2042 }
 0x78a   : > { %v2065_v47 = vsub.f32 %v7423_v56, %v2043_v9 }
 0x78c   : > { %v2073_v17 = vmul.f32 1.442695, %v2065_v47 }
 0x78e   : > { %6164 = vpow2.f32 %v2073_v17 }
 0x78f   : > { %6166 = vpow2.f32 %v2404_v37 }
 0x791   : > { %v2046_v2 = vpop.xlane.xlu0 %2045 }
 0x792   : > { %v2066_v28 = vsub.f32 %v7427_v62, %v2046_v2  ;;  %v2408_v62 = vmul.f32 1.442695, %v2396_v50  ;;  %v7516_v2 = vpop.f32.mrf.mxu3  ;;  %v7521_v50 = vmul.f32 0.25, %v2955_v41 }
 0x794   : > { %v7496_v10 = vpop.eup %6164  ;;  %v2075_v15 = vmul.f32 1.442695, %v2066_v28 }
 0x795   : > { %v7498_v38 = vpop.eup %6166  ;;  %v2089_v56 = vsel %vm1163_vm2, %v7496_v10, 0.0 }
 0x796   : > { %6168 = vpow2.f32 %v2075_v15  ;;  %2090 = vadd.xlane.f32.xlu2 %v2089_v56  ;;  %v2422_v61 = vsel %vm1163_vm2, %v7498_v38, 0.0 }
 0x797   : > { %6170 = vpow2.f32 %v1461_v60  ;;  %v2399_v60 = vsub.f32 %v7408_v25, %v2391_v58  ;;  %v2985_v25 = vsel %vm1163_vm2, %v7521_v50, -inf }
 0x798   : > { %6172 = vpow2.f32 %v2408_v62 }
 0x799   : > { %2423 = vadd.xlane.f32.xlu1 %v2422_v61  ;;  %v2414_v56 = vmul.f32 1.442695, %v2399_v60 }
 0x79a   : > { %v7527_v62 = vpop.f32.mrf.mxu3 }
 0x79c   : > { %v7505_v9 = vpop.eup %6168 }
 0x79d   : > { %v7507_v47 = vpop.eup %6170  ;;  %v2092_v37 = vsel %vm1163_vm2, %v7505_v9, 0.0 }
 0x79e   : > { %2093 = vadd.xlane.f32.xlu0 %v2092_v37  ;;  %v1478_v17 = vsel %vm1163_vm2, %v7507_v47, 0.0  ;;  %v7514_v51 = vpop.eup %6172 }
 0x79f   : > { %v2428_v15 = vsel %vm1163_vm2, %v7514_v51, 0.0 }
 0x7a1   : > { %1479 = vadd.xlane.f32.xlu1 %v1478_v17 }
 0x7a2   : > { %v2049_v33 = vpop.xlane.xlu2 %2048  ;;  %v2962_v41 = vpop.f32.mrf.mxu3 }
 0x7a3   : > { %v2067_v54 = vsub.f32 %v7431_v63, %v2049_v33  ;;  %v7537_v33 = vmul.f32 0.25, %v2962_v41  ;;  %v5943_v41 = vld [vmem:[#allocation3 + $0x28] sm:$0xf0] }
 0x7a4   : > { %v5606_v52 = vor.u32 %v5943_v41, %v5605_v44  ;;  %v2398_v41 = vsub.f32 %v7400_v31, %v7469_v57 }
 0x7a5   : > { %v2077_v28 = vmul.f32 1.442695, %v2067_v54  ;;  %v2994_v54 = vsel %vm1163_vm2, %v7537_v33, -inf }
 0x7a7   : > { %6174 = vpow2.f32 %v2077_v28 }
 0x7a8   : > { %6176 = vpow2.f32 %v2414_v56 }
 0x7a9   : > { %2429 = vadd.xlane.f32.xlu1 %v2428_v15  ;;  %v5941_v15 = vld [vmem:[#allocation3 + $0x8] sm:$0xf0] }
 0x7ad   : > { %v7523_v61 = vpop.eup %6174 }
 0x7ae   : > { %v2095_v63 = vsel %vm1163_vm2, %v7523_v61, 0.0  ;;  %v7531_v58 = vpop.eup %6176 }
 0x7af   : > { %2096 = vadd.xlane.f32.xlu2 %v2095_v63  ;;  %v2437_v37 = vsel %vm1163_vm2, %v7531_v58, 0.0  ;;  %v5597_v63 = vld [vmem:[#allocation3 + $0x4] sm:$0xf] }
 0x7b1   : > { %2986 = vmax.xlane.f32.xlu1 %v2985_v25  ;;  %v5598_v25 = vor.u32 %v5941_v15, %v5597_v63  ;;  %v7559_v44 = vpop.xlane.xlu0 %2417 }
 0x7b9   : > { %2438 = vadd.xlane.f32.xlu1 %v2437_v37  ;;  %v7535_v17 = vpop.xlane.xlu1 %2420 }
 0x7c1   : > { %2995 = vmax.xlane.f32.xlu1 %v2994_v54  ;;  %v2052_v28 = vpop.xlane.xlu1 %2051 }
 0x7c2   : > { %v2068_v60 = vsub.f32 %v7453_v48, %v2052_v28  ;;  %v2395_v48 = vsub.f32 %v7368_v14, %v7455_v49  ;;  %v7551_v28 = vmul.f32 0.25, %v7476_v22  ;;  %v7567_v49 = vpop.xlane.xlu0 %2054 }
 0x7c4   : > { %v2079_v56 = vmul.f32 1.442695, %v2068_v60  ;;  %v2406_v54 = vmul.f32 1.442695, %v2395_v48  ;;  %v1451_v60 = vsub.f32 %v7287_v0, %v7489_v18  ;;  %v2973_v15 = vsel %vm1163_vm2, %v7551_v28, -inf }
 0x7c5   : > { %v1454_v0 = vsub.f32 %v7398_v16, %v7480_v59  ;;  %v7579_v48 = vmul.f32 0.25, %v7482_v3  ;;  %v2397_v59 = vsub.f32 %v7386_v36, %v7473_v8  ;;  %v7592_v3 = vmul.f32 0.25, %v7486_v30 }
 0x7c6   : > { %6178 = vpow2.f32 %v2079_v56  ;;  %v1459_v56 = vmul.f32 1.442695, %v1451_v60  ;;  %v1453_v8 = vsub.f32 %v7384_v39, %v7467_v26  ;;  %v7609_v26 = vmul.f32 0.25, %v7527_v62 }
 0x7c7   : > { %2480 = vrot.lane.b32.xlu2 %v5598_v25, %s6591_s29  ;;  %6180 = vpow2.f32 %v2406_v54  ;;  %v1465_v18 = vmul.f32 1.442695, %v1454_v0  ;;  %v7572_v25 = vmul.f32 0.25, %v7493_v19  ;;  %v2412_v19 = vmul.f32 1.442695, %v2398_v41 }
 0x7c8   : > { %6182 = vpow2.f32 %v1459_v56  ;;  %v2976_v60 = vsel %vm1163_vm2, %v7579_v48, -inf  ;;  %v2410_v31 = vmul.f32 1.442695, %v2397_v59  ;;  %v1463_v30 = vmul.f32 1.442695, %v1453_v8 }
 0x7c9   : > { %6184 = vpow2.f32 %v1465_v18  ;;  %v2982_v16 = vsel %vm1163_vm2, %v7572_v25, -inf  ;;  %v3257_v62 = vsel %vm1365_vm6, %v7360_v6, 0  ;;  %v3251_v8 = vsel %vm1365_vm6, %v7471_v5, 0  ;;  %v7637_v5 = vpop.xlane.xlu1 %2057 }
 0x7ca   : > { %v7585_v54 = vpop.xlane.xlu0 %2063  ;;  %6186 = vpow2.f32 %v2412_v19 }
 0x7cc   : > { %v7543_v55 = vpop.eup %6178 }
 0x7cd   : > { %v2098_v37 = vsel %vm1163_vm2, %v7543_v55, 0.0  ;;  %v7557_v63 = vpop.eup %6180 }
 0x7ce   : > { %2099 = vadd.xlane.f32.xlu0 %v2098_v37  ;;  %v2425_v14 = vsel %vm1163_vm2, %v7557_v63, 0.0  ;;  %v7574_v37 = vpop.xlane.xlu2 %2060 }
 0x7e2   : > { %2484 = vrot.lane.b32.xlu0 %v5606_v52, %s6591_s29  ;;  %v7563_v52 = vpop.eup %6182 }
 0x7e3   : > { %v1475_v22 = vsel %vm1163_vm2, %v7563_v52, 0.0 }
 0x7f0   : > { %2974 = vmax.xlane.f32.xlu2 %v2973_v15  ;;  %v7589_v15 = vpop.eup %6184 }
 0x7f1   : > { %v1484_v56 = vsel %vm1163_vm2, %v7589_v15, 0.0  ;;  %v7600_v0 = vpop.eup %6186 }
 0x7f2   : > { %v2434_v41 = vsel %vm1163_vm2, %v7600_v0, 0.0 }
 0x7f8   : > { %2426 = vadd.xlane.f32.xlu2 %v2425_v14  ;;  %v2979_v14 = vsel %vm1163_vm2, %v7592_v3, -inf }
 0x800   : > { %1476 = vadd.xlane.f32.xlu2 %v1475_v22 }
 0x808   : > { %2983 = vmax.xlane.f32.xlu2 %v2982_v16 }
 0x809   : > { %v2091_v57 = vpop.xlane.xlu2 %2090 }
 0x80a   : > { %6188 = vrcp.f32 %v2091_v57 }
 0x80b   : > { %6190 = vpow2.f32 %v2410_v31  ;;  %v3260_v31 = vsel %vm1365_vm6, %v7336_v45, 0 }
 0x80c   : > { %2977 = vmax.xlane.f32.xlu0 %v2976_v60 }
 0x810   : > { %1485 = vadd.xlane.f32.xlu2 %v1484_v56  ;;  %v6189_v22 = vpop.eup %6188  ;;  %v7625_v56 = vmul.f32 0.25, %v7516_v2 }
 0x811   : > { %v2094_v36 = vpop.xlane.xlu0 %2093  ;;  %v7602_v18 = vpop.eup %6190  ;;  %v2121_v59 = vmul.f32 %v6189_v22, %v7496_v10  ;;  %v2991_v10 = vsel %vm1163_vm2, %v7609_v26, -inf  ;;  %v5960_v22 = vld [vmem:[#allocation3 + $0x78] sm:$0xf0] }
 0x812   : > { %6192 = vrcp.f32 %v2094_v36  ;;  %v2431_v19 = vsel %vm1163_vm2, %v7602_v18, 0.0  ;;  %v2988_v45 = vsel %vm1163_vm2, %v7625_v56, -inf  ;;  %v3254_v36 = vsel %vm1365_vm6, %v7375_v32, 0 }
 0x813   : > { %6194 = vpow2.f32 %v1463_v30 }
 0x814   : > { %2980 = vmax.xlane.f32.xlu0 %v2979_v14  ;;  %v5689_v14 = vld [vmem:[#allocation3 + $0x74] sm:$0xf] }
 0x815   : > { %v5690_v6 = vor.u32 %v5960_v22, %v5689_v14 }
 0x818   : > { %v6193_v16 = vpop.eup %6192  ;;  %2435 = vadd.xlane.f32.xlu2 %v2434_v41 }
 0x819   : > { %v2122_v39 = vmul.f32 %v6193_v16, %v7505_v9  ;;  %v7618_v57 = vpop.eup %6194 }
 0x81a   : > { %v1481_v9 = vsel %vm1163_vm2, %v7618_v57, 0.0 }
 0x81b   : > { %v2129_v60 = vpack.c.bf16 %v2122_v39, %v2121_v59 }
 0x81c   : > { %2432 = vadd.xlane.f32.xlu0 %v2431_v19 }
 0x81d   : > { %5571 = vmatmul.msk.bf16.vlgmr.msrb.gmra.mxu0 %vm1163_vm2, %v2129_v60  ;;  %v2483_v60 = vpop.permute.xlu1 %2482 }
 0x81e   : > { %3266 = vmatpush.bf16.xpose.msrb.mxu0 %v3260_v31 }
 0x820   : > { %2992 = vmax.xlane.f32.xlu2 %v2991_v10 }
 0x822   : > { %v2097_v30 = vpop.xlane.xlu2 %2096 }
 0x823   : > { %6196 = vrcp.f32 %v2097_v30 }
 0x824   : > { %1482 = vadd.xlane.f32.xlu0 %v1481_v9 }
 0x826   : > { %3267 = vmatpush.bf16.xpose.msrb.mxu0 %v3257_v62 }
 0x829   : > { %v6197_v41 = vpop.eup %6196 }
 0x82a   : > { %v2123_v59 = vmul.f32 %v6197_v41, %v7523_v61  ;;  %v2481_v31 = vpop.permute.xlu2 %2480  ;;  %v7642_v61 = vpop.xlane.xlu1 %2423  ;;  %v5952_v41 = vld [vmem:[#allocation3 + $0x78] sm:$0xf0] }
 0x82c   : > { %2989 = vmax.xlane.f32.xlu0 %v2988_v45 }
 0x82e   : > { %3268 = vmatpush.bf16.xpose.msrb.mxu0 %v3254_v36  ;;  %v7650_v36 = vpop.f32.mrf.mxu3 }
 0x836   : > { %3269 = vmatpush.bf16.xpose.msrb.mxu0 %v3251_v8  ;;  %v1480_v8 = vpop.xlane.xlu1 %1479  ;;  %v7654_v22 = vpop.f32.mrf.mxu3 }
 0x840   : > { %3091 = vrot.lane.b32.xlu0 %v5690_v6, %s6587_s0 }
 0x841   : > { %v2100_v2 = vpop.xlane.xlu0 %2099 }
 0x842   : > { %6198 = vrcp.f32 %v2100_v2  ;;  %v5649_v2 = vld [vmem:[#allocation3 + $0x74] sm:$0xf] }
 0x848   : > { %v6199_v16 = vpop.eup %6198 }
 0x849   : > { %v2124_v32 = vmul.f32 %v6199_v16, %v7543_v55 }
 0x84b   : > { %v2130_v39 = vpack.c.bf16 %v2124_v32, %v2123_v59  ;;  %v5650_v59 = vor.u32 %v5952_v41, %v5649_v2 }
 0x84d   : > { %5572 = vmatmul.msk.bf16.gmra.mxu0 %vm1163_vm2, %v2130_v39  ;;  %v5645_v39 = vld [vmem:[#allocation3 + $0x64] sm:$0xf] }
 0x854   : > { %v2485_v19 = vpop.permute.xlu0 %2484 }
 0x855   : > { %2509 = vmatpush.bf16.msra.mxu2 %v2485_v19  ;;  %v5951_v19 = vld [vmem:[#allocation3 + $0x68] sm:$0xf0] }
 0x859   : > { %2510 = vmatpush.bf16.msra.mxu2 %v2483_v60 }
 0x85d   : > { %2511 = vmatpush.bf16.msra.mxu2 %v2481_v31  ;;  %5631 = vmatmul.msk.bf16.vlgmr.msra.gmra.mxu0 %vm1365_vm6, %v7294_v27  ;;  %v7662_v31 = vpop.xlane.xlu1 %2429 }
 0x863   : > { %v2975_v10 = vpop.xlane.xlu2 %2974 }
 0x864   : > { %v2997_v9 = vsub.f32 %v7551_v28, %v2975_v10  ;;  %v5646_v10 = vor.u32 %v5951_v19, %v5645_v39  ;;  %v5677_v19 = vld [vmem:[#allocation3 + $0x44] sm:$0xf] }
 0x866   : > { %v3005_v55 = vmul.f32 1.442695, %v2997_v9  ;;  %v5641_v9 = vld [vmem:[#allocation3 + $0x54] sm:$0xf] }
 0x868   : > { %6200 = vpow2.f32 %v3005_v55  ;;  %v5950_v55 = vld [vmem:[#allocation3 + $0x58] sm:$0xf0] }
 0x869   : > { %6202 = vrcp.f32 %v1480_v8  ;;  %v5685_v8 = vld [vmem:[#allocation3 + $0x64] sm:$0xf] }
 0x86b   : > { %v7644_v62 = vpop.xlane.xlu2 %2426 }
 0x86d   : > { %5632 = vmatmul.msk.bf16.gmra.mxu0 %vm1365_vm6, %v7284_v20 }
 0x86e   : > { %v7648_v45 = vpop.eup %6200 }
 0x86f   : > { %v3021_v27 = vsel %vm1163_vm2, %v7648_v45, 0.0  ;;  %v6203_v14 = vpop.eup %6202 }
 0x870   : > { %3022 = vadd.xlane.f32.xlu2 %v3021_v27  ;;  %v1508_v6 = vmul.f32 %v6203_v14, %v7507_v47  ;;  %v7664_v47 = vpop.f32.mrf.mxu3  ;;  %v5642_v27 = vor.u32 %v5950_v55, %v5641_v9 }
 0x873   : > { %v1477_v28 = vpop.xlane.xlu2 %1476 }
 0x874   : > { %6204 = vrcp.f32 %v1477_v28 }
 0x87a   : > { %v6205_v30 = vpop.eup %6204 }
 0x87b   : > { %v1507_v20 = vmul.f32 %v6205_v30, %v7563_v52  ;;  %v2984_v14 = vpop.xlane.xlu2 %2983 }
 0x87c   : > { %v3000_v41 = vsub.f32 %v7572_v25, %v2984_v14 }
 0x87d   : > { %5633 = vmatmul.msk.bf16.gmra.mxu0 %vm1365_vm6, %v7234_v13  ;;  %v1515_v16 = vpack.c.bf16 %v1508_v6, %v1507_v20  ;;  %v5959_v13 = vld [vmem:[#allocation3 + $0x68] sm:$0xf0]  ;;  %v5637_v6 = vld [vmem:[#allocation3 + $0x44] sm:$0xf] }
 0x87e   : > { %v5686_v28 = vor.u32 %v5959_v13, %v5685_v8  ;;  %v5949_v20 = vld [vmem:[#allocation3 + $0x48] sm:$0xf0] }
 0x87f   : > { %v2978_v32 = vpop.xlane.xlu0 %2977  ;;  %5491 = vmatmul.msk.bf16.vlgmr.msrb.gmra.mxu1 %vm1163_vm2, %v1515_v16 }
 0x880   : > { %v2998_v60 = vsub.f32 %v7579_v48, %v2978_v32  ;;  %2819 = vmatpush.bf16.msrb.mxu1 %v5650_v59  ;;  %v5638_v59 = vor.u32 %v5949_v20, %v5637_v6  ;;  %v2987_v32 = vpop.xlane.xlu1 %2986 }
 0x881   : > { %v3001_v55 = vsub.f32 %v7521_v50, %v2987_v32 }
 0x882   : > { %v3007_v52 = vmul.f32 1.442695, %v2998_v60  ;;  %v5957_v60 = vld [vmem:[#allocation3 + $0x48] sm:$0xf0] }
 0x883   : > { %v1486_v13 = vpop.xlane.xlu2 %1485 }
 0x884   : > { %6206 = vpow2.f32 %v3007_v52  ;;  %2820 = vmatpush.bf16.msrb.mxu1 %v5646_v10  ;;  %v7673_v52 = vpop.f32.mrf.mxu3  ;;  %v5678_v10 = vor.u32 %v5957_v60, %v5677_v19  ;;  %v5958_v19 = vld [vmem:[#allocation3 + $0x58] sm:$0xf0] }
 0x887   : > { %v2981_v30 = vpop.xlane.xlu0 %2980 }
 0x888   : > { %v2999_v48 = vsub.f32 %v7592_v3, %v2981_v30  ;;  %2821 = vmatpush.bf16.msrb.mxu1 %v5642_v27  ;;  %3089 = vrot.lane.b32.xlu2 %v5686_v28, %s6587_s0  ;;  %v3011_v3 = vmul.f32 1.442695, %v3000_v41  ;;  %v7685_v27 = vpop.xlane.xlu1 %2438 }
 0x88a   : > { %v7668_v2 = vpop.eup %6206  ;;  %v3009_v16 = vmul.f32 1.442695, %v2999_v48 }
 0x88b   : > { %v3024_v39 = vsel %vm1163_vm2, %v7668_v2, 0.0 }
 0x88c   : > { %6208 = vpow2.f32 %v3009_v16  ;;  %2822 = vmatpush.bf16.msrb.mxu1 %v5638_v59  ;;  %3025 = vadd.xlane.f32.xlu1 %v3024_v39  ;;  %v3607_v28 = vpop.f32.mrf.mxu3  ;;  %v5681_v39 = vld [vmem:[#allocation3 + $0x54] sm:$0xf] }
 0x88d   : > { %5634 = vmatmul.msk.bf16.gmra.mxu0 %vm1365_vm6, %v7216_v29  ;;  %6210 = vpow2.f32 %v3011_v3  ;;  %v3013_v29 = vmul.f32 1.442695, %v3001_v55  ;;  %v5682_v55 = vor.u32 %v5958_v19, %v5681_v39 }
 0x88e   : > { %6212 = vrcp.f32 %v1486_v13 }
 0x88f   : > { %v7677_v9 = vpop.xlane.xlu0 %2432 }
 0x890   : > { %3085 = vrot.lane.b32.xlu2 %v5678_v10, %s6587_s0  ;;  %v2996_v48 = vpop.xlane.xlu1 %2995 }
 0x891   : > { %v3004_v60 = vsub.f32 %v7537_v33, %v2996_v48 }
 0x892   : > { %v7680_v25 = vpop.eup %6208 }
 0x893   : > { %v3027_v8 = vsel %vm1163_vm2, %v7680_v25, 0.0  ;;  %v7687_v30 = vpop.eup %6210 }
 0x894   : > { %3028 = vadd.xlane.f32.xlu0 %v3027_v8  ;;  %v3030_v6 = vsel %vm1163_vm2, %v7687_v30, 0.0  ;;  %v6213_v50 = vpop.eup %6212  ;;  %v7695_v16 = vpop.f32.mrf.mxu3  ;;  %v7704_v8 = vmul.f32 0.25, %v3607_v28 }
 0x895   : > { %v1510_v32 = vmul.f32 %v6213_v50, %v7589_v15  ;;  %v7706_v15 = vpop.xlane.xlu2 %2435 }
 0x896   : > { %9273 = vst [vmem:[#allocation28_spill] sm:$0xff] %v7704_v8  ;;  %v3637_v33 = vsel %vm1163_vm2, %v7704_v8, -inf }
 0x897   : > { %v1483_v14 = vpop.xlane.xlu0 %1482 }
 0x898   : > { %6214 = vrcp.f32 %v1483_v14  ;;  %v7719_v14 = vmul.f32 0.25, %v7650_v36  ;;  %v7731_v36 = vmul.f32 0.25, %v7673_v52  ;;  %v2071_v52 = vsub.f32 %v7443_v4, %v7574_v37 }
 0x899   : > { %6216 = vpow2.f32 %v3013_v29  ;;  %v2070_v29 = vsub.f32 %v7463_v12, %v7637_v5 }
 0x89a   : > { %9277 = vst [vmem:[#allocation32_spill] sm:$0xff] %v7731_v36  ;;  %v3634_v39 = vsel %vm1163_vm2, %v7731_v36, -inf  ;;  %v5975_v36 = vld [vmem:[#allocation3 + $0x68] sm:$0xf0] }
 0x89c   : > { %3031 = vadd.xlane.f32.xlu0 %v3030_v6 }
 0x89d   : > { %5711 = vmatmul.msk.bf16.vlgmr.msrb.gmra.mxu0 %vm1365_vm6, %v7389_v42  ;;  %v3019_v42 = vmul.f32 1.442695, %v3004_v60  ;;  %v2993_v50 = vpop.xlane.xlu2 %2992 }
 0x89e   : > { %v6215_v20 = vpop.eup %6214 }
 0x89f   : > { %v7693_v41 = vpop.eup %6216  ;;  %v1509_v59 = vmul.f32 %v6215_v20, %v7618_v57  ;;  %v3612_v57 = vpop.f32.mrf.mxu3  ;;  %6218 = vpow2.f32 %v3019_v42  ;;  %v2083_v20 = vmul.f32 1.442695, %v2070_v29 }
 0x8a0   : > { %v3033_v10 = vsel %vm1163_vm2, %v7693_v41, 0.0  ;;  %v7754_v29 = vmul.f32 0.25, %v3612_v57 }
 0x8a1   : > { %v1516_v3 = vpack.c.bf16 %v1510_v32, %v1509_v59  ;;  %v3003_v59 = vsub.f32 %v7609_v26, %v2993_v50  ;;  %v3625_v32 = vsel %vm1163_vm2, %v7719_v14, -inf  ;;  %6220 = vpow2.f32 %v2083_v20 }
 0x8a2   : > { %9280 = vst [vmem:[#allocation35_spill] sm:$0xff] %v7754_v29  ;;  %v3643_v37 = vsel %vm1163_vm2, %v7754_v29, -inf }
 0x8a3   : > { %5492 = vmatmul.msk.bf16.gmra.mxu1 %vm1163_vm2, %v1516_v3  ;;  %v3017_v12 = vmul.f32 1.442695, %v3003_v59 }
 0x8a4   : > { %3034 = vadd.xlane.f32.xlu0 %v3033_v10  ;;  %v7750_v10 = vmul.f32 0.25, %v7654_v22 }
 0x8a5   : > { %3087 = vrot.lane.b32.xlu1 %v5682_v55, %s6587_s0  ;;  %v7712_v13 = vpop.eup %6218  ;;  %6222 = vpow2.f32 %v3017_v12  ;;  %v2990_v55 = vpop.xlane.xlu0 %2989  ;;  %s9329_s0 = scalar_lea.vmem %s9198_s11, %s6785_s15 }
 0x8a6   : > { %9274 = vst [vmem:[#allocation29_spill] sm:$0xff] %v7712_v13  ;;  %v3042_v28 = vsel %vm1163_vm2, %v7712_v13, 0.0  ;;  %v3628_v4 = vsel %vm1163_vm2, %v7750_v10, -inf }
 0x8a7   : > { %v3614_v6 = vpop.f32.mrf.mxu3  ;;  %v7735_v26 = vpop.eup %6220 }
 0x8a8   : > { %v7721_v48 = vmul.f32 0.25, %v3614_v6  ;;  %v2104_v60 = vsel %vm1163_vm2, %v7735_v26, 0.0  ;;  %v7764_v6 = vmul.f32 0.25, %v7664_v47  ;;  %v2069_v47 = vsub.f32 %v7441_v40, %v7567_v49 }
 0x8aa   : > { %9275 = vst [vmem:[#allocation30_spill] sm:$0xff] %v7721_v48  ;;  %v3646_v5 = vsel %vm1163_vm2, %v7721_v48, -inf }
 0x8ab   : > { %v7743_v3 = vpop.eup %6222  ;;  %9281 = vst [vmem:[#allocation36_spill] sm:$0xff] %v7764_v6 }
 0x8ac   : > { %3638 = vmax.xlane.f32.xlu0 %v3637_v33  ;;  %v2085_v33 = vmul.f32 1.442695, %v2071_v52 }
 0x8ad   : > { %5712 = vmatmul.msk.bf16.gmra.mxu0 %vm1365_vm6, %v7478_v1  ;;  %v7724_v1 = vpop.f32.mrf.mxu0 }
 0x8ae   : > { %9276 = vst [vmem:[#allocation31_spill] sm:$0xff] %v7724_v1  ;;  %6224 = vpow2.f32 %v2085_v33 }
 0x8b4   : > { %3043 = vadd.xlane.f32.xlu0 %v3042_v28  ;;  %v3002_v28 = vsub.f32 %v7625_v56, %v2990_v55  ;;  %v7768_v50 = vpop.eup %6224  ;;  %v2072_v55 = vsub.f32 %v7457_v53, %v7585_v54 }
 0x8b5   : > { %v7739_v19 = vpop.f32.mrf.mxu0  ;;  %v2107_v56 = vsel %vm1163_vm2, %v7768_v50, 0.0 }
 0x8b6   : > { %9278 = vst [vmem:[#allocation33_spill] sm:$0xff] %v7739_v19  ;;  %v3015_v22 = vmul.f32 1.442695, %v3002_v28  ;;  %v2087_v33 = vmul.f32 1.442695, %v2072_v55 }
 0x8b8   : > { %6226 = vpow2.f32 %v3015_v22 }
 0x8b9   : > { %3626 = vmax.xlane.f32.xlu2 %v3625_v32 }
 0x8bc   : > { %3647 = vmax.xlane.f32.xlu0 %v3646_v5 }
 0x8bd   : > { %5713 = vmatmul.msk.bf16.gmra.mxu0 %vm1365_vm6, %v7413_v11  ;;  %v3039_v11 = vsel %vm1163_vm2, %v7743_v3, 0.0 }
 0x8be   : > { %v7774_v59 = vpop.eup %6226 }
 0x8bf   : > { %v3036_v12 = vsel %vm1163_vm2, %v7774_v59, 0.0 }
 0x8c1   : > { %3635 = vmax.xlane.f32.xlu2 %v3634_v39  ;;  %v2081_v39 = vmul.f32 1.442695, %v2069_v47 }
 0x8c3   : > { %6228 = vpow2.f32 %v2081_v39 }
 0x8c4   : > { %2105 = vadd.xlane.f32.xlu0 %v2104_v60  ;;  %v7785_v60 = vmul.f32 0.25, %v7695_v16  ;;  %6230 = vpow2.f32 %v2087_v33 }
 0x8c6   : > { %9283 = vst [vmem:[#allocation38_spill] sm:$0xff] %v7785_v60  ;;  %v3640_v49 = vsel %vm1163_vm2, %v7785_v60, -inf }
 0x8c9   : > { %3040 = vadd.xlane.f32.xlu2 %v3039_v11 }
 0x8ca   : > { %v7752_v42 = vpop.f32.mrf.mxu0 }
 0x8cb   : > { %9279 = vst [vmem:[#allocation34_spill] sm:$0xff] %v7752_v42 }
 0x8cd   : > { %5714 = vmatmul.msk.bf16.gmra.mxu0 %vm1365_vm6, %v7484_v7  ;;  %v3631_v7 = vsel %vm1163_vm2, %v7764_v6, -inf }
 0x8cf   : > { %3629 = vmax.xlane.f32.xlu1 %v3628_v4  ;;  %v7795_v4 = vpop.eup %6228 }
 0x8d0   : > { %v2101_v53 = vsel %vm1163_vm2, %v7795_v4, 0.0  ;;  %v7803_v22 = vpop.eup %6230 }
 0x8d1   : > { %3644 = vmax.xlane.f32.xlu2 %v3643_v37 }
 0x8d2   : > { %v7766_v57 = vpop.f32.mrf.mxu0 }
 0x8d3   : > { %9282 = vst [vmem:[#allocation37_spill] sm:$0xff] %v7766_v57 }
 0x8d7   : > { %3632 = vmax.xlane.f32.xlu1 %v3631_v7  ;;  %v2110_v7 = vsel %vm1163_vm2, %v7803_v22, 0.0 }
 0x8d9   : > { %2108 = vadd.xlane.f32.xlu2 %v2107_v56 }
 0x8da   : > { %v2659_v20 = vpop.f32.mrf.mxu0 }
 0x8db   : > { %v7776_v32 = vmul.f32 0.25, %v2659_v20 }
 0x8dd   : > { %v2687_v5 = vsel %vm1163_vm2, %v7776_v32, -inf }
 0x8df   : > { %3037 = vadd.xlane.f32.xlu1 %v3036_v12 }
 0x8e1   : > { %2688 = vmax.xlane.f32.xlu2 %v2687_v5 }
 0x8e2   : > { %v2661_v52 = vpop.f32.mrf.mxu0 }
 0x8e3   : > { %v7787_v11 = vmul.f32 0.25, %v2661_v52  ;;  %v7821_v33 = vpop.xlane.xlu2 %3022 }
 0x8e5   : > { %v2690_v40 = vsel %vm1163_vm2, %v7787_v11, -inf }
 0x8e6   : > { %2691 = vmax.xlane.f32.xlu0 %v2690_v40 }
 0x8e7   : > { %3641 = vmax.xlane.f32.xlu1 %v3640_v49  ;;  %v7819_v49 = vpop.permute.xlu0 %3091 }
 0x8ea   : > { %v2664_v28 = vpop.f32.mrf.mxu0 }
 0x8eb   : > { %v7797_v16 = vmul.f32 0.25, %v2664_v28 }
 0x8ed   : > { %v2693_v37 = vsel %vm1163_vm2, %v7797_v16, -inf }
 0x8ee   : > { %2694 = vmax.xlane.f32.xlu2 %v2693_v37  ;;  %v5769_v37 = vld [vmem:[#allocation3 + $0x74] sm:$0xf] }
 0x8ef   : > { %2102 = vadd.xlane.f32.xlu1 %v2101_v53  ;;  %v5976_v53 = vld [vmem:[#allocation3 + $0x78] sm:$0xf0] }
 0x8f2   : > { %v2666_v54 = vpop.f32.mrf.mxu0 }
 0x8f3   : > { %v7807_v56 = vmul.f32 0.25, %v2666_v54 }
 0x8f5   : > { %v2696_v5 = vsel %vm1163_vm2, %v7807_v56, -inf }
 0x8f7   : > { %2111 = vadd.xlane.f32.xlu1 %v2110_v7  ;;  %v5770_v7 = vor.u32 %v5976_v53, %v5769_v37 }
 0x8fa   : > { %v7809_v20 = vpop.f32.mrf.mxu0 }
 0x8fc   : > { %v1564_v47 = vpop.f32.mrf.mxu1 }
 0x8fd   : > { %v1584_v12 = vpack.c.bf16 %v1564_v47, %v1564_v47  ;;  %v7826_v47 = vpop.permute.xlu2 %3089 }
 0x8ff   : > { %1593 = vst.msk [vmem:[#allocation4] sm:$0xf] %vm1592_vm7, %v1584_v12  ;;  %2697 = vmax.xlane.f32.xlu1 %v2696_v5  ;;  %v7839_v34 = vpop.xlane.xlu1 %3025 }
 0x902   : > { %v7814_v39 = vpop.f32.mrf.mxu0 }
 0x904   : > { %v1566_v52 = vpop.f32.mrf.mxu1 }
 0x905   : > { %v1585_v55 = vpack.c.bf16 %v1566_v52, %v1566_v52  ;;  %v7830_v42 = vpop.permute.xlu2 %3085 }
 0x907   : > { %1594 = vst.msk [vmem:[#allocation4 + $0x4] sm:$0xf] %vm1592_vm7, %v1585_v55  ;;  %v7823_v54 = vpop.xlane.xlu0 %3028 }
 0x90a   : > { %v7817_v40 = vpop.f32.mrf.mxu0 }
 0x90f   : > { %v7828_v5 = vpop.xlane.xlu0 %3031 }
 0x912   : > { %v2676_v28 = vpop.f32.mrf.mxu0 }
 0x917   : > { %v7833_v46 = vpop.xlane.xlu0 %3034 }
 0x918   : > { %3743 = vrot.lane.b32.xlu1 %v5770_v7, %s6591_s29 }
 0x91a   : > { %v3271_v12 = vpop.f32.mrf.mxu0 }
 0x920   : > { %v1569_v52 = vpop.f32.mrf.mxu1 }
 0x921   : > { %v1586_v55 = vpack.c.bf16 %v1569_v52, %v1569_v52  ;;  %v7841_v52 = vpop.xlane.xlu0 %3638 }
 0x922   : > { %v3273_v1 = vpop.f32.mrf.mxu0  ;;  %9284 = vst [vmem:[#allocation39_spill] sm:$0xff] %v7841_v52  ;;  %v5765_v52 = vld [vmem:[#allocation3 + $0x64] sm:$0xf] }
 0x923   : > { %1595 = vst.msk [vmem:[#allocation4 + $0x8] sm:$0xf] %vm1592_vm7, %v1586_v55 }
 0x928   : > { %v1571_v35 = vpop.f32.mrf.mxu1 }
 0x929   : > { %v1587_v57 = vpack.c.bf16 %v1571_v35, %v1571_v35  ;;  %v7847_v35 = vpop.permute.xlu1 %3087 }
 0x92a   : > { %v7837_v7 = vpop.f32.mrf.mxu0 }
 0x92b   : > { %1596 = vst.msk [vmem:[#allocation4 + $0xc] sm:$0xf] %vm1592_vm7, %v1587_v57  ;;  %v7849_v57 = vmul.f32 0.25, %v2676_v28 }
 0x92c   : > { %v3627_v37 = vpop.xlane.xlu2 %3626 }
 0x92d   : > { %v3649_v53 = vsub.f32 %v7719_v14, %v3627_v37  ;;  %v7851_v14 = vpop.xlane.xlu0 %3043 }
 0x92f   : > { %v3657_v21 = vmul.f32 1.442695, %v3649_v53 }
 0x931   : > { %6232 = vpow2.f32 %v3657_v21  ;;  %v2708_v21 = vsel %vm1163_vm2, %v7849_v57, -inf }
 0x932   : > { %v3278_v55 = vpop.f32.mrf.mxu0 }
 0x934   : > { %v7853_v37 = vpop.xlane.xlu2 %3635 }
 0x935   : > { %9286 = vst [vmem:[#allocation41_spill] sm:$0xff] %v7853_v37 }
 0x937   : > { %v7843_v19 = vpop.eup %6232 }
 0x938   : > { %9285 = vst [vmem:[#allocation40_spill] sm:$0xff] %v7843_v19  ;;  %v3673_v23 = vsel %vm1163_vm2, %v7843_v19, 0.0 }
 0x939   : > { %3674 = vadd.xlane.f32.xlu2 %v3673_v23  ;;  %v7860_v23 = vpop.xlane.xlu0 %3647 }
 0x93a   : > { %v3281_v53 = vpop.f32.mrf.mxu0  ;;  %9288 = vst [vmem:[#allocation43_spill] sm:$0xff] %v7860_v23 }
 0x93b   : > { %v7858_v29 = vmul.f32 0.25, %v3281_v53 }
 0x93c   : > { %v7866_v8 = vpop.xlane.xlu2 %3040 }
 0x93d   : > { %9287 = vst [vmem:[#allocation42_spill] sm:$0xff] %v7858_v29  ;;  %v3311_v28 = vsel %vm1163_vm2, %v7858_v29, -inf  ;;  %v7882_v29 = vmul.f32 0.25, %v3271_v12 }
 0x942   : > { %2709 = vmax.xlane.f32.xlu1 %v2708_v21  ;;  %v3630_v48 = vpop.xlane.xlu1 %3629 }
 0x943   : > { %v3650_v6 = vsub.f32 %v7750_v10, %v3630_v48  ;;  %v5766_v10 = vor.u32 %v5975_v36, %v5765_v52  ;;  %v7887_v52 = vpop.f32.mrf.mxu0 }
 0x945   : > { %v3659_v19 = vmul.f32 1.442695, %v3650_v6  ;;  %v2106_v6 = vpop.xlane.xlu0 %2105 }
 0x947   : > { %6234 = vpow2.f32 %v3659_v19  ;;  %v7874_v19 = vmul.f32 0.25, %v7809_v20  ;;  %v3299_v20 = vsel %vm1163_vm2, %v7882_v29, -inf }
 0x949   : > { %v2699_v23 = vsel %vm1163_vm2, %v7874_v19, -inf }
 0x94a   : > { %3312 = vmax.xlane.f32.xlu1 %v3311_v28  ;;  %v7864_v60 = vpop.xlane.xlu1 %3632  ;;  %v7878_v28 = vpop.xlane.xlu2 %3644 }
 0x94b   : > { %9289 = vst [vmem:[#allocation44_spill] sm:$0xff] %v7864_v60  ;;  %v7895_v37 = vpop.f32.mrf.mxu0 }
 0x94c   : > { %9291 = vst [vmem:[#allocation46_spill] sm:$0xff] %v7878_v28  ;;  %v7891_v28 = vmul.f32 0.25, %v3273_v1 }
 0x94d   : > { %v7868_v21 = vpop.eup %6234 }
 0x94e   : > { %9290 = vst [vmem:[#allocation45_spill] sm:$0xff] %v7868_v21  ;;  %v3676_v48 = vsel %vm1163_vm2, %v7868_v21, 0.0 }
 0x94f   : > { %3677 = vadd.xlane.f32.xlu0 %v3676_v48  ;;  %9293 = vst [vmem:[#allocation48_spill] sm:$0xff] %v7891_v28 }
 0x951   : > { %3741 = vrot.lane.b32.xlu2 %v5766_v10, %s6591_s29 }
 0x952   : > { %v7876_v53 = vpop.xlane.xlu1 %3037  ;;  %v2109_v21 = vpop.xlane.xlu2 %2108 }
 0x957   : > { %2700 = vmax.xlane.f32.xlu0 %v2699_v23 }
 0x959   : > { %v2692_v60 = vpop.xlane.xlu0 %2691 }
 0x95a   : > { %v2712_v48 = vsub.f32 %v7787_v11, %v2692_v60  ;;  %v7885_v36 = vpop.xlane.xlu1 %3641  ;;  %v3302_v11 = vsel %vm1163_vm2, %v7891_v28, -inf  ;;  %v3288_v28 = vpop.f32.mrf.mxu0 }
 0x95b   : > { %9292 = vst [vmem:[#allocation47_spill] sm:$0xff] %v7885_v36 }
 0x95c   : > { %v2721_v10 = vmul.f32 1.442695, %v2712_v48 }
 0x95e   : > { %6236 = vpow2.f32 %v2721_v10 }
 0x95f   : > { %3300 = vmax.xlane.f32.xlu0 %v3299_v20  ;;  %6238 = vrcp.f32 %v2106_v6  ;;  %v7901_v6 = vmul.f32 0.25, %v3278_v55  ;;  %v2689_v20 = vpop.xlane.xlu2 %2688 }
 0x962   : > { %v2103_v23 = vpop.xlane.xlu1 %2102 }
 0x963   : > { %6240 = vrcp.f32 %v2103_v23 }
 0x964   : > { %v7893_v12 = vpop.eup %6236  ;;  %6242 = vrcp.f32 %v2109_v21 }
 0x965   : > { %9294 = vst [vmem:[#allocation49_spill] sm:$0xff] %v7893_v12  ;;  %v2738_v60 = vsel %vm1163_vm2, %v7893_v12, 0.0  ;;  %v6239_v48 = vpop.eup %6238  ;;  %v2711_v12 = vsub.f32 %v7776_v32, %v2689_v20  ;;  %v7914_v32 = vmul.f32 0.25, %v7814_v39 }
 0x966   : > { %2739 = vadd.xlane.f32.xlu1 %v2738_v60  ;;  %v2126_v1 = vmul.f32 %v6239_v48, %v7735_v26  ;;  %v3308_v60 = vsel %vm1163_vm2, %v7901_v6, -inf  ;;  %v7910_v48 = vmul.f32 0.25, %v3288_v28  ;;  %v7929_v28 = vmul.f32 0.25, %v7817_v40 }
 0x967   : > { %3303 = vmax.xlane.f32.xlu0 %v3302_v11  ;;  %v2719_v21 = vmul.f32 1.442695, %v2711_v12 }
 0x968   : > { %v2705_v12 = vsel %vm1163_vm2, %v7929_v28, -inf }
 0x969   : > { %v6241_v10 = vpop.eup %6240 }
 0x96a   : > { %v2125_v23 = vmul.f32 %v6241_v10, %v7795_v4  ;;  %v2112_v36 = vpop.xlane.xlu1 %2111  ;;  %v6243_v11 = vpop.eup %6242 }
 0x96b   : > { %6244 = vrcp.f32 %v2112_v36  ;;  %v2127_v26 = vmul.f32 %v6243_v11, %v7768_v50 }
 0x96c   : > { %v2131_v13 = vpack.c.bf16 %v2126_v1, %v2125_v23  ;;  %6246 = vpow2.f32 %v2719_v21  ;;  %v3320_v1 = vsel %vm1163_vm2, %v7910_v48, -inf  ;;  %v7942_v23 = vmul.f32 0.25, %v7837_v7 }
 0x96d   : > { %6248 = vrcp.f32 %v7535_v17  ;;  %v7952_v7 = vmul.f32 0.25, %v7887_v52  ;;  %v5729_v52 = vld [vmem:[#allocation3 + $0x74] sm:$0xf] }
 0x96e   : > { %5573 = vmatmul.msk.bf16.vlgmr.msra.gmra.mxu1 %vm1163_vm2, %v2131_v13  ;;  %6250 = vrcp.f32 %v7559_v44 }
 0x96f   : > { %3309 = vmax.xlane.f32.xlu0 %v3308_v60  ;;  %v2695_v60 = vpop.xlane.xlu2 %2694 }
 0x970   : > { %v2713_v21 = vsub.f32 %v7797_v16, %v2695_v60 }
 0x971   : > { %v6245_v55 = vpop.eup %6244 }
 0x972   : > { %v2128_v4 = vmul.f32 %v6245_v55, %v7803_v22  ;;  %v2698_v36 = vpop.xlane.xlu1 %2697  ;;  %v2702_v22 = vsel %vm1163_vm2, %v7914_v32, -inf  ;;  %v7925_v39 = vpop.eup %6246 }
 0x973   : > { %v2714_v13 = vsub.f32 %v7807_v56, %v2698_v36  ;;  %v6249_v56 = vpop.eup %6248  ;;  %v2735_v17 = vsel %vm1163_vm2, %v7925_v39, 0.0  ;;  %v7960_v36 = vmul.f32 0.25, %v7895_v37 }
 0x974   : > { %v2132_v10 = vpack.c.bf16 %v2128_v4, %v2127_v26  ;;  %v2449_v44 = vmul.f32 %v6249_v56, %v7445_v43  ;;  %v2723_v26 = vmul.f32 1.442695, %v2713_v21 }
 0x975   : > { %v2725_v50 = vmul.f32 1.442695, %v2714_v13 }
 0x976   : > { %5574 = vmatmul.msk.bf16.vlgmr.msrb.gmra.mxu2 %vm1163_vm2, %v2132_v10  ;;  %v5968_v10 = vld [vmem:[#allocation3 + $0x78] sm:$0xf0] }
 0x977   : > { %3113 = vmatpush.bf16.msrb.mxu2 %v7819_v49  ;;  %3321 = vmax.xlane.f32.xlu0 %v3320_v1  ;;  %6252 = vpow2.f32 %v2725_v50  ;;  %v6251_v49 = vpop.eup %6250  ;;  %v5730_v16 = vor.u32 %v5968_v10, %v5729_v52 }
 0x978   : > { %v2448_v20 = vmul.f32 %v6251_v49, %v7437_v24  ;;  %6254 = vrcp.f32 %v7644_v62  ;;  %v3305_v24 = vsel %vm1163_vm2, %v7942_v23, -inf  ;;  %v3314_v62 = vsel %vm1163_vm2, %v7952_v7, -inf }
 0x979   : > { %6256 = vrcp.f32 %v7642_v61 }
 0x97a   : > { %2703 = vmax.xlane.f32.xlu2 %v2702_v22  ;;  %v2456_v40 = vpack.c.bf16 %v2449_v44, %v2448_v20  ;;  %6258 = vrcp.f32 %v7677_v9  ;;  %v5974_v20 = vld [vmem:[#allocation3 + $0x58] sm:$0xf0] }
 0x97b   : > { %3114 = vmatpush.bf16.msrb.mxu2 %v7826_v47  ;;  %6260 = vpow2.f32 %v2723_v26 }
 0x97c   : > { %6262 = vrcp.f32 %v7662_v31 }
 0x97d   : > { %v7938_v47 = vpop.eup %6252  ;;  %6264 = vrcp.f32 %v7706_v15 }
 0x97e   : > { %6266 = vrcp.f32 %v7685_v27 }
 0x97f   : > { %3115 = vmatpush.bf16.msrb.mxu2 %v7847_v35  ;;  %2736 = vadd.xlane.f32.xlu0 %v2735_v17  ;;  %v2744_v35 = vsel %vm1163_vm2, %v7938_v47, 0.0  ;;  %6268 = vrcp.f32 %v7839_v34  ;;  %v5757_v34 = vld [vmem:[#allocation3 + $0x44] sm:$0xf] }
 0x980   : > { %6270 = vrcp.f32 %v7821_v33 }
 0x981   : > { %6272 = vrcp.f32 %v7828_v5 }
 0x982   : > { %2706 = vmax.xlane.f32.xlu2 %v2705_v12  ;;  %6274 = vrcp.f32 %v7823_v54 }
 0x983   : > { %3116 = vmatpush.bf16.msrb.mxu2 %v7830_v42  ;;  %v6255_v42 = vpop.eup %6254 }
 0x984   : > { %v6257_v11 = vpop.eup %6256  ;;  %v2451_v55 = vmul.f32 %v6255_v42, %v7557_v63  ;;  %v3317_v63 = vsel %vm1163_vm2, %v7960_v36, -inf }
 0x985   : > { %v2450_v61 = vmul.f32 %v6257_v11, %v7498_v38  ;;  %v6259_v38 = vpop.eup %6258  ;;  %v5973_v11 = vld [vmem:[#allocation3 + $0x48] sm:$0xf0] }
 0x986   : > { %5611 = vmatmul.msk.bf16.vlgmr.msra.gmra.mxu2 %vm1163_vm2, %v2456_v40  ;;  %v7968_v13 = vpop.eup %6260  ;;  %v2453_v1 = vmul.f32 %v6259_v38, %v7602_v18  ;;  %v5725_v40 = vld [vmem:[#allocation3 + $0x64] sm:$0xf]  ;;  %v5758_v33 = vor.u32 %v5973_v11, %v5757_v34  ;;  %v9298_v34 = vld [vmem:[#allocation49_spill] sm:$0xff] }
 0x987   : > { %2745 = vadd.xlane.f32.xlu0 %v2744_v35  ;;  %v2457_v4 = vpack.c.bf16 %v2451_v55, %v2450_v61  ;;  %v6263_v37 = vpop.eup %6262  ;;  %v2741_v50 = vsel %vm1163_vm2, %v7968_v13, 0.0  ;;  %v5967_v35 = vld [vmem:[#allocation3 + $0x68] sm:$0xf0] }
 0x988   : > { %v2452_v9 = vmul.f32 %v6263_v37, %v7514_v51  ;;  %v6265_v56 = vpop.eup %6264  ;;  %v5761_v51 = vld [vmem:[#allocation3 + $0x54] sm:$0xf] }
 0x989   : > { %v6267_v17 = vpop.eup %6266  ;;  %v2454_v49 = vmul.f32 %v6265_v56, %v7600_v0  ;;  %v5762_v15 = vor.u32 %v5974_v20, %v5761_v51  ;;  %v9295_v20 = vld [vmem:[#allocation29_spill] sm:$0xff] }
 0x98a   : > { %3306 = vmax.xlane.f32.xlu2 %v3305_v24  ;;  %v3744_v43 = vpop.permute.xlu1 %3743  ;;  %v2458_v31 = vpack.c.bf16 %v2453_v1, %v2452_v9  ;;  %v2455_v18 = vmul.f32 %v6267_v17, %v7531_v58  ;;  %v6269_v27 = vpop.eup %6268  ;;  %v5726_v24 = vor.u32 %v5967_v35, %v5725_v40 }
 0x98b   : > { %3765 = vmatpush.bf16.msra.mxu2 %v3744_v43  ;;  %v6271_v0 = vpop.eup %6270  ;;  %v3054_v58 = vmul.f32 %v6269_v27, %v7668_v2 }
 0x98c   : > { %v2459_v12 = vpack.c.bf16 %v2455_v18, %v2454_v49  ;;  %v3053_v43 = vmul.f32 %v6271_v0, %v7648_v45  ;;  %v6273_v21 = vpop.eup %6272 }
 0x98d   : > { %v6275_v26 = vpop.eup %6274 }
 0x98e   : > { %v3061_v60 = vpack.c.bf16 %v3054_v58, %v3053_v43  ;;  %v3055_v5 = vmul.f32 %v6275_v26, %v7680_v25  ;;  %v9297_v58 = vld [vmem:[#allocation32_spill] sm:$0xff] }
 0x98f   : > { %v9299_v26 = vld [vmem:[#allocation48_spill] sm:$0xff] }
 0x992   : > { %3315 = vmax.xlane.f32.xlu2 %v3314_v62 }
 0x996   : > { %5612 = vmatmul.msk.bf16.gmra.mxu2 %vm1163_vm2, %v2457_v4  ;;  %v3056_v4 = vmul.f32 %v6273_v21, %v7687_v30 }
 0x99a   : > { %3318 = vmax.xlane.f32.xlu2 %v3317_v63  ;;  %v3062_v63 = vpack.c.bf16 %v3056_v4, %v3055_v5 }
 0x99b   : > { %3417 = vrot.lane.b32.xlu0 %v5730_v16, %s6589_s25 }
 0x9a2   : > { %2742 = vadd.xlane.f32.xlu2 %v2741_v50 }
 0x9a6   : > { %5613 = vmatmul.msk.bf16.gmra.mxu2 %vm1163_vm2, %v2458_v31 }
 0x9ac   : > { %v7977_v22 = vpop.xlane.xlu2 %3674 }
 0x9b4   : > { %v3742_v44 = vpop.permute.xlu2 %3741 }
 0x9b5   : > { %3766 = vmatpush.bf16.msra.mxu2 %v3742_v44  ;;  %v2710_v55 = vpop.xlane.xlu1 %2709 }
 0x9b6   : > { %5614 = vmatmul.msk.bf16.gmra.mxu2 %vm1163_vm2, %v2459_v12  ;;  %v2718_v62 = vsub.f32 %v7849_v57, %v2710_v55  ;;  %v5966_v55 = vld [vmem:[#allocation3 + $0x58] sm:$0xf0] }
 0x9b8   : > { %v2733_v52 = vmul.f32 1.442695, %v2718_v62 }
 0x9ba   : > { %3739 = vrot.lane.b32.xlu2 %v5762_v15, %s6591_s29 }
 0x9bd   : > { %v8016_v31 = vpop.xlane.xlu1 %3312 }
 0x9c2   : > { %3415 = vrot.lane.b32.xlu2 %v5726_v24, %s6589_s25  ;;  %v7988_v42 = vpop.xlane.xlu0 %3677 }
 0x9c6   : > { %5691 = vmatmul.msk.bf16.vlgmr.msrb.gmra.mxu2 %vm1163_vm2, %v3061_v60 }
 0x9ca   : > { %3737 = vrot.lane.b32.xlu2 %v5758_v33, %s6591_s29  ;;  %v2701_v2 = vpop.xlane.xlu0 %2700 }
 0x9cb   : > { %v2715_v45 = vsub.f32 %v7874_v19, %v2701_v2 }
 0x9cd   : > { %v2727_v61 = vmul.f32 1.442695, %v2715_v45 }
 0x9cf   : > { %6276 = vpow2.f32 %v2727_v61 }
 0x9d0   : > { %6278 = vpow2.f32 %v2733_v52 }
 0x9d1   : > { %6280 = vrcp.f32 %v7876_v53 }
 0x9d2   : > { %v3301_v10 = vpop.xlane.xlu0 %3300  ;;  %6282 = vrcp.f32 %v7833_v46 }
 0x9d3   : > { %v3323_v16 = vsub.f32 %v7882_v29, %v3301_v10 }
 0x9d5   : > { %v7998_v54 = vpop.eup %6276  ;;  %v3331_v30 = vmul.f32 1.442695, %v3323_v16 }
 0x9d6   : > { %5692 = vmatmul.msk.bf16.gmra.mxu2 %vm1163_vm2, %v3062_v63  ;;  %v2747_v57 = vsel %vm1163_vm2, %v7998_v54, 0.0  ;;  %v8006_v25 = vpop.eup %6278 }
 0x9d7   : > { %2748 = vadd.xlane.f32.xlu1 %v2747_v57  ;;  %v6281_v38 = vpop.eup %6280  ;;  %6284 = vpow2.f32 %v3331_v30  ;;  %v2756_v37 = vsel %vm1163_vm2, %v8006_v25, 0.0 }
 0x9d8   : > { %v6283_v29 = vpop.eup %6282  ;;  %v3058_v1 = vmul.f32 %v6281_v38, %v7774_v59  ;;  %6286 = vrcp.f32 %v7866_v8 }
 0x9d9   : > { %v3057_v50 = vmul.f32 %v6283_v29, %v7693_v41  ;;  %6288 = vrcp.f32 %v7851_v14  ;;  %v2740_v49 = vpop.xlane.xlu1 %2739 }
 0x9da   : > { %v3304_v19 = vpop.xlane.xlu0 %3303  ;;  %6290 = vrcp.f32 %v2740_v49 }
 0x9db   : > { %v3063_v46 = vpack.c.bf16 %v3058_v1, %v3057_v50  ;;  %v3324_v4 = vsub.f32 %v9299_v26, %v3304_v19  ;;  %v5717_v1 = vld [vmem:[#allocation3 + $0x44] sm:$0xf]  ;;  %v5965_v50 = vld [vmem:[#allocation3 + $0x48] sm:$0xf0] }
 0x9dc   : > { %v9308_v26 = vld [vmem:[#allocation36_spill] sm:$0xff] }
 0x9dd   : > { %v8014_v53 = vpop.eup %6284  ;;  %v3333_v5 = vmul.f32 1.442695, %v3324_v4 }
 0x9de   : > { %v3347_v56 = vsel %vm1163_vm2, %v8014_v53, 0.0  ;;  %v6287_v41 = vpop.eup %6286 }
 0x9df   : > { %2757 = vadd.xlane.f32.xlu1 %v2756_v37  ;;  %v6289_v44 = vpop.eup %6288  ;;  %v3059_v12 = vmul.f32 %v6287_v41, %v7743_v3  ;;  %v9301_v41 = vld [vmem:[#allocation28_spill] sm:$0xff] }
 0x9e0   : > { %v3060_v15 = vmul.f32 %v6289_v44, %v9295_v20  ;;  %v6291_v35 = vpop.eup %6290  ;;  %v9302_v20 = vld [vmem:[#allocation47_spill] sm:$0xff] }
 0x9e1   : > { %v2768_v11 = vmul.f32 %v6291_v35, %v9298_v34 }
 0x9e2   : > { %v8012_v9 = vpop.xlane.xlu0 %3309  ;;  %v3064_v8 = vpack.c.bf16 %v3060_v15, %v3059_v12  ;;  %v9303_v15 = vld [vmem:[#allocation38_spill] sm:$0xff] }
 0x9e6   : > { %5693 = vmatmul.msk.bf16.gmra.mxu2 %vm1163_vm2, %v3063_v46 }
 0x9e7   : > { %3348 = vadd.xlane.f32.xlu1 %v3347_v56  ;;  %v9300_v56 = vld [vmem:[#allocation39_spill] sm:$0xff] }
 0x9ea   : > { %v8023_v59 = vpop.xlane.xlu0 %3321 }
 0x9ed   : > { %v2704_v17 = vpop.xlane.xlu2 %2703 }
 0x9ee   : > { %v2716_v18 = vsub.f32 %v7914_v32, %v2704_v17  ;;  %v9296_v32 = vld [vmem:[#allocation41_spill] sm:$0xff]  ;;  %v3653_v17 = vsub.f32 %v9301_v41, %v9300_v56 }
 0x9ef   : > { %v3652_v24 = vsub.f32 %v9297_v58, %v9296_v32 }
 0x9f0   : > { %v2729_v51 = vmul.f32 1.442695, %v2716_v18  ;;  %v3665_v18 = vmul.f32 1.442695, %v3653_v17 }
 0x9f1   : > { %v3663_v2 = vmul.f32 1.442695, %v3652_v24 }
 0x9f2   : > { %6292 = vpow2.f32 %v2729_v51  ;;  %v2737_v27 = vpop.xlane.xlu0 %2736 }
 0x9f3   : > { %6294 = vrcp.f32 %v2737_v27  ;;  %v3654_v27 = vsub.f32 %v9303_v15, %v9302_v20 }
 0x9f5   : > { %v2707_v40 = vpop.xlane.xlu2 %2706  ;;  %v3667_v35 = vmul.f32 1.442695, %v3654_v27 }
 0x9f6   : > { %v2717_v14 = vsub.f32 %v7929_v28, %v2707_v40  ;;  %5694 = vmatmul.msk.bf16.gmra.mxu2 %vm1163_vm2, %v3064_v8  ;;  %v5721_v28 = vld [vmem:[#allocation3 + $0x54] sm:$0xf]  ;;  %v3326_v8 = vsub.f32 %v7901_v6, %v8012_v9 }
 0x9f7   : > { %v5722_v62 = vor.u32 %v5966_v55, %v5721_v28  ;;  %v9304_v6 = vld [vmem:[#allocation42_spill] sm:$0xff] }
 0x9f8   : > { %v8030_v0 = vpop.eup %6292  ;;  %v2731_v3 = vmul.f32 1.442695, %v2717_v14  ;;  %v3337_v58 = vmul.f32 1.442695, %v3326_v8  ;;  %v3327_v9 = vsub.f32 %v9304_v6, %v8016_v31 }
 0x9f9   : > { %v6295_v43 = vpop.eup %6294  ;;  %v2750_v60 = vsel %vm1163_vm2, %v8030_v0, 0.0  ;;  %v8045_v52 = vpop.f32.mrf.mxu2 }
 0x9fa   : > { %v2767_v33 = vmul.f32 %v6295_v43, %v7925_v39  ;;  %6296 = vpow2.f32 %v2731_v3  ;;  %2751 = vadd.xlane.f32.xlu2 %v2750_v60  ;;  %v2746_v10 = vpop.xlane.xlu0 %2745 }
 0x9fb   : > { %6298 = vpow2.f32 %v3663_v2  ;;  %v9305_v2 = vld [vmem:[#allocation46_spill] sm:$0xff] }
 0x9fc   : > { %v2775_v45 = vpack.c.bf16 %v2768_v11, %v2767_v33  ;;  %6300 = vpow2.f32 %v3333_v5 }
 0x9fd   : > { %v3307_v21 = vpop.xlane.xlu2 %3306 }
 0x9fe   : > { %5651 = vmatmul.msk.bf16.vlgmr.msrb.gmra.mxu1 %vm1163_vm2, %v2775_v45  ;;  %v3325_v57 = vsub.f32 %v7942_v23, %v3307_v21  ;;  %v5718_v23 = vor.u32 %v5965_v50, %v5717_v1  ;;  %v9306_v45 = vld [vmem:[#allocation35_spill] sm:$0xff] }
 0x9ff   : > { %v3655_v21 = vsub.f32 %v9306_v45, %v9305_v2 }
 0xa00   : > { %v8039_v61 = vpop.eup %6296  ;;  %3413 = vrot.lane.b32.xlu1 %v5722_v62, %s6589_s25  ;;  %v3335_v19 = vmul.f32 1.442695, %v3325_v57  ;;  %v9307_v62 = vld [vmem:[#allocation44_spill] sm:$0xff] }
 0xa01   : > { %v2753_v39 = vsel %vm1163_vm2, %v8039_v61, 0.0  ;;  %v8049_v16 = vpop.eup %6298  ;;  %v8054_v38 = vpop.f32.mrf.mxu2  ;;  %v3651_v4 = vsub.f32 %v9308_v26, %v9307_v62  ;;  %v9316_v62 = vld [vmem:[#allocation21_spill] sm:$0xff] }
 0xa02   : > { %2754 = vadd.xlane.f32.xlu0 %v2753_v39  ;;  %v3682_v30 = vsel %vm1163_vm2, %v8049_v16, 0.0  ;;  %v8058_v46 = vpop.eup %6300  ;;  %6302 = vpow2.f32 %v3335_v19  ;;  %v1880_v26 = vpack.c.bf16 %v9316_v62, %v9316_v62 }
 0xa03   : > { %v3350_v49 = vsel %vm1163_vm2, %v8058_v46, 0.0  ;;  %6304 = vrcp.f32 %v2746_v10  ;;  %v9309_v10 = vld [vmem:[#allocation45_spill] sm:$0xff]  ;;  %v3661_v19 = vmul.f32 1.442695, %v3651_v4 }
 0xa05   : > { %v8047_v63 = vpop.xlane.xlu2 %3315 }
 0xa08   : > { %v8065_v12 = vpop.eup %6302 }
 0xa09   : > { %v8067_v51 = vpop.f32.mrf.mxu2  ;;  %v3353_v40 = vsel %vm1163_vm2, %v8065_v12, 0.0  ;;  %v6305_v14 = vpop.eup %6304 }
 0xa0a   : > { %3683 = vadd.xlane.f32.xlu0 %v3682_v30  ;;  %v2770_v24 = vmul.f32 %v6305_v14, %v7938_v47  ;;  %v3339_v47 = vmul.f32 1.442695, %v3327_v9  ;;  %v3669_v30 = vmul.f32 1.442695, %v3655_v21 }
 0xa0d   : > { %v8056_v37 = vpop.xlane.xlu2 %3318  ;;  %v3418_v29 = vpop.permute.xlu0 %3417 }
 0xa0e   : > { %3439 = vmatpush.bf16.msra.mxu1 %v3418_v29  ;;  %v9310_v29 = vld [vmem:[#allocation40_spill] sm:$0xff]  ;;  %v3329_v17 = vsub.f32 %v7960_v36, %v8056_v37  ;;  %v9311_v36 = vld [vmem:[#allocation43_spill] sm:$0xff]  ;;  %v9312_v37 = vld [vmem:[#allocation30_spill] sm:$0xff] }
 0xa0f   : > { %v3656_v8 = vsub.f32 %v9312_v37, %v9311_v36 }
 0xa11   : > { %v8081_v11 = vpop.f32.mrf.mxu2 }
 0xa12   : > { %3411 = vrot.lane.b32.xlu2 %v5718_v23, %s6589_s25  ;;  %3351 = vadd.xlane.f32.xlu0 %v3350_v49  ;;  %v3328_v23 = vsub.f32 %v7952_v7, %v8047_v63 }
 0xa14   : > { %v3341_v20 = vmul.f32 1.442695, %v3328_v23  ;;  %v9320_v23 = vld [vmem:[#allocation31_spill] sm:$0xff] }
 0xa15   : > { %v2743_v44 = vpop.xlane.xlu2 %2742 }
 0xa16   : > { %6306 = vrcp.f32 %v2743_v44 }
 0xa17   : > { %6308 = vpow2.f32 %v3665_v18  ;;  %v3343_v18 = vmul.f32 1.442695, %v3329_v17 }
 0xa18   : > { %6310 = vpow2.f32 %v3667_v35 }
 0xa19   : > { %6312 = vpow2.f32 %v3337_v58  ;;  %v8100_v5 = vpop.f32.mrf.mxu2  ;;  %v9313_v58 = vld [vmem:[#allocation20_spill] sm:$0xff] }
 0xa1a   : > { %3354 = vadd.xlane.f32.xlu0 %v3353_v40  ;;  %6314 = vrcp.f32 %v7988_v42  ;;  %v3671_v40 = vmul.f32 1.442695, %v3656_v8  ;;  %v9321_v8 = vld [vmem:[#allocation26_spill] sm:$0xff] }
 0xa1b   : > { %6316 = vrcp.f32 %v7977_v22 }
 0xa1c   : > { %v6307_v32 = vpop.eup %6306  ;;  %6318 = vpow2.f32 %v3339_v47  ;;  %v9314_v47 = vld [vmem:[#allocation33_spill] sm:$0xff] }
 0xa1d   : > { %v2769_v3 = vmul.f32 %v6307_v32, %v7968_v13  ;;  %v3740_v43 = vpop.permute.xlu2 %3739  ;;  %v8077_v60 = vpop.eup %6308  ;;  %6320 = vpow2.f32 %v3669_v30 }
 0xa1e   : > { %3767 = vmatpush.bf16.msra.mxu2 %v3740_v43  ;;  %v3685_v33 = vsel %vm1163_vm2, %v8077_v60, 0.0  ;;  %v8088_v13 = vpop.eup %6310  ;;  %6322 = vpow2.f32 %v3661_v19  ;;  %v9318_v19 = vld [vmem:[#allocation24_spill] sm:$0xff] }
 0xa1f   : > { %v2776_v34 = vpack.c.bf16 %v2770_v24, %v2769_v3  ;;  %v8090_v55 = vpop.eup %6312  ;;  %v3688_v42 = vsel %vm1163_vm2, %v8088_v13, 0.0  ;;  %6324 = vpow2.f32 %v3343_v18  ;;  %v1879_v24 = vpack.c.bf16 %v9313_v58, %v9313_v58 }
 0xa20   : > { %v6315_v31 = vpop.eup %6314  ;;  %v3356_v22 = vsel %vm1163_vm2, %v8090_v55, 0.0  ;;  %6326 = vpow2.f32 %v3341_v20  ;;  %v3330_v3 = vsub.f32 %v7910_v48, %v8023_v59  ;;  %v2535_v20 = vpack.c.bf16 %v8100_v5, %v8100_v5 }
 0xa21   : > { %5652 = vmatmul.msk.bf16.gmra.mxu1 %vm1163_vm2, %v2776_v34  ;;  %v6317_v39 = vpop.eup %6316  ;;  %v3706_v57 = vmul.f32 %v6315_v31, %v9309_v10  ;;  %v8113_v44 = vpop.f32.mrf.mxu2  ;;  %6328 = vpow2.f32 %v3671_v40  ;;  %v9315_v31 = vld [vmem:[#allocation22_spill] sm:$0xff]  ;;  %v2533_v10 = vpack.c.bf16 %v8067_v51, %v8067_v51  ;;  %v2206_v51 = vpack.c.bf16 %v9320_v23, %v9320_v23 }
 0xa22   : > { %3686 = vadd.xlane.f32.xlu0 %v3685_v33  ;;  %v3705_v1 = vmul.f32 %v6317_v39, %v9310_v29  ;;  %v8104_v56 = vpop.eup %6318  ;;  %v3345_v6 = vmul.f32 1.442695, %v3330_v3  ;;  %v1881_v2 = vpack.c.bf16 %v9315_v31, %v9315_v31  ;;  %v8164_v39 = vpop.f32.mrf.mxu1  ;;  %v1883_v29 = vpack.c.bf16 %v9318_v19, %v9318_v19 }
 0xa23   : > { %v3359_v49 = vsel %vm1163_vm2, %v8104_v56, 0.0  ;;  %v8115_v15 = vpop.eup %6320  ;;  %v2213_v31 = vpack.c.bf16 %v8054_v38, %v8054_v38 }
 0xa24   : > { %v3713_v41 = vpack.c.bf16 %v3706_v57, %v3705_v1  ;;  %v8117_v27 = vpop.eup %6322  ;;  %v3691_v7 = vsel %vm1163_vm2, %v8115_v15, 0.0  ;;  %6330 = vpow2.f32 %v3345_v6  ;;  %v9319_v1 = vld [vmem:[#allocation23_spill] sm:$0xff] }
 0xa25   : > { %v3416_v28 = vpop.permute.xlu2 %3415  ;;  %v3679_v63 = vsel %vm1163_vm2, %v8117_v27, 0.0  ;;  %v8125_v14 = vpop.eup %6324 }
 0xa26   : > { %3440 = vmatpush.bf16.msra.mxu1 %v3416_v28  ;;  %v8129_v32 = vpop.eup %6326  ;;  %v3365_v43 = vsel %vm1163_vm2, %v8125_v14, 0.0  ;;  %v2207_v28 = vpack.c.bf16 %v9314_v47, %v9314_v47 }
 0xa27   : > { %v3362_v34 = vsel %vm1163_vm2, %v8129_v32, 0.0  ;;  %v8140_v9 = vpop.eup %6328 }
 0xa28   : > { %v3694_v48 = vsel %vm1163_vm2, %v8140_v9, 0.0 }
 0xa29   : > { %v8127_v35 = vpop.f32.mrf.mxu2 }
 0xa2a   : > { %3689 = vadd.xlane.f32.xlu0 %v3688_v42  ;;  %3357 = vadd.xlane.f32.xlu1 %v3356_v22  ;;  %v8149_v59 = vpop.eup %6330  ;;  %v9317_v42 = vld [vmem:[#allocation37_spill] sm:$0xff] }
 0xa2b   : > { %v3368_v21 = vsel %vm1163_vm2, %v8149_v59, 0.0  ;;  %v2209_v22 = vpack.c.bf16 %v9317_v42, %v9317_v42 }
 0xa2d   : > { %v3738_v50 = vpop.permute.xlu2 %3737 }
 0xa2e   : > { %3768 = vmatpush.bf16.msra.mxu2 %v3738_v50  ;;  %v1882_v50 = vpack.c.bf16 %v9319_v1, %v9319_v1 }
 0xa31   : > { %5771 = vmatmul.msk.bf16.vlgmr.msra.gmra.mxu2 %vm1163_vm2, %v3713_v41  ;;  %v8142_v33 = vpop.f32.mrf.mxu2  ;;  %v2198_v41 = vpop.f32.mrf.mxu1 }
 0xa32   : > { %3360 = vadd.xlane.f32.xlu0 %v3359_v49  ;;  %v2211_v49 = vpack.c.bf16 %v2198_v41, %v2198_v41 }
 0xa39   : > { %v8153_v45 = vpop.f32.mrf.mxu2 }
 0xa3a   : > { %3692 = vadd.xlane.f32.xlu0 %v3691_v7  ;;  %v1885_v7 = vpack.c.bf16 %v9321_v8, %v9321_v8  ;;  %v2539_v41 = vpack.c.bf16 %v8153_v45, %v8153_v45 }
 0xa3b   : > { %3680 = vadd.xlane.f32.xlu2 %v3679_v63  ;;  %v2534_v63 = vpack.c.bf16 %v8081_v11, %v8081_v11 }
 0xa41   : > { %v8168_v57 = vpop.f32.mrf.mxu2 }
 0xa42   : > { %3366 = vadd.xlane.f32.xlu0 %v3365_v43 }
 0xa43   : > { %3363 = vadd.xlane.f32.xlu2 %v3362_v34  ;;  %1895 = vrot.lane.b32.xlu1 %v1879_v24, %s6590_s18  ;;  %v9322_v24 = vld [vmem:[#allocation25_spill] sm:$0xff] }
 0xa44   : > { %v1884_v3 = vpack.c.bf16 %v9322_v24, %v9322_v24 }
 0xa49   : > { %v3118_v17 = vpop.f32.mrf.mxu2 }
 0xa4a   : > { %v2749_v4 = vpop.xlane.xlu1 %2748 }
 0xa4b   : > { %3695 = vadd.xlane.f32.xlu2 %v3694_v48  ;;  %2224 = vrot.lane.b32.xlu1 %v2207_v28, %s6588_s30  ;;  %6332 = vrcp.f32 %v2749_v4  ;;  %v9323_v28 = vld [vmem:[#allocation34_spill] sm:$0xff]  ;;  %v3138_v4 = vpack.c.bf16 %v3118_v17, %v3118_v17 }
 0xa4c   : > { %v2208_v48 = vpack.c.bf16 %v9323_v28, %v9323_v28 }
 0xa51   : > { %v8184_v37 = vpop.f32.mrf.mxu2  ;;  %v6333_v40 = vpop.eup %6332 }
 0xa52   : > { %v2758_v30 = vpop.xlane.xlu1 %2757  ;;  %v2771_v43 = vmul.f32 %v6333_v40, %v7998_v54 }
 0xa53   : > { %3369 = vadd.xlane.f32.xlu2 %v3368_v21  ;;  %1899 = vrot.lane.b32.xlu1 %v1881_v2, %s6590_s18 }
 0xa56   : > { %1897 = vrot.lane.b32.xlu0 %v1880_v26, %s6590_s18  ;;  %v2536_v26 = vpack.c.bf16 %v8113_v44, %v8113_v44 }
 0xa59   : > { %v8202_v2 = vpop.f32.mrf.mxu2 }
 0xa5a   : > { %v3349_v18 = vpop.xlane.xlu1 %3348 }
 0xa5b   : > { %2228 = vrot.lane.b32.xlu1 %v2209_v22, %s6588_s30 }
 0xa5e   : > { %2549 = vrot.lane.b32.xlu0 %v2533_v10, %s6586_s16  ;;  %v9324_v10 = vld [vmem:[#allocation27_spill] sm:$0xff] }
 0xa61   : > { %v8217_v19 = vpop.f32.mrf.mxu2 }
 0xa63   : > { %1903 = vrot.lane.b32.xlu1 %v1883_v29, %s6590_s18 }
 0xa66   : > { %1901 = vrot.lane.b32.xlu0 %v1882_v50, %s6590_s18 }
 0xa69   : > { %v8228_v17 = vpop.f32.mrf.mxu2 }
 0xa6b   : > { %2222 = vrot.lane.b32.xlu2 %v2206_v51, %s6588_s30  ;;  %2232 = vrot.lane.b32.xlu1 %v2211_v49, %s6588_s30  ;;  %v2538_v51 = vpack.c.bf16 %v8142_v33, %v8142_v33 }
 0xa6d   : > { %v2752_v36 = vpop.xlane.xlu2 %2751 }
 0xa6e   : > { %6334 = vrcp.f32 %v2752_v36  ;;  %2553 = vrot.lane.b32.xlu0 %v2535_v20, %s6586_s16  ;;  %v3139_v20 = vpack.c.bf16 %v8184_v37, %v8184_v37 }
 0xa71   : > { %v8239_v36 = vpop.f32.mrf.mxu2 }
 0xa72   : > { %v3414_v58 = vpop.permute.xlu1 %3413 }
 0xa73   : > { %2551 = vrot.lane.b32.xlu2 %v2534_v63, %s6586_s16  ;;  %1907 = vrot.lane.b32.xlu1 %v1885_v7, %s6590_s18  ;;  %v2212_v7 = vpack.c.bf16 %v8045_v52, %v8045_v52 }
 0xa74   : > { %v6335_v5 = vpop.eup %6334  ;;  %3441 = vmatpush.bf16.msra.mxu1 %v3414_v58 }
 0xa75   : > { %v2772_v34 = vmul.f32 %v6335_v5, %v8030_v0  ;;  %v3412_v6 = vpop.permute.xlu2 %3411  ;;  %v2755_v47 = vpop.xlane.xlu0 %2754  ;;  %v2537_v0 = vpack.c.bf16 %v8127_v35, %v8127_v35 }
 0xa76   : > { %1905 = vrot.lane.b32.xlu0 %v1884_v3, %s6590_s18  ;;  %6336 = vrcp.f32 %v2755_v47 }
 0xa77   : > { %v2777_v11 = vpack.c.bf16 %v2772_v34, %v2771_v43  ;;  %6338 = vrcp.f32 %v2758_v30  ;;  %v1886_v30 = vpack.c.bf16 %v9324_v10, %v9324_v10 }
 0xa78   : > { %3442 = vmatpush.bf16.msra.mxu1 %v3412_v6 }
 0xa79   : > { %5653 = vmatmul.msk.bf16.gmra.mxu1 %vm1163_vm2, %v2777_v11  ;;  %v8248_v63 = vpop.f32.mrf.mxu2  ;;  %v5988_v11 = vld [vmem:[%s6769_s26 + $0x18] sm:$0xff] }
 0xa7a   : > { %3958 = vmatpush.bf16.msra.mxu0 %v5988_v11 }
 0xa7b   : > { %2226 = vrot.lane.b32.xlu2 %v2208_v48, %s6588_s30  ;;  %2236 = vrot.lane.b32.xlu1 %v2213_v31, %s6588_s30  ;;  %v2824_v54 = vpop.f32.mrf.mxu1 }
 0xa7c   : > { %v2844_v21 = vpack.c.bf16 %v2824_v54, %v2824_v54  ;;  %v6337_v38 = vpop.eup %6336 }
 0xa7d   : > { %v3684_v62 = vpop.xlane.xlu0 %3683  ;;  %v6339_v42 = vpop.eup %6338  ;;  %v2773_v22 = vmul.f32 %v6337_v38, %v8039_v61  ;;  %v2210_v61 = vpack.c.bf16 %v8164_v39, %v8164_v39 }
 0xa7e   : > { %2852 = vst.msk [vmem:[#allocation4 + $0x20] sm:$0xf] %vm1592_vm7, %v2844_v21  ;;  %2557 = vrot.lane.b32.xlu0 %v2537_v0, %s6586_s16  ;;  %v2774_v1 = vmul.f32 %v6339_v42, %v8006_v25 }
 0xa80   : > { %v2778_v44 = vpack.c.bf16 %v2774_v1, %v2773_v22  ;;  %v5985_v22 = vld [vmem:[%s6769_s26] sm:$0xff] }
 0xa83   : > { %2555 = vrot.lane.b32.xlu2 %v2536_v26, %s6586_s16  ;;  %3154 = vrot.lane.b32.xlu1 %v3138_v4, %s6590_s18  ;;  %v2826_v35 = vpop.f32.mrf.mxu1  ;;  %v5986_v4 = vld [vmem:[%s6769_s26 + $0x8] sm:$0xff] }
 0xa84   : > { %v2845_v29 = vpack.c.bf16 %v2826_v35, %v2826_v35 }
 0xa85   : > { %v3352_v50 = vpop.xlane.xlu0 %3351 }
 0xa86   : > { %2853 = vst.msk [vmem:[#allocation4 + $0x24] sm:$0xf] %vm1592_vm7, %v2845_v29  ;;  %1909 = vrot.lane.b32.xlu0 %v1886_v30, %s6590_s18  ;;  %6340 = vrcp.f32 %v3352_v50 }
 0xa87   : > { %6342 = vrcp.f32 %v3349_v18 }
 0xa89   : > { %5654 = vmatmul.msk.bf16.gmra.mxu1 %vm1163_vm2, %v2778_v44 }
 0xa8b   : > { %2230 = vrot.lane.b32.xlu2 %v2210_v61, %s6588_s30 }
 0xa8c   : > { %v6341_v23 = vpop.eup %6340 }
 0xa8d   : > { %v3355_v25 = vpop.xlane.xlu0 %3354  ;;  %v6343_v49 = vpop.eup %6342  ;;  %v3380_v39 = vmul.f32 %v6341_v23, %v8058_v46 }
 0xa8e   : > { %2561 = vrot.lane.b32.xlu0 %v2539_v41, %s6586_s16  ;;  %v3379_v45 = vmul.f32 %v6343_v49, %v8014_v53  ;;  %6344 = vrcp.f32 %v3355_v25  ;;  %v2540_v53 = vpack.c.bf16 %v8168_v57, %v8168_v57  ;;  %v8255_v57 = vpop.f32.mrf.mxu2 }
 0xa90   : > { %v3387_v18 = vpack.c.bf16 %v3380_v39, %v3379_v45 }
 0xa93   : > { %2559 = vrot.lane.b32.xlu2 %v2538_v51, %s6586_s16 }
 0xa94   : > { %v6345_v58 = vpop.eup %6344 }
 0xa95   : > { %v3687_v8 = vpop.xlane.xlu0 %3686  ;;  %v3381_v5 = vmul.f32 %v6345_v58, %v8065_v12 }
 0xa96   : > { %3156 = vrot.lane.b32.xlu0 %v3139_v20, %s6590_s18 }
 0xa99   : > { %5731 = vmatmul.msk.bf16.vlgmr.msra.gmra.mxu1 %vm1163_vm2, %v3387_v18 }
 0xa9b   : > { %2234 = vrot.lane.b32.xlu2 %v2212_v7, %s6588_s30 }
 0xa9d   : > { %v3358_v46 = vpop.xlane.xlu1 %3357  ;;  %v3690_v40 = vpop.xlane.xlu0 %3689 }
 0xa9e   : > { %v2829_v33 = vpop.f32.mrf.mxu1  ;;  %6346 = vrcp.f32 %v3358_v46 }
 0xa9f   : > { %v2846_v37 = vpack.c.bf16 %v2829_v33, %v2829_v33  ;;  %6348 = vrcp.f32 %v3684_v62 }
 0xaa1   : > { %2854 = vst.msk [vmem:[#allocation4 + $0x28] sm:$0xf] %vm1592_vm7, %v2846_v37 }
 0xaa3   : > { %2563 = vrot.lane.b32.xlu2 %v2540_v53, %s6586_s16 }
 0xaa4   : > { %v6347_v52 = vpop.eup %6346 }
 0xaa5   : > { %v3382_v24 = vmul.f32 %v6347_v52, %v8090_v55  ;;  %v3361_v6 = vpop.xlane.xlu0 %3360  ;;  %v6349_v28 = vpop.eup %6348  ;;  %v5987_v55 = vld [vmem:[%s6769_s26 + $0x10] sm:$0xff] }
 0xaa6   : > { %v2831_v3 = vpop.f32.mrf.mxu1  ;;  %v3708_v0 = vmul.f32 %v6349_v28, %v8049_v16  ;;  %3959 = vmatpush.bf16.msra.mxu0 %v5987_v55  ;;  %v3141_v16 = vpack.c.bf16 %v8217_v19, %v8217_v19 }
 0xaa7   : > { %v2847_v43 = vpack.c.bf16 %v2831_v3, %v2831_v3  ;;  %v3388_v34 = vpack.c.bf16 %v3382_v24, %v3381_v5 }
 0xaa9   : > { %2855 = vst.msk [vmem:[#allocation4 + $0x2c] sm:$0xf] %vm1592_vm7, %v2847_v43  ;;  %5732 = vmatmul.msk.bf16.gmra.mxu1 %vm1163_vm2, %v3388_v34 }
 0xaaa   : > { %3960 = vmatpush.bf16.msra.mxu0 %v5986_v4 }
 0xaad   : > { %v3693_v21 = vpop.xlane.xlu0 %3692 }
 0xaae   : > { %v3681_v47 = vpop.xlane.xlu2 %3680  ;;  %3961 = vmatpush.bf16.msra.mxu0 %v5985_v22 }
 0xaaf   : > { %6350 = vrcp.f32 %v3681_v47 }
 0xab0   : > { %6352 = vrcp.f32 %v3361_v6 }
 0xab4   : > { %v3770_v12 = vpop.f32.mrf.mxu2 }
 0xab5   : > { %v6351_v48 = vpop.eup %6350  ;;  %v3790_v31 = vpack.c.bf16 %v3770_v12, %v3770_v12  ;;  %v1896_v54 = vpop.permute.xlu1 %1895 }
 0xab6   : > { %v3707_v38 = vmul.f32 %v6351_v48, %v8117_v27  ;;  %1920 = vst.msk [vmem:[#allocation4] sm:$0xf] %vm1919_vm8, %v1896_v54  ;;  %v3364_v62 = vpop.xlane.xlu2 %3363  ;;  %v6353_v42 = vpop.eup %6352 }
 0xab7   : > { %6354 = vrcp.f32 %v3364_v62  ;;  %3806 = vrot.lane.b32.xlu0 %v3790_v31, %s6586_s16  ;;  %v3383_v10 = vmul.f32 %v6353_v42, %v8104_v56  ;;  %v3367_v1 = vpop.xlane.xlu0 %3366 }
 0xab8   : > { %v3714_v26 = vpack.c.bf16 %v3708_v0, %v3707_v38  ;;  %6356 = vrcp.f32 %v3690_v40 }
 0xab9   : > { %6358 = vrcp.f32 %v3687_v8 }
 0xaba   : > { %5772 = vmatmul.msk.bf16.gmra.mxu2 %vm1163_vm2, %v3714_v26  ;;  %6360 = vrcp.f32 %v3367_v1 }
 0xabd   : > { %v6355_v35 = vpop.eup %6354  ;;  %v2225_v27 = vpop.permute.xlu1 %2224 }
 0xabe   : > { %v3384_v30 = vmul.f32 %v6355_v35, %v8129_v32  ;;  %v3696_v29 = vpop.xlane.xlu2 %3695  ;;  %v6357_v44 = vpop.eup %6356 }
 0xabf   : > { %3160 = vrot.lane.b32.xlu0 %v3141_v16, %s6590_s18  ;;  %v6359_v61 = vpop.eup %6358  ;;  %v3710_v41 = vmul.f32 %v6357_v44, %v8088_v13 }
 0xac0   : > { %v3389_v50 = vpack.c.bf16 %v3384_v30, %v3383_v10  ;;  %v3709_v25 = vmul.f32 %v6359_v61, %v8077_v60  ;;  %v6361_v51 = vpop.eup %6360  ;;  %v3772_v10 = vpop.f32.mrf.mxu2 }
 0xac1   : > { %v3385_v60 = vmul.f32 %v6361_v51, %v8125_v14 }
 0xac2   : > { %5733 = vmatmul.msk.bf16.gmra.mxu1 %vm1163_vm2, %v3389_v50  ;;  %v3715_v23 = vpack.c.bf16 %v3710_v41, %v3709_v25  ;;  %v3140_v50 = vpack.c.bf16 %v8202_v2, %v8202_v2 }
 0xac5   : > { %v1900_v19 = vpop.permute.xlu1 %1899 }
 0xac6   : > { %1922 = vst.msk [vmem:[#allocation4 + $0x8] sm:$0xf] %vm1919_vm8, %v1900_v19  ;;  %v3370_v56 = vpop.xlane.xlu2 %3369 }
 0xac7   : > { %6362 = vrcp.f32 %v3370_v56 }
 0xac8   : > { %v1898_v32 = vpop.permute.xlu0 %1897  ;;  %6364 = vrcp.f32 %v3696_v29  ;;  %v3791_v29 = vpack.c.bf16 %v3772_v10, %v3772_v10 }
 0xac9   : > { %1921 = vst.msk [vmem:[#allocation4 + $0x4] sm:$0xf] %vm1919_vm8, %v1898_v32  ;;  %6366 = vrcp.f32 %v3693_v21  ;;  %v3142_v32 = vpack.c.bf16 %v8228_v17, %v8228_v17 }
 0xaca   : > { %5773 = vmatmul.msk.bf16.gmra.mxu2 %vm1163_vm2, %v3715_v23  ;;  %2248 = vst.msk [vmem:[#allocation4 + $0x4] sm:$0xf] %vm2246_vm9, %v2225_v27 }
 0xacd   : > { %v6363_v13 = vpop.eup %6362  ;;  %v2229_v49 = vpop.permute.xlu1 %2228 }
 0xace   : > { %v3386_v39 = vmul.f32 %v6363_v13, %v8149_v59  ;;  %v2223_v20 = vpop.permute.xlu2 %2222  ;;  %v6365_v8 = vpop.eup %6364 }
 0xacf   : > { %2247 = vst.msk [vmem:[#allocation4] sm:$0xf] %vm2246_vm9, %v2223_v20  ;;  %v6367_v7 = vpop.eup %6366  ;;  %v3712_v46 = vmul.f32 %v6365_v8, %v8140_v9 }
 0xad0   : > { %v2550_v45 = vpop.permute.xlu0 %2549  ;;  %v3390_v18 = vpack.c.bf16 %v3386_v39, %v3385_v60  ;;  %v3711_v37 = vmul.f32 %v6367_v7, %v8115_v15  ;;  %v3144_v7 = vpack.c.bf16 %v8248_v63, %v8248_v63 }
 0xad1   : > { %2574 = vst.msk [vmem:[#allocation4] sm:$0xf] %vm2573_vm10, %v2550_v45 }
 0xad2   : > { %5734 = vmatmul.msk.bf16.gmra.mxu1 %vm1163_vm2, %v3390_v18  ;;  %v3716_v53 = vpack.c.bf16 %v3712_v46, %v3711_v37  ;;  %v3145_v46 = vpack.c.bf16 %v8255_v57, %v8255_v57 }
 0xad5   : > { %v1904_v33 = vpop.permute.xlu1 %1903 }
 0xad6   : > { %1924 = vst.msk [vmem:[#allocation4 + $0x10] sm:$0xf] %vm1919_vm8, %v1904_v33  ;;  %v2552_v14 = vpop.permute.xlu2 %2551 }
 0xad7   : > { %2575 = vst.msk [vmem:[#allocation4 + $0x4] sm:$0xf] %vm2573_vm10, %v2552_v14 }
 0xad8   : > { %v1902_v59 = vpop.permute.xlu0 %1901 }
 0xad9   : > { %1923 = vst.msk [vmem:[#allocation4 + $0xc] sm:$0xf] %vm1919_vm8, %v1902_v59 }
 0xada   : > { %2250 = vst.msk [vmem:[#allocation4 + $0xc] sm:$0xf] %vm2246_vm9, %v2229_v49  ;;  %5774 = vmatmul.msk.bf16.gmra.mxu2 %vm1163_vm2, %v3716_v53  ;;  %v3143_v49 = vpack.c.bf16 %v8239_v36, %v8239_v36 }
 0xadd   : > { %v2233_v40 = vpop.permute.xlu1 %2232 }
 0xade   : > { %v2227_v58 = vpop.permute.xlu2 %2226  ;;  %v5977_v52 = vld [vmem:[#allocation4] sm:$0xff] }
 0xadf   : > { %2249 = vst.msk [vmem:[#allocation4 + $0x8] sm:$0xf] %vm2246_vm9, %v2227_v58  ;;  %5823 = vmatmul.msk.bf16.vlgmr.msra.gmra.mxu0 %vm1163_vm2, %v5977_v52 }
 0xae0   : > { %v2554_v9 = vpop.permute.xlu0 %2553 }
 0xae1   : > { %2576 = vst.msk [vmem:[#allocation4 + $0x8] sm:$0xf] %vm2573_vm10, %v2554_v9 }
 0xae5   : > { %v1908_v15 = vpop.permute.xlu1 %1907 }
 0xae6   : > { %1926 = vst.msk [vmem:[#allocation4 + $0x18] sm:$0xf] %vm1919_vm8, %v1908_v15  ;;  %v2556_v5 = vpop.permute.xlu2 %2555 }
 0xae7   : > { %2577 = vst.msk [vmem:[#allocation4 + $0xc] sm:$0xf] %vm2573_vm10, %v2556_v5  ;;  %v8352_v5 = vld [vmem:[%s9325_s1] ss:$0 sm:$0xff] }
 0xae8   : > { %v1906_v24 = vpop.permute.xlu0 %1905 }
 0xae9   : > { %1925 = vst.msk [vmem:[#allocation4 + $0x14] sm:$0xf] %vm1919_vm8, %v1906_v24 }
 0xaea   : > { %2252 = vst.msk [vmem:[#allocation4 + $0x14] sm:$0xf] %vm2246_vm9, %v2233_v40 }
 0xaed   : > { %v2237_v3 = vpop.permute.xlu1 %2236 }
 0xaee   : > { %v2231_v43 = vpop.permute.xlu2 %2230  ;;  %v5978_v34 = vld [vmem:[#allocation4 + $0x8] sm:$0xff] }
 0xaef   : > { %2251 = vst.msk [vmem:[#allocation4 + $0x10] sm:$0xf] %vm2246_vm9, %v2231_v43  ;;  %5824 = vmatmul.msk.bf16.gmra.mxu0 %vm1163_vm2, %v5978_v34  ;;  %v6434_v43 = vld [vmem:[#allocation2] sm:$0xff] }
 0xaf0   : > { %v2558_v6 = vpop.permute.xlu0 %2557 }
 0xaf1   : > { %2578 = vst.msk [vmem:[#allocation4 + $0x10] sm:$0xf] %vm2573_vm10, %v2558_v6 }
 0xaf5   : > { %v3155_v47 = vpop.permute.xlu1 %3154 }
 0xaf6   : > { %3178 = vst.msk [vmem:[#allocation4 + $0x20] sm:$0xf] %vm1919_vm8, %v3155_v47  ;;  %v2560_v11 = vpop.permute.xlu2 %2559  ;;  %v2834_v28 = vpop.f32.mrf.mxu1 }
 0xaf7   : > { %2579 = vst.msk [vmem:[#allocation4 + $0x14] sm:$0xf] %vm2573_vm10, %v2560_v11  ;;  %v2848_v12 = vpack.c.bf16 %v2834_v28, %v2834_v28 }
 0xaf8   : > { %v1910_v55 = vpop.permute.xlu0 %1909 }
 0xaf9   : > { %2856 = vst.msk [vmem:[#allocation4 + $0x30] sm:$0xf] %vm1592_vm7, %v2848_v12  ;;  %v6435_v12 = vld [vmem:[#allocation2 + $0x8] sm:$0xff] }
 0xafa   : > { %1927 = vst.msk [vmem:[#allocation4 + $0x1c] sm:$0xf] %vm1919_vm8, %v1910_v55 }
 0xafb   : > { %2254 = vst.msk [vmem:[#allocation4 + $0x1c] sm:$0xf] %vm2246_vm9, %v2237_v3 }
 0xafe   : > { %v2235_v48 = vpop.permute.xlu2 %2234  ;;  %v2836_v31 = vpop.f32.mrf.mxu1  ;;  %v5979_v54 = vld [vmem:[#allocation4 + $0x10] sm:$0xff] }
 0xaff   : > { %2253 = vst.msk [vmem:[#allocation4 + $0x18] sm:$0xf] %vm2246_vm9, %v2235_v48  ;;  %v2849_v0 = vpack.c.bf16 %v2836_v31, %v2836_v31  ;;  %5825 = vmatmul.msk.bf16.gmra.mxu0 %vm1163_vm2, %v5979_v54  ;;  %v6436_v48 = vld [vmem:[#allocation2 + $0x18] sm:$0xff] }
 0xb00   : > { %v2562_v21 = vpop.permute.xlu0 %2561 }
 0xb01   : > { %2857 = vst.msk [vmem:[#allocation4 + $0x34] sm:$0xf] %vm1592_vm7, %v2849_v0 }
 0xb02   : > { %2580 = vst.msk [vmem:[#allocation4 + $0x18] sm:$0xf] %vm2573_vm10, %v2562_v21 }
 0xb06   : > { %v2564_v38 = vpop.permute.xlu2 %2563  ;;  %v2839_v62 = vpop.f32.mrf.mxu1 }
 0xb07   : > { %2581 = vst.msk [vmem:[#allocation4 + $0x1c] sm:$0xf] %vm2573_vm10, %v2564_v38  ;;  %v2850_v26 = vpack.c.bf16 %v2839_v62, %v2839_v62 }
 0xb08   : > { %v3157_v4 = vpop.permute.xlu0 %3156 }
 0xb09   : > { %2858 = vst.msk [vmem:[#allocation4 + $0x38] sm:$0xf] %vm1592_vm7, %v2850_v26  ;;  %v6437_v26 = vld [vmem:[#allocation2 + $0x10] sm:$0xff] }
 0xb0a   : > { %3179 = vst.msk [vmem:[#allocation4 + $0x24] sm:$0xf] %vm1919_vm8, %v3157_v4 }
 0xb0e   : > { %v2841_v42 = vpop.f32.mrf.mxu1  ;;  %v5980_v22 = vld [vmem:[#allocation4 + $0x18] sm:$0xff] }
 0xb0f   : > { %v2851_v35 = vpack.c.bf16 %v2841_v42, %v2841_v42  ;;  %5826 = vmatmul.msk.bf16.gmra.mxu0 %vm1163_vm2, %v5980_v22  ;;  %v6438_v42 = vld [vmem:[#allocation2 + $0x20] sm:$0xff] }
 0xb11   : > { %2859 = vst.msk [vmem:[#allocation4 + $0x3c] sm:$0xf] %vm1592_vm7, %v2851_v35 }
 0xb16   : > { %v3444_v16 = vpop.f32.mrf.mxu1 }
 0xb17   : > { %v3464_v27 = vpack.c.bf16 %v3444_v16, %v3444_v16 }
 0xb19   : > { %3480 = vrot.lane.b32.xlu2 %v3464_v27, %s6588_s30 }
 0xb1e   : > { %v3446_v30 = vpop.f32.mrf.mxu1 }
 0xb1f   : > { %v3465_v1 = vpack.c.bf16 %v3446_v30, %v3446_v30 }
 0xb21   : > { %3808 = vrot.lane.b32.xlu2 %v3791_v29, %s6586_s16  ;;  %3482 = vrot.lane.b32.xlu1 %v3465_v1, %s6588_s30  ;;  %v6439_v29 = vld [vmem:[#allocation2 + $0x28] sm:$0xff] }
 0xb26   : > { %v3449_v44 = vpop.f32.mrf.mxu1 }
 0xb27   : > { %v3466_v61 = vpack.c.bf16 %v3449_v44, %v3449_v44 }
 0xb29   : > { %v3807_v41 = vpop.permute.xlu0 %3806  ;;  %3158 = vrot.lane.b32.xlu1 %v3140_v50, %s6590_s18  ;;  %3484 = vrot.lane.b32.xlu2 %v3466_v61, %s6588_s30 }
 0xb2e   : > { %v3451_v19 = vpop.f32.mrf.mxu1 }
 0xb2f   : > { %v3467_v25 = vpack.c.bf16 %v3451_v19, %v3451_v19 }
 0xb31   : > { %v3161_v56 = vpop.permute.xlu0 %3160  ;;  %3486 = vrot.lane.b32.xlu1 %v3467_v25, %s6588_s30  ;;  %v6440_v25 = vld [vmem:[#allocation2 + $0x30] sm:$0xff] }
 0xb32   : > { %3181 = vst.msk [vmem:[#allocation4 + $0x2c] sm:$0xf] %vm1919_vm8, %v3161_v56 }
 0xb39   : > { %3162 = vrot.lane.b32.xlu1 %v3142_v32, %s6590_s18 }
 0xb3d   : > { %v3775_v2 = vpop.f32.mrf.mxu2 }
 0xb3e   : > { %v3792_v23 = vpack.c.bf16 %v3775_v2, %v3775_v2 }
 0xb3f   : > { %v3454_v51 = vpop.f32.mrf.mxu1 }
 0xb40   : > { %3810 = vrot.lane.b32.xlu0 %v3792_v23, %s6586_s16  ;;  %v3468_v45 = vpack.c.bf16 %v3454_v51, %v3454_v51 }
 0xb45   : > { %v3777_v13 = vpop.f32.mrf.mxu2 }
 0xb46   : > { %v3793_v60 = vpack.c.bf16 %v3777_v13, %v3777_v13 }
 0xb47   : > { %v3456_v39 = vpop.f32.mrf.mxu1 }
 0xb48   : > { %v3469_v20 = vpack.c.bf16 %v3456_v39, %v3456_v39  ;;  %3164 = vrot.lane.b32.xlu0 %v3143_v49, %s6590_s18  ;;  %3812 = vrot.lane.b32.xlu2 %v3793_v60, %s6586_s16 }
 0xb4a   : > { %3490 = vrot.lane.b32.xlu1 %v3469_v20, %s6588_s30 }
 0xb4d   : > { %v3780_v17 = vpop.f32.mrf.mxu2 }
 0xb4e   : > { %v3794_v18 = vpack.c.bf16 %v3780_v17, %v3780_v17 }
 0xb4f   : > { %v3459_v8 = vpop.f32.mrf.mxu1 }
 0xb50   : > { %3814 = vrot.lane.b32.xlu0 %v3794_v18, %s6586_s16  ;;  %3488 = vrot.lane.b32.xlu2 %v3468_v45, %s6588_s30  ;;  %v3470_v53 = vpack.c.bf16 %v3459_v8, %v3459_v8 }
 0xb52   : > { %3166 = vrot.lane.b32.xlu1 %v3144_v7, %s6590_s18 }
 0xb55   : > { %v3782_v36 = vpop.f32.mrf.mxu2 }
 0xb56   : > { %v3795_v33 = vpack.c.bf16 %v3782_v36, %v3782_v36 }
 0xb57   : > { %v3461_v37 = vpop.f32.mrf.mxu1 }
 0xb58   : > { %v3471_v14 = vpack.c.bf16 %v3461_v37, %v3461_v37  ;;  %3168 = vrot.lane.b32.xlu0 %v3145_v46, %s6590_s18  ;;  %3816 = vrot.lane.b32.xlu2 %v3795_v33, %s6586_s16 }
 0xb5a   : > { %3494 = vrot.lane.b32.xlu1 %v3471_v14, %s6588_s30 }
 0xb5c   : > { %v3963_v59 = vpop.f32.mrf.mxu0 }
 0xb5d   : > { %v3785_v63 = vpop.f32.mrf.mxu2  ;;  %v3964_v3 = vadd.f32 %v8352_v5, %v3963_v59  ;;  %v6592_v59 = vmov 64.0  }
 0xb5e   : > { %v3796_v40 = vpack.c.bf16 %v3785_v63, %v3785_v63  ;;  %6368 = vrcp.f32 %v6592_v59 }
 0xb5f   : > { %v8355_v34 = vadd.f32 %v6434_v43, %v3964_v3 }
 0xb60   : > { %3818 = vrot.lane.b32.xlu0 %v3796_v40, %s6586_s16  ;;  %3492 = vrot.lane.b32.xlu2 %v3470_v53, %s6588_s30 }
 0xb61   : > { %v4021_v28 = vsel %vm1163_vm2, %v8355_v34, 0.0 }
 0xb64   : > { %v3965_v57 = vpop.f32.mrf.mxu0  ;;  %v6369_v53 = vpop.eup %6368 }
 0xb65   : > { %v3787_v58 = vpop.f32.mrf.mxu2  ;;  %v3966_v6 = vadd.f32 %v8352_v5, %v3965_v57  ;;  %v4070_v40 = vmul.f32 64.0, %v6369_v53  ;;  %vm4074_vm11 = vweird.f32 %v6369_v53 }
 0xb66   : > { %v3797_v52 = vpack.c.bf16 %v3787_v58, %v3787_v58 }
 0xb67   : > { %v8361_v55 = vadd.f32 %v6435_v12, %v3966_v6  ;;  %v4071_v58 = vsub.f32 1.0, %v4070_v40 }
 0xb68   : > { %3820 = vrot.lane.b32.xlu2 %v3797_v52, %s6586_s16 }
 0xb69   : > { %v4024_v21 = vsel %vm1163_vm2, %v8361_v55, 0.0  ;;  %v4072_v57 = vmul.f32 %v6369_v53, %v4071_v58 }
 0xb6b   : > { %v4073_v52 = vadd.f32 %v6369_v53, %v4072_v57 }
 0xb6c   : > { %v3968_v9 = vpop.f32.mrf.mxu0 }
 0xb6d   : > { %v3969_v54 = vadd.f32 %v8352_v5, %v3968_v9  ;;  %v8412_v9 = vsel %vm4074_vm11, %v6369_v53, %v4073_v52  ;;  %v6445_v53 = vld [vmem:[#allocation2 + $0x58] sm:$0xff] }
 0xb6f   : > { %v8371_v4 = vadd.f32 %v6437_v26, %v3969_v54 }
 0xb71   : > { %v4027_v16 = vsel %vm1163_vm2, %v8371_v4, 0.0 }
 0xb73   : > { %v3481_v15 = vpop.permute.xlu2 %3480 }
 0xb74   : > { %3504 = vst.msk [vmem:[#allocation4 + $0x20] sm:$0xf] %vm2246_vm9, %v3481_v15  ;;  %v3970_v24 = vpop.f32.mrf.mxu0 }
 0xb75   : > { %3830 = vst.msk [vmem:[#allocation4 + $0x20] sm:$0xf] %vm2573_vm10, %v3807_v41  ;;  %v3971_v11 = vadd.f32 %v8352_v5, %v3970_v24 }
 0xb77   : > { %v8363_v31 = vadd.f32 %v6436_v48, %v3971_v11 }
 0xb79   : > { %v4030_v62 = vsel %vm1163_vm2, %v8363_v31, 0.0 }
 0xb7b   : > { %v3809_v27 = vpop.permute.xlu2 %3808 }
 0xb7c   : > { %v3973_v47 = vpop.f32.mrf.mxu0 }
 0xb7d   : > { %v3974_v0 = vadd.f32 %v8352_v5, %v3973_v47 }
 0xb7f   : > { %v8373_v22 = vadd.f32 %v6438_v42, %v3974_v0 }
 0xb81   : > { %v4033_v10 = vsel %vm1163_vm2, %v8373_v22, 0.0 }
 0xb83   : > { %v3485_v41 = vpop.permute.xlu2 %3484 }
 0xb84   : > { %4022 = vadd.xlane.f32.xlu1 %v4021_v28  ;;  %v3975_v38 = vpop.f32.mrf.mxu0 }
 0xb85   : > { %v3976_v35 = vadd.f32 %v8352_v5, %v3975_v38 }
 0xb87   : > { %v8380_v1 = vadd.f32 %v6439_v29, %v3976_v35 }
 0xb89   : > { %v4036_v61 = vsel %vm1163_vm2, %v8380_v1, 0.0 }
 0xb8a   : > { %4025 = vadd.xlane.f32.xlu0 %v4024_v21 }
 0xb8c   : > { %4031 = vadd.xlane.f32.xlu1 %v4030_v62  ;;  %v3978_v50 = vpop.f32.mrf.mxu0 }
 0xb8d   : > { %v3979_v44 = vadd.f32 %v8352_v5, %v3978_v50 }
 0xb8f   : > { %v8387_v56 = vadd.f32 %v6440_v25, %v3979_v44 }
 0xb91   : > { %4028 = vadd.xlane.f32.xlu2 %v4027_v16  ;;  %v4039_v2 = vsel %vm1163_vm2, %v8387_v56, 0.0 }
 0xb92   : > { %4034 = vadd.xlane.f32.xlu0 %v4033_v10 }
 0xb93   : > { %v3483_v30 = vpop.permute.xlu1 %3482 }
 0xb94   : > { %3505 = vst.msk [vmem:[#allocation4 + $0x24] sm:$0xf] %vm2246_vm9, %v3483_v30  ;;  %v3980_v43 = vpop.f32.mrf.mxu0 }
 0xb95   : > { %3831 = vst.msk [vmem:[#allocation4 + $0x24] sm:$0xf] %vm2573_vm10, %v3809_v27  ;;  %v3981_v11 = vadd.f32 %v8352_v5, %v3980_v43 }
 0xb99   : > { %4037 = vadd.xlane.f32.xlu2 %v4036_v61 }
 0xb9b   : > { %v3159_v19 = vpop.permute.xlu1 %3158 }
 0xb9c   : > { %3180 = vst.msk [vmem:[#allocation4 + $0x28] sm:$0xf] %vm1919_vm8, %v3159_v19  ;;  %v5981_v32 = vld [vmem:[#allocation4 + $0x20] sm:$0xff] }
 0xb9d   : > { %3506 = vst.msk [vmem:[#allocation4 + $0x28] sm:$0xf] %vm2246_vm9, %v3485_v41  ;;  %5827 = vmatmul.msk.bf16.gmra.mxu0 %vm1163_vm2, %v5981_v32 }
 0xba1   : > { %4040 = vadd.xlane.f32.xlu2 %v4039_v2 }
 0xba2   : > { %v3813_v23 = vpop.permute.xlu2 %3812 }
 0xba3   : > { %v3487_v51 = vpop.permute.xlu1 %3486 }
 0xba4   : > { %3507 = vst.msk [vmem:[#allocation4 + $0x2c] sm:$0xf] %vm2246_vm9, %v3487_v51 }
 0xba5   : > { %3833 = vst.msk [vmem:[#allocation4 + $0x2c] sm:$0xf] %vm2573_vm10, %v3813_v23 }
 0xbaa   : > { %v3489_v49 = vpop.permute.xlu2 %3488 }
 0xbab   : > { %v3163_v13 = vpop.permute.xlu1 %3162 }
 0xbac   : > { %3182 = vst.msk [vmem:[#allocation4 + $0x30] sm:$0xf] %vm1919_vm8, %v3163_v13 }
 0xbad   : > { %3508 = vst.msk [vmem:[#allocation4 + $0x30] sm:$0xf] %vm2246_vm9, %v3489_v49 }
 0xbb2   : > { %v3811_v60 = vpop.permute.xlu0 %3810  ;;  %v3817_v39 = vpop.permute.xlu2 %3816 }
 0xbb3   : > { %3832 = vst.msk [vmem:[#allocation4 + $0x28] sm:$0xf] %vm2573_vm10, %v3811_v60 }
 0xbba   : > { %v3165_v20 = vpop.permute.xlu0 %3164  ;;  %v5982_v17 = vld [vmem:[#allocation4 + $0x28] sm:$0xff]  ;;  %v3493_v8 = vpop.permute.xlu2 %3492 }
 0xbbb   : > { %3183 = vst.msk [vmem:[#allocation4 + $0x34] sm:$0xf] %vm1919_vm8, %v3165_v20  ;;  %5828 = vmatmul.msk.bf16.gmra.mxu0 %vm1163_vm2, %v5982_v17  ;;  %v6443_v17 = vld [vmem:[#allocation2 + $0x48] sm:$0xff] }
 0xbbc   : > { %v3491_v45 = vpop.permute.xlu1 %3490 }
 0xbbd   : > { %3509 = vst.msk [vmem:[#allocation4 + $0x34] sm:$0xf] %vm2246_vm9, %v3491_v45 }
 0xbbe   : > { %3835 = vst.msk [vmem:[#allocation4 + $0x34] sm:$0xf] %vm2573_vm10, %v3817_v39 }
 0xbc2   : > { %v3815_v18 = vpop.permute.xlu0 %3814  ;;  %v3821_v37 = vpop.permute.xlu2 %3820 }
 0xbc3   : > { %3834 = vst.msk [vmem:[#allocation4 + $0x30] sm:$0xf] %vm2573_vm10, %v3815_v18 }
 0xbc4   : > { %v3167_v7 = vpop.permute.xlu1 %3166 }
 0xbc5   : > { %3184 = vst.msk [vmem:[#allocation4 + $0x38] sm:$0xf] %vm1919_vm8, %v3167_v7 }
 0xbc6   : > { %3510 = vst.msk [vmem:[#allocation4 + $0x38] sm:$0xf] %vm2246_vm9, %v3493_v8 }
 0xbca   : > { %v3169_v36 = vpop.permute.xlu0 %3168  ;;  %v5983_v46 = vld [vmem:[#allocation4 + $0x30] sm:$0xff] }
 0xbcb   : > { %3185 = vst.msk [vmem:[#allocation4 + $0x3c] sm:$0xf] %vm1919_vm8, %v3169_v36  ;;  %5829 = vmatmul.msk.bf16.gmra.mxu0 %vm1163_vm2, %v5983_v46 }
 0xbcc   : > { %v3495_v33 = vpop.permute.xlu1 %3494 }
 0xbcd   : > { %3511 = vst.msk [vmem:[#allocation4 + $0x3c] sm:$0xf] %vm2246_vm9, %v3495_v33 }
 0xbce   : > { %3837 = vst.msk [vmem:[#allocation4 + $0x3c] sm:$0xf] %vm2573_vm10, %v3821_v37  ;;  %v6444_v37 = vld [vmem:[#allocation2 + $0x50] sm:$0xff] }
 0xbd2   : > { %v3819_v14 = vpop.permute.xlu0 %3818 }
 0xbd3   : > { %3836 = vst.msk [vmem:[#allocation4 + $0x38] sm:$0xf] %vm2573_vm10, %v3819_v14 }
 0xbda   : > { %v5984_v63 = vld [vmem:[#allocation4 + $0x38] sm:$0xff] }
 0xbdb   : > { %5830 = vmatmul.msk.bf16.gmra.mxu0 %vm1163_vm2, %v5984_v63 }
 0xbf7   : > { %v4023_v15 = vpop.xlane.xlu1 %4022 }
 0xbf8   : > { %v4076_v24 = vmul.f32 %v8412_v9, %v4023_v15  ;;  %v6446_v15 = vld [vmem:[#allocation2 + $0x60] sm:$0xff] }
 0xbfa   : > { %v8416_v3 = vsub.f32 %v8355_v34, %v4076_v24  ;;  %v6441_v34 = vld [vmem:[#allocation2 + $0x38] sm:$0xff] }
 0xbfb   : > { %v8427_v21 = vadd.f32 %v6441_v34, %v3981_v11  ;;  %v6447_v11 = vld [vmem:[#allocation2 + $0x68] sm:$0xff]  ;;  %v6448_v34 = vld [vmem:[#allocation2 + $0x70] sm:$0xff] }
 0xbfc   : > { %v4108_v6 = vmul.f32 %v8416_v3, %v8416_v3 }
 0xbfd   : > { %v4026_v47 = vpop.xlane.xlu0 %4025  ;;  %v4042_v10 = vsel %vm1163_vm2, %v8427_v21, 0.0 }
 0xbfe   : > { %v4077_v28 = vmul.f32 %v8412_v9, %v4026_v47  ;;  %v4124_v12 = vsel %vm1163_vm2, %v4108_v6, 0.0 }
 0xbff   : > { %4125 = vadd.xlane.f32.xlu1 %v4124_v12  ;;  %v4032_v48 = vpop.xlane.xlu1 %4031 }
 0xc00   : > { %v8424_v54 = vsub.f32 %v8361_v55, %v4077_v28  ;;  %v4079_v0 = vmul.f32 %v8412_v9, %v4032_v48 }
 0xc02   : > { %v8430_v38 = vsub.f32 %v8363_v31, %v4079_v0  ;;  %v4109_v62 = vmul.f32 %v8424_v54, %v8424_v54 }
 0xc04   : > { %v4029_v26 = vpop.xlane.xlu2 %4028  ;;  %v4127_v42 = vsel %vm1163_vm2, %v4109_v62, 0.0  ;;  %v4111_v35 = vmul.f32 %v8430_v38, %v8430_v38 }
 0xc05   : > { %v4078_v55 = vmul.f32 %v8412_v9, %v4029_v26  ;;  %4128 = vadd.xlane.f32.xlu0 %v4127_v42  ;;  %v4035_v16 = vpop.xlane.xlu0 %4034  ;;  %v5992_v42 = vld [vmem:[%s9326_s27 + $0x18] sm:$0xff] }
 0xc06   : > { %v4080_v27 = vmul.f32 %v8412_v9, %v4035_v16  ;;  %v4133_v31 = vsel %vm1163_vm2, %v4111_v35, 0.0  ;;  %4490 = vmatpush.bf16.msrb.mxu1 %v5992_v42  ;;  %v5991_v35 = vld [vmem:[%s9326_s27 + $0x10] sm:$0xff] }
 0xc07   : > { %v8443_v30 = vsub.f32 %v8371_v4, %v4078_v55  ;;  %4043 = vadd.xlane.f32.xlu1 %v4042_v10  ;;  %4134 = vadd.xlane.f32.xlu2 %v4133_v31  ;;  %v5990_v55 = vld [vmem:[%s9326_s27 + $0x8] sm:$0xff]  ;;  %v5989_v10 = vld [vmem:[%s9326_s27] sm:$0xff] }
 0xc08   : > { %v8446_v29 = vsub.f32 %v8373_v22, %v4080_v27  ;;  %v6442_v22 = vld [vmem:[#allocation2 + $0x40] sm:$0xff] }
 0xc09   : > { %v4110_v50 = vmul.f32 %v8443_v30, %v8443_v30 }
 0xc0a   : > { %v4112_v44 = vmul.f32 %v8446_v29, %v8446_v29  ;;  %4491 = vmatpush.bf16.msrb.mxu1 %v5991_v35 }
 0xc0b   : > { %v4130_v61 = vsel %vm1163_vm2, %v4110_v50, 0.0 }
 0xc0c   : > { %v4136_v41 = vsel %vm1163_vm2, %v4112_v44, 0.0  ;;  %v4038_v19 = vpop.xlane.xlu2 %4037 }
 0xc0d   : > { %4131 = vadd.xlane.f32.xlu0 %v4130_v61  ;;  %v4081_v25 = vmul.f32 %v8412_v9, %v4038_v19 }
 0xc0e   : > { %4492 = vmatpush.bf16.msrb.mxu1 %v5990_v55 }
 0xc0f   : > { %4137 = vadd.xlane.f32.xlu2 %v4136_v41  ;;  %v8459_v23 = vsub.f32 %v8380_v1, %v4081_v25 }
 0xc11   : > { %v4113_v20 = vmul.f32 %v8459_v23, %v8459_v23 }
 0xc12   : > { %4493 = vmatpush.bf16.msrb.mxu1 %v5989_v10 }
 0xc13   : > { %v4139_v8 = vsel %vm1163_vm2, %v4113_v20, 0.0 }
 0xc14   : > { %v4041_v13 = vpop.xlane.xlu2 %4040 }
 0xc15   : > { %v4082_v60 = vmul.f32 %v8412_v9, %v4041_v13 }
 0xc17   : > { %v8470_v18 = vsub.f32 %v8387_v56, %v4082_v60 }
 0xc19   : > { %v4114_v7 = vmul.f32 %v8470_v18, %v8470_v18 }
 0xc1a   : > { %v3983_v4 = vpop.f32.mrf.mxu0 }
 0xc1b   : > { %v3984_v32 = vadd.f32 %v8352_v5, %v3983_v4  ;;  %v4142_v36 = vsel %vm1163_vm2, %v4114_v7, 0.0 }
 0xc1d   : > { %v8456_v2 = vadd.f32 %v6442_v22, %v3984_v32 }
 0xc1f   : > { %v4045_v51 = vsel %vm1163_vm2, %v8456_v2, 0.0 }
 0xc20   : > { %4046 = vadd.xlane.f32.xlu1 %v4045_v51 }
 0xc22   : > { %v3985_v49 = vpop.f32.mrf.mxu0 }
 0xc23   : > { %v3986_v39 = vadd.f32 %v8352_v5, %v3985_v49 }
 0xc25   : > { %v8467_v45 = vadd.f32 %v6443_v17, %v3986_v39 }
 0xc27   : > { %v4048_v1 = vsel %vm1163_vm2, %v8467_v45, 0.0 }
 0xc28   : > { %4049 = vadd.xlane.f32.xlu0 %v4048_v1  ;;  %4140 = vadd.xlane.f32.xlu1 %v4139_v8 }
 0xc30   : > { %4143 = vadd.xlane.f32.xlu1 %v4142_v36 }
 0xc38   : > { %v3988_v46 = vpop.f32.mrf.mxu0 }
 0xc39   : > { %v3989_v33 = vadd.f32 %v8352_v5, %v3988_v46 }
 0xc3b   : > { %v8479_v14 = vadd.f32 %v6444_v37, %v3989_v33 }
 0xc3d   : > { %v4051_v56 = vsel %vm1163_vm2, %v8479_v14, 0.0 }
 0xc3e   : > { %4052 = vadd.xlane.f32.xlu0 %v4051_v56 }
 0xc40   : > { %v3990_v63 = vpop.f32.mrf.mxu0 }
 0xc41   : > { %v3991_v59 = vadd.f32 %v8352_v5, %v3990_v63 }
 0xc43   : > { %v8484_v40 = vadd.f32 %v6445_v53, %v3991_v59 }
 0xc45   : > { %v4054_v58 = vsel %vm1163_vm2, %v8484_v40, 0.0 }
 0xc46   : > { %4055 = vadd.xlane.f32.xlu2 %v4054_v58 }
 0xc48   : > { %v3993_v57 = vpop.f32.mrf.mxu0 }
 0xc49   : > { %v3994_v52 = vadd.f32 %v8352_v5, %v3993_v57 }
 0xc4b   : > { %v8489_v24 = vadd.f32 %v6446_v15, %v3994_v52 }
 0xc4d   : > { %v4057_v43 = vsel %vm1163_vm2, %v8489_v24, 0.0 }
 0xc4e   : > { %4058 = vadd.xlane.f32.xlu2 %v4057_v43  ;;  %v8528_v43 = vld [vmem:[%s9327_s6] ss:$0 sm:$0xff] }
 0xc50   : > { %v3995_v6 = vpop.f32.mrf.mxu0 }
 0xc51   : > { %v3996_v47 = vadd.f32 %v8352_v5, %v3995_v6 }
 0xc53   : > { %v8494_v28 = vadd.f32 %v6447_v11, %v3996_v47 }
 0xc55   : > { %v4060_v12 = vsel %vm1163_vm2, %v8494_v28, 0.0 }
 0xc56   : > { %4061 = vadd.xlane.f32.xlu1 %v4060_v12 }
 0xc58   : > { %v3998_v48 = vpop.f32.mrf.mxu0 }
 0xc59   : > { %v3999_v0 = vadd.f32 %v8352_v5, %v3998_v48 }
 0xc5b   : > { %v8499_v62 = vadd.f32 %v6448_v34, %v3999_v0 }
 0xc5d   : > { %v4063_v26 = vsel %vm1163_vm2, %v8499_v62, 0.0 }
 0xc5e   : > { %4064 = vadd.xlane.f32.xlu1 %v4063_v26  ;;  %v8538_v26 = vld [vmem:[%s9328_s20] ss:$0 sm:$0xff] }
 0xc72   : > { %v4126_v16 = vpop.xlane.xlu1 %4125 }
 0xc73   : > { %v4172_v27 = vmul.f32 %v4126_v16, %v8412_v9 }
 0xc75   : > { %v4188_v31 = vadd.f32 1e-05, %v4172_v27 }
 0xc77   : > { %6370 = vrsqrt.f32 %v4188_v31  ;;  %vm4210_vm13 = vweird.f32 %v4188_v31 }
 0xc78   : > { %v4129_v50 = vpop.xlane.xlu0 %4128 }
 0xc79   : > { %v4173_v44 = vmul.f32 %v4129_v50, %v8412_v9 }
 0xc7a   : > { %v4135_v61 = vpop.xlane.xlu2 %4134  ;;  %v4044_v41 = vpop.xlane.xlu1 %4043 }
 0xc7b   : > { %v4189_v19 = vadd.f32 1e-05, %v4173_v44  ;;  %v4175_v4 = vmul.f32 %v4135_v61, %v8412_v9  ;;  %v4083_v25 = vmul.f32 %v8412_v9, %v4044_v41 }
 0xc7d   : > { %v6371_v32 = vpop.eup %6370  ;;  %6372 = vrsqrt.f32 %v4189_v19  ;;  %v8511_v22 = vadd.f32 1e-05, %v4175_v4  ;;  %v8514_v51 = vsub.f32 %v8427_v21, %v4083_v25  ;;  %vm4220_vm0 = vweird.f32 %v4189_v19 }
 0xc7e   : > { %v4205_v13 = vmul.f32 %v6371_v32, %v4188_v31  ;;  %vm4211_vm12 = vweird.f32 %v6371_v32 }
 0xc7f   : > { %6374 = vrsqrt.f32 %v8511_v22  ;;  %v4115_v49 = vmul.f32 %v8514_v51, %v8514_v51  ;;  %vm4212_vm14 = vmor %vm4210_vm13, %vm4211_vm12  ;;  %vm4240_vm7 = vweird.f32 %v8511_v22 }
 0xc80   : > { %v4206_v60 = vmul.f32 %v6371_v32, %v4205_v13  ;;  %v4132_v39 = vpop.xlane.xlu0 %4131 }
 0xc81   : > { %v4174_v20 = vmul.f32 %v4132_v39, %v8412_v9  ;;  %v4145_v17 = vsel %vm1163_vm2, %v4115_v49, 0.0 }
 0xc82   : > { %v4207_v1 = vmul.f32 0.5, %v4206_v60  ;;  %4146 = vadd.xlane.f32.xlu0 %v4145_v17  ;;  %v4138_v46 = vpop.xlane.xlu2 %4137 }
 0xc83   : > { %v6373_v8 = vpop.eup %6372  ;;  %v4190_v7 = vadd.f32 1e-05, %v4174_v20  ;;  %v4176_v59 = vmul.f32 %v4138_v46, %v8412_v9 }
 0xc84   : > { %v4208_v36 = vsub.f32 1.5, %v4207_v1  ;;  %v4215_v21 = vmul.f32 %v6373_v8, %v4189_v19  ;;  %vm4221_vm15 = vweird.f32 %v6373_v8 }
 0xc85   : > { %v6375_v33 = vpop.eup %6374  ;;  %6376 = vrsqrt.f32 %v4190_v7  ;;  %v8531_v47 = vadd.f32 1e-05, %v4176_v59  ;;  %vm4222_vm1 = vmor %vm4220_vm0, %vm4221_vm15  ;;  %vm4230_vm5 = vweird.f32 %v4190_v7 }
 0xc86   : > { %v4209_v37 = vmul.f32 %v6371_v32, %v4208_v36  ;;  %v4216_v56 = vmul.f32 %v6373_v8, %v4215_v21  ;;  %v4235_v63 = vmul.f32 %v6375_v33, %v8511_v22  ;;  %vm4241_vm4 = vweird.f32 %v6375_v33 }
 0xc87   : > { %6378 = vrsqrt.f32 %v8531_v47  ;;  %vm4242_vm8 = vmor %vm4240_vm7, %vm4241_vm4  ;;  %vm4250_vm10 = vweird.f32 %v8531_v47 }
 0xc88   : > { %v4213_v53 = vsel %vm4212_vm14, %v6371_v32, %v4209_v37  ;;  %v4217_v58 = vmul.f32 0.5, %v4216_v56  ;;  %v4236_v57 = vmul.f32 %v6375_v33, %v4235_v63  ;;  %v4000_v32 = vpop.f32.mrf.mxu0 }
 0xc89   : > { %v4364_v6 = vmul.f32 %v4213_v53, %v8416_v3  ;;  %v4001_v20 = vadd.f32 %v8352_v5, %v4000_v32 }
 0xc8a   : > { %v4218_v52 = vsub.f32 1.5, %v4217_v58  ;;  %v4237_v12 = vmul.f32 0.5, %v4236_v57 }
 0xc8b   : > { %v6377_v15 = vpop.eup %6376  ;;  %v4383_v42 = vmul.f32 %v8528_v43, %v4364_v6 }
 0xc8c   : > { %v4219_v11 = vmul.f32 %v6373_v8, %v4218_v52  ;;  %v4225_v48 = vmul.f32 %v6377_v15, %v4190_v7  ;;  %v4238_v3 = vsub.f32 1.5, %v4237_v12  ;;  %vm4231_vm3 = vweird.f32 %v6377_v15 }
 0xc8d   : > { %v8545_v10 = vadd.f32 %v8538_v26, %v4383_v42  ;;  %vm4232_vm6 = vmor %vm4230_vm5, %vm4231_vm3 }
 0xc8e   : > { %v4223_v0 = vsel %vm4222_vm1, %v6373_v8, %v4219_v11  ;;  %v4226_v34 = vmul.f32 %v6377_v15, %v4225_v48  ;;  %v4239_v50 = vmul.f32 %v6375_v33, %v4238_v3 }
 0xc8f   : > { %v4365_v35 = vmul.f32 %v4223_v0, %v8424_v54  ;;  %v6379_v54 = vpop.eup %6378 }
 0xc90   : > { %v4227_v55 = vmul.f32 0.5, %v4226_v34  ;;  %v4243_v13 = vsel %vm4242_vm8, %v6375_v33, %v4239_v50  ;;  %v4245_v49 = vmul.f32 %v6379_v54, %v8531_v47  ;;  %vm4251_vm9 = vweird.f32 %v6379_v54 }
 0xc91   : > { %v4384_v16 = vmul.f32 %v8528_v43, %v4365_v35  ;;  %v4367_v22 = vmul.f32 %v4243_v13, %v8430_v38  ;;  %vm4252_vm11 = vmor %vm4250_vm10, %vm4251_vm9 }
 0xc92   : > { %v4228_v27 = vsub.f32 1.5, %v4227_v55  ;;  %v4246_v1 = vmul.f32 %v6379_v54, %v4245_v49 }
 0xc93   : > { %v8548_v31 = vadd.f32 %v8538_v26, %v4384_v16  ;;  %v4047_v61 = vpop.xlane.xlu1 %4046  ;;  %v4386_v38 = vmul.f32 %v8528_v43, %v4367_v22 }
 0xc94   : > { %v4229_v44 = vmul.f32 %v6377_v15, %v4228_v27  ;;  %v4084_v19 = vmul.f32 %v8412_v9, %v4047_v61  ;;  %v4247_v37 = vmul.f32 0.5, %v4246_v1 }
 0xc95   : > { %v4418_v41 = vpack.c.bf16 %v8548_v31, %v8545_v10  ;;  %v8583_v58 = vadd.f32 %v8538_v26, %v4386_v38 }
 0xc96   : > { %v4233_v4 = vsel %vm4232_vm6, %v6377_v15, %v4229_v44  ;;  %v8555_v25 = vsub.f32 %v8456_v2, %v4084_v19 }
 0xc97   : > { %5847 = vmatmul.msk.bf16.vlgmr.msrb.gmra.mxu1 %vm1163_vm2, %v4418_v41  ;;  %v4366_v60 = vmul.f32 %v4233_v4, %v8443_v30  ;;  %v6449_v30 = vld [vmem:[#allocation2 + $0x78] sm:$0xff] }
 0xc98   : > { %v4116_v39 = vmul.f32 %v8555_v25, %v8555_v25  ;;  %v8568_v46 = vadd.f32 %v6449_v30, %v4001_v20 }
 0xc99   : > { %v4385_v21 = vmul.f32 %v8528_v43, %v4366_v60 }
 0xc9a   : > { %v4148_v17 = vsel %vm1163_vm2, %v4116_v39, 0.0  ;;  %v4066_v53 = vsel %vm1163_vm2, %v8568_v46, 0.0 }
 0xc9b   : > { %v4050_v2 = vpop.xlane.xlu0 %4049  ;;  %4149 = vadd.xlane.f32.xlu0 %v4148_v17  ;;  %v4141_v8 = vpop.xlane.xlu1 %4140  ;;  %v8577_v63 = vadd.f32 %v8538_v26, %v4385_v21 }
 0xc9c   : > { %v4085_v7 = vmul.f32 %v8412_v9, %v4050_v2  ;;  %v4177_v36 = vmul.f32 %v4141_v8, %v8412_v9 }
 0xc9d   : > { %v4419_v57 = vpack.c.bf16 %v8583_v58, %v8577_v63 }
 0xc9e   : > { %v8571_v33 = vsub.f32 %v8467_v45, %v4085_v7  ;;  %v4193_v5 = vadd.f32 1e-05, %v4177_v36  ;;  %v4248_v45 = vsub.f32 1.5, %v4247_v37  ;;  %v5999_v37 = vld [vmem:[%s6821_s14 + $0x30] sm:$0xff] }
 0xca0   : > { %6380 = vrsqrt.f32 %v4193_v5  ;;  %v4117_v56 = vmul.f32 %v8571_v33, %v8571_v33  ;;  %v4249_v15 = vmul.f32 %v6379_v54, %v4248_v45  ;;  %vm4260_vm13 = vweird.f32 %v4193_v5  ;;  %v5996_v45 = vld [vmem:[%s6821_s14 + $0x18] sm:$0xff] }
 0xca2   : > { %v4151_v59 = vsel %vm1163_vm2, %v4117_v56, 0.0  ;;  %v4253_v12 = vsel %vm4252_vm11, %v6379_v54, %v4249_v15  ;;  %v5998_v56 = vld [vmem:[%s6821_s14 + $0x28] sm:$0xff] }
 0xca3   : > { %4152 = vadd.xlane.f32.xlu2 %v4151_v59  ;;  %4067 = vadd.xlane.f32.xlu0 %v4066_v53  ;;  %v4368_v34 = vmul.f32 %v4253_v12, %v8446_v29  ;;  %v4144_v13 = vpop.xlane.xlu1 %4143 }
 0xca4   : > { %v4178_v30 = vmul.f32 %v4144_v13, %v8412_v9 }
 0xca5   : > { %v4387_v27 = vmul.f32 %v8528_v43, %v4368_v34  ;;  %v5993_v34 = vld [vmem:[%s6821_s14] sm:$0xff] }
 0xca6   : > { %v6381_v52 = vpop.eup %6380  ;;  %v4194_v38 = vadd.f32 1e-05, %v4178_v30 }
 0xca7   : > { %5848 = vmatmul.msk.bf16.gmra.mxu1 %vm1163_vm2, %v4419_v57  ;;  %v4255_v6 = vmul.f32 %v6381_v52, %v4193_v5  ;;  %vm4261_vm12 = vweird.f32 %v6381_v52  ;;  %v8600_v29 = vadd.f32 %v8538_v26, %v4387_v27  ;;  %v6000_v5 = vld [vmem:[%s6821_s14 + $0x38] sm:$0xff] }
 0xca8   : > { %vm4262_vm14 = vmor %vm4260_vm13, %vm4261_vm12  ;;  %4627 = vmatpush.bf16.msrb.mxu3 %v6000_v5  ;;  %6382 = vrsqrt.f32 %v4194_v38  ;;  %vm4270_vm0 = vweird.f32 %v4194_v38 }
 0xca9   : > { %v4256_v11 = vmul.f32 %v6381_v52, %v4255_v6  ;;  %v5995_v6 = vld [vmem:[%s6821_s14 + $0x10] sm:$0xff] }
 0xcab   : > { %v4257_v48 = vmul.f32 0.5, %v4256_v11 }
 0xcac   : > { %4628 = vmatpush.bf16.msrb.mxu3 %v5999_v37 }
 0xcad   : > { %v4258_v0 = vsub.f32 1.5, %v4257_v48  ;;  %v5994_v48 = vld [vmem:[%s6821_s14 + $0x8] sm:$0xff] }
 0xcae   : > { %v6383_v59 = vpop.eup %6382 }
 0xcaf   : > { %v4259_v42 = vmul.f32 %v6381_v52, %v4258_v0  ;;  %v4265_v53 = vmul.f32 %v6383_v59, %v4194_v38  ;;  %vm4271_vm15 = vweird.f32 %v6383_v59 }
 0xcb0   : > { %4629 = vmatpush.bf16.msrb.mxu3 %v5998_v56  ;;  %vm4272_vm1 = vmor %vm4270_vm0, %vm4271_vm15 }
 0xcb1   : > { %v4263_v35 = vsel %vm4262_vm14, %v6381_v52, %v4259_v42  ;;  %v4053_v3 = vpop.xlane.xlu0 %4052  ;;  %v4266_v57 = vmul.f32 %v6383_v59, %v4265_v53 }
 0xcb2   : > { %v4369_v55 = vmul.f32 %v4263_v35, %v8459_v23  ;;  %v4086_v16 = vmul.f32 %v8412_v9, %v4053_v3 }
 0xcb3   : > { %v4267_v12 = vmul.f32 0.5, %v4266_v57 }
 0xcb4   : > { %v8594_v47 = vsub.f32 %v8479_v14, %v4086_v16  ;;  %v4388_v50 = vmul.f32 %v8528_v43, %v4369_v55 }
 0xcb5   : > { %v4268_v0 = vsub.f32 1.5, %v4267_v12 }
 0xcb6   : > { %v4118_v44 = vmul.f32 %v8594_v47, %v8594_v47  ;;  %v8603_v61 = vadd.f32 %v8538_v26, %v4388_v50 }
 0xcb7   : > { %v4269_v35 = vmul.f32 %v6383_v59, %v4268_v0 }
 0xcb8   : > { %v4154_v23 = vsel %vm1163_vm2, %v4118_v44, 0.0  ;;  %v4420_v54 = vpack.c.bf16 %v8603_v61, %v8600_v29 }
 0xcb9   : > { %4155 = vadd.xlane.f32.xlu2 %v4154_v23  ;;  %v4056_v41 = vpop.xlane.xlu2 %4055  ;;  %v4273_v16 = vsel %vm4272_vm1, %v6383_v59, %v4269_v35 }
 0xcba   : > { %v4087_v14 = vmul.f32 %v8412_v9, %v4056_v41  ;;  %5849 = vmatmul.msk.bf16.gmra.mxu1 %vm1163_vm2, %v4420_v54  ;;  %v4370_v44 = vmul.f32 %v4273_v16, %v8470_v18 }
 0xcbc   : > { %v8611_v19 = vsub.f32 %v8484_v40, %v4087_v14  ;;  %v4389_v14 = vmul.f32 %v8528_v43, %v4370_v44 }
 0xcbe   : > { %v4119_v4 = vmul.f32 %v8611_v19, %v8611_v19 }
 0xcc0   : > { %v4157_v32 = vsel %vm1163_vm2, %v4119_v4, 0.0 }
 0xcc1   : > { %4158 = vadd.xlane.f32.xlu1 %v4157_v32  ;;  %v4059_v49 = vpop.xlane.xlu2 %4058 }
 0xcc2   : > { %v4088_v60 = vmul.f32 %v8412_v9, %v4059_v49  ;;  %v8653_v49 = vadd.f32 %v8538_v26, %v4389_v14 }
 0xcc4   : > { %v8618_v39 = vsub.f32 %v8489_v24, %v4088_v60 }
 0xcc6   : > { %v4120_v20 = vmul.f32 %v8618_v39, %v8618_v39 }
 0xcc8   : > { %v4160_v40 = vsel %vm1163_vm2, %v4120_v20, 0.0 }
 0xcc9   : > { %4161 = vadd.xlane.f32.xlu0 %v4160_v40  ;;  %v4062_v22 = vpop.xlane.xlu1 %4061 }
 0xcca   : > { %v4089_v17 = vmul.f32 %v8412_v9, %v4062_v22 }
 0xccc   : > { %v8625_v1 = vsub.f32 %v8494_v28, %v4089_v17 }
 0xcce   : > { %v4121_v2 = vmul.f32 %v8625_v1, %v8625_v1 }
 0xcd0   : > { %v4163_v24 = vsel %vm1163_vm2, %v4121_v2, 0.0 }
 0xcd1   : > { %4164 = vadd.xlane.f32.xlu2 %v4163_v24  ;;  %v4065_v8 = vpop.xlane.xlu1 %4064 }
 0xcd2   : > { %v4090_v7 = vmul.f32 %v8412_v9, %v4065_v8 }
 0xcd4   : > { %v8632_v36 = vsub.f32 %v8499_v62, %v4090_v7  ;;  %v5997_v62 = vld [vmem:[%s6821_s14 + $0x20] sm:$0xff] }
 0xcd5   : > { %4630 = vmatpush.bf16.msrb.mxu3 %v5997_v62 }
 0xcd6   : > { %v4122_v21 = vmul.f32 %v8632_v36, %v8632_v36 }
 0xcd8   : > { %v4166_v28 = vsel %vm1163_vm2, %v4122_v21, 0.0 }
 0xcd9   : > { %4167 = vadd.xlane.f32.xlu1 %v4166_v28  ;;  %4631 = vmatpush.bf16.msrb.mxu3 %v5996_v45 }
 0xcdd   : > { %4632 = vmatpush.bf16.msrb.mxu3 %v5995_v6 }
 0xce1   : > { %4633 = vmatpush.bf16.msrb.mxu3 %v5994_v48 }
 0xce5   : > { %4634 = vmatpush.bf16.msrb.mxu3 %v5993_v34 }
 0xcf5   : > { %v4147_v52 = vpop.xlane.xlu0 %4146 }
 0xcf6   : > { %v4179_v15 = vmul.f32 %v4147_v52, %v8412_v9 }
 0xcf8   : > { %v4195_v11 = vadd.f32 1e-05, %v4179_v15 }
 0xcfa   : > { %6384 = vrsqrt.f32 %v4195_v11  ;;  %vm4280_vm4 = vweird.f32 %v4195_v11 }
 0xd00   : > { %v6385_v42 = vpop.eup %6384 }
 0xd01   : > { %v4275_v3 = vmul.f32 %v6385_v42, %v4195_v11  ;;  %vm4281_vm3 = vweird.f32 %v6385_v42 }
 0xd02   : > { %vm4282_vm5 = vmor %vm4280_vm4, %vm4281_vm3 }
 0xd03   : > { %v4276_v55 = vmul.f32 %v6385_v42, %v4275_v3 }
 0xd05   : > { %v4277_v27 = vmul.f32 0.5, %v4276_v55 }
 0xd07   : > { %v4278_v50 = vsub.f32 1.5, %v4277_v27 }
 0xd09   : > { %v4279_v23 = vmul.f32 %v6385_v42, %v4278_v50 }
 0xd0b   : > { %v4283_v54 = vsel %vm4282_vm5, %v6385_v42, %v4279_v23 }
 0xd0c   : > { %v4371_v41 = vmul.f32 %v4283_v54, %v8514_v51  ;;  %v8666_v51 = vld [vmem:[%s9329_s0] ss:$0 sm:$0xff] }
 0xd0e   : > { %v4390_v4 = vmul.f32 %v8528_v43, %v4371_v41  ;;  %v4150_v32 = vpop.xlane.xlu0 %4149 }
 0xd0f   : > { %v4180_v13 = vmul.f32 %v4150_v32, %v8412_v9 }
 0xd10   : > { %v8656_v60 = vadd.f32 %v8538_v26, %v4390_v4 }
 0xd11   : > { %v4196_v18 = vadd.f32 1e-05, %v4180_v13 }
 0xd12   : > { %v4421_v20 = vpack.c.bf16 %v8656_v60, %v8653_v49 }
 0xd13   : > { %6386 = vrsqrt.f32 %v4196_v18  ;;  %vm4290_vm7 = vweird.f32 %v4196_v18 }
 0xd14   : > { %v4495_v40 = vpop.f32.mrf.mxu1  ;;  %5850 = vmatmul.msk.bf16.gmra.mxu1 %vm1163_vm2, %v4421_v20 }
 0xd15   : > { %v4496_v30 = vadd.f32 %v8666_v51, %v4495_v40 }
 0xd16   : > { %v4153_v22 = vpop.xlane.xlu2 %4152  ;;  %v4068_v17 = vpop.xlane.xlu0 %4067 }
 0xd17   : > { %v4181_v2 = vmul.f32 %v4153_v22, %v8412_v9  ;;  %v4091_v24 = vmul.f32 %v8412_v9, %v4068_v17  ;;  %v4535_v53 = vmax.f32 %v4496_v30, 0.0 }
 0xd19   : > { %v6387_v8 = vpop.eup %6386  ;;  %v4197_v7 = vadd.f32 1e-05, %v4181_v2  ;;  %v8671_v21 = vsub.f32 %v8568_v46, %v4091_v24 }
 0xd1a   : > { %v4285_v28 = vmul.f32 %v6387_v8, %v4196_v18  ;;  %vm4291_vm6 = vweird.f32 %v6387_v8 }
 0xd1b   : > { %6388 = vrsqrt.f32 %v4197_v7  ;;  %v4123_v38 = vmul.f32 %v8671_v21, %v8671_v21  ;;  %vm4292_vm8 = vmor %vm4290_vm7, %vm4291_vm6  ;;  %vm4300_vm10 = vweird.f32 %v4197_v7 }
 0xd1c   : > { %v4497_v5 = vpop.f32.mrf.mxu1  ;;  %v4286_v37 = vmul.f32 %v6387_v8, %v4285_v28 }
 0xd1d   : > { %v4498_v56 = vadd.f32 %v8666_v51, %v4497_v5  ;;  %v4169_v62 = vsel %vm1163_vm2, %v4123_v38, 0.0 }
 0xd1e   : > { %v4287_v59 = vmul.f32 0.5, %v4286_v37  ;;  %4170 = vadd.xlane.f32.xlu0 %v4169_v62 }
 0xd1f   : > { %v4536_v45 = vmax.f32 %v4498_v56, 0.0 }
 0xd20   : > { %v4288_v57 = vsub.f32 1.5, %v4287_v59 }
 0xd21   : > { %v4551_v46 = vpack.c.bf16 %v4536_v45, %v4535_v53  ;;  %v6389_v52 = vpop.eup %6388 }
 0xd22   : > { %v4289_v15 = vmul.f32 %v6387_v8, %v4288_v57  ;;  %v4295_v6 = vmul.f32 %v6389_v52, %v4197_v7  ;;  %vm4301_vm9 = vweird.f32 %v6389_v52 }
 0xd23   : > { %4635 = vmatmul.bf16.vlgmr.msrb.gmra.mxu3 %v4551_v46  ;;  %vm4302_vm11 = vmor %vm4300_vm10, %vm4301_vm9 }
 0xd24   : > { %v4500_v11 = vpop.f32.mrf.mxu1  ;;  %v4296_v12 = vmul.f32 %v6389_v52, %v4295_v6  ;;  %v4293_v48 = vsel %vm4292_vm8, %v6387_v8, %v4289_v15 }
 0xd25   : > { %v4372_v42 = vmul.f32 %v4293_v48, %v8555_v25  ;;  %v4501_v3 = vadd.f32 %v8666_v51, %v4500_v11 }
 0xd26   : > { %v4297_v0 = vmul.f32 0.5, %v4296_v12 }
 0xd27   : > { %v4391_v54 = vmul.f32 %v8528_v43, %v4372_v42  ;;  %v4537_v41 = vmax.f32 %v4501_v3, 0.0 }
 0xd28   : > { %v4298_v34 = vsub.f32 1.5, %v4297_v0 }
 0xd29   : > { %v8686_v13 = vadd.f32 %v8538_v26, %v4391_v54 }
 0xd2a   : > { %v4299_v35 = vmul.f32 %v6389_v52, %v4298_v34 }
 0xd2c   : > { %v4502_v55 = vpop.f32.mrf.mxu1  ;;  %v4303_v16 = vsel %vm4302_vm11, %v6389_v52, %v4299_v35  ;;  %v4156_v50 = vpop.xlane.xlu2 %4155 }
 0xd2d   : > { %v4503_v27 = vadd.f32 %v8666_v51, %v4502_v55  ;;  %v4373_v44 = vmul.f32 %v4303_v16, %v8571_v33  ;;  %v4182_v23 = vmul.f32 %v4156_v50, %v8412_v9 }
 0xd2f   : > { %v4538_v14 = vmax.f32 %v4503_v27, 0.0  ;;  %v4198_v4 = vadd.f32 1e-05, %v4182_v23  ;;  %v4392_v25 = vmul.f32 %v8528_v43, %v4373_v44 }
 0xd31   : > { %v4552_v32 = vpack.c.bf16 %v4538_v14, %v4537_v41  ;;  %6390 = vrsqrt.f32 %v4198_v4  ;;  %v8689_v18 = vadd.f32 %v8538_v26, %v4392_v25  ;;  %vm4310_vm13 = vweird.f32 %v4198_v4 }
 0xd33   : > { %4640 = vmatmul.bf16.gmra.mxu3 %v4552_v32  ;;  %v4422_v33 = vpack.c.bf16 %v8689_v18, %v8686_v13 }
 0xd34   : > { %v4159_v20 = vpop.xlane.xlu1 %4158 }
 0xd35   : > { %v4183_v40 = vmul.f32 %v4159_v20, %v8412_v9  ;;  %5851 = vmatmul.msk.bf16.gmra.mxu1 %vm1163_vm2, %v4422_v33 }
 0xd37   : > { %v6391_v22 = vpop.eup %6390  ;;  %v4199_v17 = vadd.f32 1e-05, %v4183_v40  ;;  %v4505_v2 = vpop.f32.mrf.mxu1 }
 0xd38   : > { %v4305_v24 = vmul.f32 %v6391_v22, %v4198_v4  ;;  %v4506_v38 = vadd.f32 %v8666_v51, %v4505_v2  ;;  %vm4311_vm12 = vweird.f32 %v6391_v22 }
 0xd39   : > { %6392 = vrsqrt.f32 %v4199_v17  ;;  %vm4312_vm14 = vmor %vm4310_vm13, %vm4311_vm12  ;;  %vm4320_vm0 = vweird.f32 %v4199_v17 }
 0xd3a   : > { %v4306_v8 = vmul.f32 %v6391_v22, %v4305_v24  ;;  %v4539_v46 = vmax.f32 %v4506_v38, 0.0 }
 0xd3c   : > { %v4307_v7 = vmul.f32 0.5, %v4306_v8  ;;  %v4162_v28 = vpop.xlane.xlu0 %4161 }
 0xd3d   : > { %v4184_v30 = vmul.f32 %v4162_v28, %v8412_v9 }
 0xd3e   : > { %v4308_v5 = vsub.f32 1.5, %v4307_v7 }
 0xd3f   : > { %v6393_v37 = vpop.eup %6392  ;;  %v4200_v56 = vadd.f32 1e-05, %v4184_v30  ;;  %v4507_v62 = vpop.f32.mrf.mxu1 }
 0xd40   : > { %v4309_v59 = vmul.f32 %v6391_v22, %v4308_v5  ;;  %v4315_v53 = vmul.f32 %v6393_v37, %v4199_v17  ;;  %v4508_v45 = vadd.f32 %v8666_v51, %v4507_v62  ;;  %vm4321_vm15 = vweird.f32 %v6393_v37 }
 0xd41   : > { %6394 = vrsqrt.f32 %v4200_v56  ;;  %vm4322_vm1 = vmor %vm4320_vm0, %vm4321_vm15  ;;  %vm4330_vm4 = vweird.f32 %v4200_v56 }
 0xd42   : > { %v4316_v57 = vmul.f32 %v6393_v37, %v4315_v53  ;;  %v4540_v52 = vmax.f32 %v4508_v45, 0.0  ;;  %v4313_v15 = vsel %vm4312_vm14, %v6391_v22, %v4309_v59 }
 0xd43   : > { %v4374_v42 = vmul.f32 %v4313_v15, %v8594_v47 }
 0xd44   : > { %v4317_v6 = vmul.f32 0.5, %v4316_v57  ;;  %v4553_v11 = vpack.c.bf16 %v4540_v52, %v4539_v46  ;;  %v4165_v12 = vpop.xlane.xlu2 %4164 }
 0xd45   : > { %v4185_v48 = vmul.f32 %v4165_v12, %v8412_v9  ;;  %v4393_v44 = vmul.f32 %v8528_v43, %v4374_v42 }
 0xd46   : > { %v4318_v0 = vsub.f32 1.5, %v4317_v6  ;;  %4645 = vmatmul.bf16.gmra.mxu3 %v4553_v11 }
 0xd47   : > { %v6395_v34 = vpop.eup %6394  ;;  %v4201_v35 = vadd.f32 1e-05, %v4185_v48  ;;  %v8704_v4 = vadd.f32 %v8538_v26, %v4393_v44 }
 0xd48   : > { %v4319_v3 = vmul.f32 %v6393_v37, %v4318_v0  ;;  %v4325_v55 = vmul.f32 %v6395_v34, %v4200_v56  ;;  %vm4331_vm3 = vweird.f32 %v6395_v34 }
 0xd49   : > { %6396 = vrsqrt.f32 %v4201_v35  ;;  %vm4332_vm5 = vmor %vm4330_vm4, %vm4331_vm3  ;;  %vm4340_vm7 = vweird.f32 %v4201_v35 }
 0xd4a   : > { %v4323_v16 = vsel %vm4322_vm1, %v6393_v37, %v4319_v3  ;;  %v4326_v27 = vmul.f32 %v6395_v34, %v4325_v55 }
 0xd4b   : > { %v4375_v50 = vmul.f32 %v4323_v16, %v8611_v19 }
 0xd4c   : > { %v4327_v23 = vmul.f32 0.5, %v4326_v27 }
 0xd4d   : > { %v4394_v54 = vmul.f32 %v8528_v43, %v4375_v50  ;;  %v8734_v50 = vld [vmem:[%s766_s19] ss:$0 sm:$0xff] }
 0xd4e   : > { %v4328_v41 = vsub.f32 1.5, %v4327_v23 }
 0xd4f   : > { %v6397_v14 = vpop.eup %6396  ;;  %v8707_v47 = vadd.f32 %v8538_v26, %v4394_v54 }
 0xd50   : > { %v4329_v25 = vmul.f32 %v6395_v34, %v4328_v41  ;;  %v4335_v32 = vmul.f32 %v6397_v14, %v4201_v35  ;;  %vm4341_vm6 = vweird.f32 %v6397_v14 }
 0xd51   : > { %v4423_v33 = vpack.c.bf16 %v8707_v47, %v8704_v4  ;;  %vm4342_vm8 = vmor %vm4340_vm7, %vm4341_vm6 }
 0xd52   : > { %v4336_v19 = vmul.f32 %v6397_v14, %v4335_v32  ;;  %v4333_v20 = vsel %vm4332_vm5, %v6395_v34, %v4329_v25 }
 0xd53   : > { %5852 = vmatmul.msk.bf16.gmra.mxu1 %vm1163_vm2, %v4423_v33  ;;  %v4376_v17 = vmul.f32 %v4333_v20, %v8618_v39  ;;  %v4168_v39 = vpop.xlane.xlu1 %4167 }
 0xd54   : > { %v4337_v40 = vmul.f32 0.5, %v4336_v19  ;;  %v4186_v37 = vmul.f32 %v4168_v39, %v8412_v9 }
 0xd55   : > { %v4395_v7 = vmul.f32 %v8528_v43, %v4376_v17 }
 0xd56   : > { %v4338_v22 = vsub.f32 1.5, %v4337_v40  ;;  %v4202_v56 = vadd.f32 1e-05, %v4186_v37 }
 0xd57   : > { %v8717_v30 = vadd.f32 %v8538_v26, %v4395_v7 }
 0xd58   : > { %v4339_v2 = vmul.f32 %v6397_v14, %v4338_v22  ;;  %6398 = vrsqrt.f32 %v4202_v56  ;;  %vm4350_vm10 = vweird.f32 %v4202_v56 }
 0xd5a   : > { %v4343_v24 = vsel %vm4342_vm8, %v6397_v14, %v4339_v2 }
 0xd5b   : > { %v4377_v8 = vmul.f32 %v4343_v24, %v8625_v1 }
 0xd5d   : > { %v4396_v28 = vmul.f32 %v8528_v43, %v4377_v8 }
 0xd5e   : > { %v6399_v1 = vpop.eup %6398 }
 0xd5f   : > { %v8720_v5 = vadd.f32 %v8538_v26, %v4396_v28  ;;  %v4345_v62 = vmul.f32 %v6399_v1, %v4202_v56  ;;  %vm4351_vm9 = vweird.f32 %v6399_v1 }
 0xd60   : > { %vm4352_vm11 = vmor %vm4350_vm10, %vm4351_vm9 }
 0xd61   : > { %v4424_v38 = vpack.c.bf16 %v8720_v5, %v8717_v30  ;;  %v4346_v53 = vmul.f32 %v6399_v1, %v4345_v62 }
 0xd63   : > { %5853 = vmatmul.msk.bf16.gmra.mxu1 %vm1163_vm2, %v4424_v38  ;;  %v4347_v52 = vmul.f32 0.5, %v4346_v53 }
 0xd65   : > { %v4348_v11 = vsub.f32 1.5, %v4347_v52 }
 0xd67   : > { %v4349_v42 = vmul.f32 %v6399_v1, %v4348_v11 }
 0xd69   : > { %v4353_v16 = vsel %vm4352_vm11, %v6399_v1, %v4349_v42 }
 0xd6a   : > { %v4378_v23 = vmul.f32 %v4353_v16, %v8632_v36 }
 0xd6c   : > { %v4397_v19 = vmul.f32 %v8528_v43, %v4378_v23 }
 0xd6e   : > { %v8747_v36 = vadd.f32 %v8538_v26, %v4397_v19 }
 0xd91   : > { %v4510_v59 = vpop.f32.mrf.mxu1  ;;  %v4171_v45 = vpop.xlane.xlu0 %4170 }
 0xd92   : > { %v4187_v57 = vmul.f32 %v4171_v45, %v8412_v9  ;;  %v4511_v15 = vadd.f32 %v8666_v51, %v4510_v59 }
 0xd94   : > { %v4203_v46 = vadd.f32 1e-05, %v4187_v57  ;;  %v4541_v48 = vmax.f32 %v4511_v15, 0.0 }
 0xd96   : > { %6400 = vrsqrt.f32 %v4203_v46  ;;  %vm4360_vm13 = vweird.f32 %v4203_v46 }
 0xd99   : > { %v4512_v6 = vpop.f32.mrf.mxu1 }
 0xd9a   : > { %v4513_v12 = vadd.f32 %v8666_v51, %v4512_v6 }
 0xd9c   : > { %v4542_v0 = vmax.f32 %v4513_v12, 0.0  ;;  %v6401_v34 = vpop.eup %6400 }
 0xd9d   : > { %v4355_v35 = vmul.f32 %v6401_v34, %v4203_v46  ;;  %vm4361_vm12 = vweird.f32 %v6401_v34 }
 0xd9e   : > { %v4554_v3 = vpack.c.bf16 %v4542_v0, %v4541_v48  ;;  %vm4362_vm14 = vmor %vm4360_vm13, %vm4361_vm12 }
 0xd9f   : > { %v4356_v55 = vmul.f32 %v6401_v34, %v4355_v35 }
 0xda0   : > { %4650 = vmatmul.bf16.gmra.mxu3 %v4554_v3 }
 0xda1   : > { %v4357_v27 = vmul.f32 0.5, %v4356_v55 }
 0xda3   : > { %v4358_v44 = vsub.f32 1.5, %v4357_v27 }
 0xda5   : > { %v4359_v54 = vmul.f32 %v6401_v34, %v4358_v44 }
 0xda6   : > { %v4636_v41 = vpop.f32.mrf.mxu3 }
 0xda7   : > { %v4637_v14 = vadd.f32 %v8734_v50, %v4636_v41  ;;  %v4363_v25 = vsel %vm4362_vm14, %v6401_v34, %v4359_v54 }
 0xda8   : > { %v4379_v32 = vmul.f32 %v4363_v25, %v8671_v21 }
 0xda9   : > { %v8740_v33 = vadd.f32 %v4637_v14, %v8545_v10 }
 0xdaa   : > { %v4398_v40 = vmul.f32 %v8528_v43, %v4379_v32 }
 0xdab   : > { %v4694_v20 = vsel %vm1163_vm2, %v8740_v33, 0.0 }
 0xdac   : > { %4695 = vadd.xlane.f32.xlu2 %v4694_v20  ;;  %v8750_v22 = vadd.f32 %v8538_v26, %v4398_v40 }
 0xdae   : > { %v4638_v17 = vpop.f32.mrf.mxu3  ;;  %v4425_v10 = vpack.c.bf16 %v8750_v22, %v8747_v36 }
 0xdaf   : > { %v4639_v21 = vadd.f32 %v8734_v50, %v4638_v17 }
 0xdb0   : > { %5854 = vmatmul.msk.bf16.gmra.mxu1 %vm1163_vm2, %v4425_v10 }
 0xdb1   : > { %v8756_v2 = vadd.f32 %v4639_v21, %v8548_v31 }
 0xdb2   : > { %v4515_v24 = vpop.f32.mrf.mxu1 }
 0xdb3   : > { %v4697_v43 = vsel %vm1163_vm2, %v8756_v2, 0.0  ;;  %v4516_v28 = vadd.f32 %v8666_v51, %v4515_v24 }
 0xdb4   : > { %4698 = vadd.xlane.f32.xlu1 %v4697_v43 }
 0xdb5   : > { %v4543_v37 = vmax.f32 %v4516_v28, 0.0 }
 0xdb6   : > { %v4641_v8 = vpop.f32.mrf.mxu3 }
 0xdb7   : > { %v4642_v26 = vadd.f32 %v8734_v50, %v4641_v8 }
 0xdb9   : > { %v8763_v7 = vadd.f32 %v4642_v26, %v8577_v63 }
 0xdba   : > { %v4517_v31 = vpop.f32.mrf.mxu1 }
 0xdbb   : > { %v4700_v38 = vsel %vm1163_vm2, %v8763_v7, 0.0  ;;  %v4518_v39 = vadd.f32 %v8666_v51, %v4517_v31 }
 0xdbc   : > { %4701 = vadd.xlane.f32.xlu0 %v4700_v38 }
 0xdbd   : > { %v4544_v56 = vmax.f32 %v4518_v39, 0.0 }
 0xdbe   : > { %v4643_v1 = vpop.f32.mrf.mxu3 }
 0xdbf   : > { %v4644_v62 = vadd.f32 %v8734_v50, %v4643_v1  ;;  %v4555_v59 = vpack.c.bf16 %v4544_v56, %v4543_v37 }
 0xdc1   : > { %v8771_v53 = vadd.f32 %v4644_v62, %v8583_v58  ;;  %4655 = vmatmul.bf16.gmra.mxu3 %v4555_v59 }
 0xdc3   : > { %v4703_v63 = vsel %vm1163_vm2, %v8771_v53, 0.0 }
 0xdc4   : > { %4704 = vadd.xlane.f32.xlu2 %v4703_v63 }
 0xdc9   : > { %v4646_v45 = vpop.f32.mrf.mxu3 }
 0xdca   : > { %v4647_v57 = vadd.f32 %v8734_v50, %v4646_v45 }
 0xdcc   : > { %v8777_v46 = vadd.f32 %v4647_v57, %v8600_v29 }
 0xdce   : > { %v4706_v52 = vsel %vm1163_vm2, %v8777_v46, 0.0 }
 0xdcf   : > { %4707 = vadd.xlane.f32.xlu1 %v4706_v52 }
 0xdd0   : > { %v4520_v15 = vpop.f32.mrf.mxu1 }
 0xdd1   : > { %v4648_v6 = vpop.f32.mrf.mxu3  ;;  %v4521_v48 = vadd.f32 %v8666_v51, %v4520_v15 }
 0xdd2   : > { %v4649_v58 = vadd.f32 %v8734_v50, %v4648_v6 }
 0xdd3   : > { %v4545_v34 = vmax.f32 %v4521_v48, 0.0 }
 0xdd4   : > { %v8783_v11 = vadd.f32 %v4649_v58, %v8603_v61 }
 0xdd6   : > { %v4709_v12 = vsel %vm1163_vm2, %v8783_v11, 0.0 }
 0xdd7   : > { %4710 = vadd.xlane.f32.xlu0 %v4709_v12 }
 0xdd8   : > { %v4522_v0 = vpop.f32.mrf.mxu1 }
 0xdd9   : > { %v4523_v29 = vadd.f32 %v8666_v51, %v4522_v0 }
 0xddb   : > { %v4546_v42 = vmax.f32 %v4523_v29, 0.0 }
 0xddd   : > { %v4556_v35 = vpack.c.bf16 %v4546_v42, %v4545_v34 }
 0xddf   : > { %4660 = vmatmul.bf16.gmra.mxu3 %v4556_v35 }
 0xde0   : > { %v4525_v3 = vpop.f32.mrf.mxu1 }
 0xde1   : > { %v4526_v55 = vadd.f32 %v8666_v51, %v4525_v3 }
 0xde3   : > { %v4547_v27 = vmax.f32 %v4526_v55, 0.0 }
 0xde8   : > { %v4527_v16 = vpop.f32.mrf.mxu1 }
 0xde9   : > { %v4528_v61 = vadd.f32 %v8666_v51, %v4527_v16 }
 0xdeb   : > { %v4548_v44 = vmax.f32 %v4528_v61, 0.0 }
 0xded   : > { %v4557_v23 = vpack.c.bf16 %v4548_v44, %v4547_v27 }
 0xdef   : > { %4665 = vmatmul.bf16.gmra.mxu3 %v4557_v23 }
 0xe1f   : > { %v4696_v6 = vpop.xlane.xlu2 %4695 }
 0xe20   : > { %v4742_v12 = vmul.f32 %v4696_v6, %v8412_v9 }
 0xe22   : > { %v8835_v0 = vsub.f32 %v8740_v33, %v4742_v12 }
 0xe23   : > { %v4651_v54 = vpop.f32.mrf.mxu3 }
 0xe24   : > { %v4652_v41 = vadd.f32 %v8734_v50, %v4651_v54  ;;  %v4774_v42 = vmul.f32 %v8835_v0, %v8835_v0 }
 0xe26   : > { %v4682_v14 = vadd.f32 %v4652_v41, %v8653_v49  ;;  %v4790_v3 = vsel %vm1163_vm2, %v4774_v42, 0.0 }
 0xe27   : > { %v4699_v44 = vpop.xlane.xlu1 %4698 }
 0xe28   : > { %v4712_v25 = vsel %vm1163_vm2, %v4682_v14, 0.0  ;;  %v4743_v41 = vmul.f32 %v4699_v44, %v8412_v9 }
 0xe29   : > { %4713 = vadd.xlane.f32.xlu2 %v4712_v25 }
 0xe2b   : > { %v4653_v32 = vpop.f32.mrf.mxu3 }
 0xe2c   : > { %v4654_v19 = vadd.f32 %v8734_v50, %v4653_v32 }
 0xe2d   : > { %v4530_v40 = vpop.f32.mrf.mxu1 }
 0xe2e   : > { %v8796_v20 = vadd.f32 %v4654_v19, %v8656_v60  ;;  %v4531_v21 = vadd.f32 %v8666_v51, %v4530_v40 }
 0xe2f   : > { %v4702_v19 = vpop.xlane.xlu0 %4701 }
 0xe30   : > { %v4715_v17 = vsel %vm1163_vm2, %v8796_v20, 0.0  ;;  %v4549_v49 = vmax.f32 %v4531_v21, 0.0 }
 0xe31   : > { %4716 = vadd.xlane.f32.xlu1 %v4715_v17 }
 0xe35   : > { %v4532_v10 = vpop.f32.mrf.mxu1 }
 0xe36   : > { %v4533_v24 = vadd.f32 %v8666_v51, %v4532_v10 }
 0xe37   : > { %v4705_v29 = vpop.xlane.xlu2 %4704 }
 0xe38   : > { %v4550_v43 = vmax.f32 %v4533_v24, 0.0  ;;  %v4745_v34 = vmul.f32 %v4705_v29, %v8412_v9  ;;  %v4744_v24 = vmul.f32 %v4702_v19, %v8412_v9 }
 0xe3a   : > { %v4558_v8 = vpack.c.bf16 %v4550_v43, %v4549_v49  ;;  %v8843_v35 = vsub.f32 %v8771_v53, %v4745_v34 }
 0xe3c   : > { %4670 = vmatmul.bf16.gmra.mxu3 %v4558_v8 }
 0xe42   : > { %v4708_v17 = vpop.xlane.xlu1 %4707 }
 0xe43   : > { %v4746_v43 = vmul.f32 %v4708_v17, %v8412_v9 }
 0xe44   : > { %v4656_v26 = vpop.f32.mrf.mxu3 }
 0xe45   : > { %v4657_v28 = vadd.f32 %v8734_v50, %v4656_v26 }
 0xe47   : > { %v8804_v60 = vadd.f32 %v4657_v28, %v8686_v13  ;;  %v8879_v28 = vsub.f32 %v8763_v7, %v4744_v24 }
 0xe49   : > { %v4718_v38 = vsel %vm1163_vm2, %v8804_v60, 0.0  ;;  %v4776_v7 = vmul.f32 %v8879_v28, %v8879_v28 }
 0xe4a   : > { %4719 = vadd.xlane.f32.xlu0 %v4718_v38 }
 0xe4c   : > { %v4658_v31 = vpop.f32.mrf.mxu3 }
 0xe4d   : > { %v4659_v39 = vadd.f32 %v8734_v50, %v4658_v31 }
 0xe4f   : > { %v4685_v37 = vadd.f32 %v4659_v39, %v8689_v18  ;;  %v4711_v39 = vpop.xlane.xlu0 %4710 }
 0xe51   : > { %v4721_v51 = vsel %vm1163_vm2, %v4685_v37, 0.0 }
 0xe52   : > { %4722 = vadd.xlane.f32.xlu2 %v4721_v51  ;;  %v4747_v51 = vmul.f32 %v4711_v39, %v8412_v9  ;;  %v8950_v39 = vld [vmem:[%s769_s22] ss:$0 sm:$0xff] }
 0xe62   : > { %v4661_v56 = vpop.f32.mrf.mxu3 }
 0xe63   : > { %v4662_v1 = vadd.f32 %v8734_v50, %v4661_v56 }
 0xe65   : > { %v8813_v62 = vadd.f32 %v4662_v1, %v8704_v4 }
 0xe67   : > { %v4724_v13 = vsel %vm1163_vm2, %v8813_v62, 0.0 }
 0xe68   : > { %4725 = vadd.xlane.f32.xlu1 %v4724_v13  ;;  %v4796_v13 = vsel %vm1163_vm2, %v4776_v7, 0.0 }
 0xe6a   : > { %v4663_v59 = vpop.f32.mrf.mxu3 }
 0xe6b   : > { %v4664_v63 = vadd.f32 %v8734_v50, %v4663_v59 }
 0xe6d   : > { %v8819_v45 = vadd.f32 %v4664_v63, %v8707_v47 }
 0xe6f   : > { %v4727_v18 = vsel %vm1163_vm2, %v8819_v45, 0.0 }
 0xe70   : > { %4728 = vadd.xlane.f32.xlu0 %v4727_v18 }
 0xe72   : > { %v4666_v57 = vpop.f32.mrf.mxu3 }
 0xe73   : > { %v4667_v52 = vadd.f32 %v8734_v50, %v4666_v57 }
 0xe75   : > { %v8825_v4 = vadd.f32 %v4667_v52, %v8717_v30 }
 0xe77   : > { %v4730_v15 = vsel %vm1163_vm2, %v8825_v4, 0.0 }
 0xe78   : > { %4731 = vadd.xlane.f32.xlu2 %v4730_v15 }
 0xe7a   : > { %v4668_v58 = vpop.f32.mrf.mxu3 }
 0xe7b   : > { %v4669_v47 = vadd.f32 %v8734_v50, %v4668_v58 }
 0xe7d   : > { %v8832_v48 = vadd.f32 %v4669_v47, %v8720_v5  ;;  %v4777_v5 = vmul.f32 %v8843_v35, %v8843_v35 }
 0xe7f   : > { %v4733_v30 = vsel %vm1163_vm2, %v8832_v48, 0.0  ;;  %v4799_v33 = vsel %vm1163_vm2, %v4777_v5, 0.0 }
 0xe80   : > { %4734 = vadd.xlane.f32.xlu1 %v4733_v30 }
 0xe88   : > { %4791 = vadd.xlane.f32.xlu1 %v4790_v3 }
 0xe90   : > { %4800 = vadd.xlane.f32.xlu1 %v4799_v33 }
 0xe9c   : > { %v4714_v55 = vpop.xlane.xlu2 %4713 }
 0xe9d   : > { %v4748_v16 = vmul.f32 %v4714_v55, %v8412_v9 }
 0xe9f   : > { %v8850_v61 = vsub.f32 %v4682_v14, %v4748_v16  ;;  %v8863_v14 = vsub.f32 %v8756_v2, %v4743_v41 }
 0xea1   : > { %v4780_v27 = vmul.f32 %v8850_v61, %v8850_v61  ;;  %v4775_v8 = vmul.f32 %v8863_v14, %v8863_v14 }
 0xea3   : > { %v4808_v53 = vsel %vm1163_vm2, %v4780_v27, 0.0 }
 0xea4   : > { %4809 = vadd.xlane.f32.xlu1 %v4808_v53 }
 0xebd   : > { %v4720_v63 = vpop.xlane.xlu0 %4719 }
 0xebe   : > { %v4750_v57 = vmul.f32 %v4720_v63, %v8412_v9 }
 0xebf   : > { %v4671_v23 = vpop.f32.mrf.mxu3 }
 0xec0   : > { %v4672_v54 = vadd.f32 %v8734_v50, %v4671_v23  ;;  %v8908_v6 = vsub.f32 %v8804_v60, %v4750_v57 }
 0xec2   : > { %v8858_v25 = vadd.f32 %v4672_v54, %v8747_v36  ;;  %v4782_v30 = vmul.f32 %v8908_v6, %v8908_v6 }
 0xec4   : > { %v4736_v32 = vsel %vm1163_vm2, %v8858_v25, 0.0  ;;  %v4814_v42 = vsel %vm1163_vm2, %v4782_v30, 0.0 }
 0xec5   : > { %v4723_v40 = vpop.xlane.xlu2 %4722  ;;  %4737 = vadd.xlane.f32.xlu0 %v4736_v32 }
 0xec6   : > { %v4751_v21 = vmul.f32 %v4723_v40, %v8412_v9 }
 0xec7   : > { %v4673_v10 = vpop.f32.mrf.mxu3 }
 0xec8   : > { %v8867_v49 = vsub.f32 %v4685_v37, %v4751_v21  ;;  %v4674_v36 = vadd.f32 %v8734_v50, %v4673_v10  ;;  %v8885_v50 = vsub.f32 %v8777_v46, %v4746_v43  ;;  %v4717_v37 = vpop.xlane.xlu1 %4716  ;;  %v8895_v46 = vsub.f32 %v8783_v11, %v4747_v51  ;;  %v8957_v51 = vld [vmem:[%s772_s4] ss:$0 sm:$0xff] }
 0xec9   : > { %v4749_v56 = vmul.f32 %v4717_v37, %v8412_v9 }
 0xeca   : > { %v8874_v2 = vadd.f32 %v4674_v36, %v8750_v22  ;;  %v4783_v26 = vmul.f32 %v8867_v49, %v8867_v49  ;;  %v4793_v22 = vsel %vm1163_vm2, %v4775_v8, 0.0  ;;  %v4778_v1 = vmul.f32 %v8885_v50, %v8885_v50 }
 0xecb   : > { %v8899_v59 = vsub.f32 %v8796_v20, %v4749_v56  ;;  %v4779_v52 = vmul.f32 %v8895_v46, %v8895_v46 }
 0xecc   : > { %v4817_v38 = vsel %vm1163_vm2, %v4783_v26, 0.0  ;;  %v4739_v31 = vsel %vm1163_vm2, %v8874_v2, 0.0  ;;  %v4802_v18 = vsel %vm1163_vm2, %v4778_v1, 0.0 }
 0xecd   : > { %4818 = vadd.xlane.f32.xlu1 %v4817_v38  ;;  %4740 = vadd.xlane.f32.xlu2 %v4739_v31  ;;  %v4781_v15 = vmul.f32 %v8899_v59, %v8899_v59  ;;  %v4805_v58 = vsel %vm1163_vm2, %v4779_v52, 0.0 }
 0xece   : > { %4794 = vadd.xlane.f32.xlu0 %v4793_v22 }
 0xecf   : > { %v4811_v12 = vsel %vm1163_vm2, %v4781_v15, 0.0 }
 0xed5   : > { %4797 = vadd.xlane.f32.xlu2 %v4796_v13 }
 0xed6   : > { %4803 = vadd.xlane.f32.xlu0 %v4802_v18 }
 0xedb   : > { %v4726_v11 = vpop.xlane.xlu1 %4725 }
 0xedc   : > { %v4752_v20 = vmul.f32 %v4726_v11, %v8412_v9 }
 0xedd   : > { %4806 = vadd.xlane.f32.xlu2 %v4805_v58 }
 0xede   : > { %v8914_v47 = vsub.f32 %v8813_v62, %v4752_v20  ;;  %4812 = vadd.xlane.f32.xlu0 %v4811_v12 }
 0xee0   : > { %v4784_v29 = vmul.f32 %v8914_v47, %v8914_v47 }
 0xee2   : > { %v4820_v3 = vsel %vm1163_vm2, %v4784_v29, 0.0 }
 0xee3   : > { %v4729_v34 = vpop.xlane.xlu0 %4728 }
 0xee4   : > { %v4753_v60 = vmul.f32 %v4729_v34, %v8412_v9 }
 0xee5   : > { %4815 = vadd.xlane.f32.xlu2 %v4814_v42 }
 0xee6   : > { %v8924_v5 = vsub.f32 %v8819_v45, %v4753_v60  ;;  %4821 = vadd.xlane.f32.xlu0 %v4820_v3 }
 0xee8   : > { %v4785_v62 = vmul.f32 %v8924_v5, %v8924_v5 }
 0xeea   : > { %v4823_v16 = vsel %vm1163_vm2, %v4785_v62, 0.0 }
 0xeeb   : > { %v4732_v33 = vpop.xlane.xlu2 %4731 }
 0xeec   : > { %v4754_v55 = vmul.f32 %v4732_v33, %v8412_v9 }
 0xeed   : > { %4824 = vadd.xlane.f32.xlu2 %v4823_v16 }
 0xeee   : > { %v8931_v27 = vsub.f32 %v8825_v4, %v4754_v55 }
 0xef0   : > { %v4786_v53 = vmul.f32 %v8931_v27, %v8931_v27 }
 0xef2   : > { %v4826_v44 = vsel %vm1163_vm2, %v4786_v53, 0.0 }
 0xef3   : > { %4827 = vadd.xlane.f32.xlu1 %v4826_v44  ;;  %v4735_v45 = vpop.xlane.xlu1 %4734 }
 0xef4   : > { %v4755_v23 = vmul.f32 %v4735_v45, %v8412_v9 }
 0xef6   : > { %v8938_v54 = vsub.f32 %v8832_v48, %v4755_v23 }
 0xef8   : > { %v4787_v41 = vmul.f32 %v8938_v54, %v8938_v54 }
 0xefa   : > { %v4829_v32 = vsel %vm1163_vm2, %v4787_v41, 0.0 }
 0xefb   : > { %4830 = vadd.xlane.f32.xlu0 %v4829_v32  ;;  %v4792_v4 = vpop.xlane.xlu1 %4791 }
 0xefc   : > { %v4838_v19 = vmul.f32 %v4792_v4, %v8412_v9 }
 0xefe   : > { %v4854_v40 = vadd.f32 1e-05, %v4838_v19 }
 0xf00   : > { %6402 = vrsqrt.f32 %v4854_v40  ;;  %vm4876_vm0 = vweird.f32 %v4854_v40 }
 0xf03   : > { %v4801_v17 = vpop.xlane.xlu1 %4800 }
 0xf04   : > { %v4841_v21 = vmul.f32 %v4801_v17, %v8412_v9 }
 0xf06   : > { %v6403_v10 = vpop.eup %6402  ;;  %v4857_v24 = vadd.f32 1e-05, %v4841_v21 }
 0xf07   : > { %v4871_v48 = vmul.f32 %v6403_v10, %v4854_v40  ;;  %vm4877_vm15 = vweird.f32 %v6403_v10 }
 0xf08   : > { %6404 = vrsqrt.f32 %v4857_v24  ;;  %vm4878_vm1 = vmor %vm4876_vm0, %vm4877_vm15  ;;  %vm4906_vm4 = vweird.f32 %v4857_v24 }
 0xf09   : > { %v4872_v36 = vmul.f32 %v6403_v10, %v4871_v48 }
 0xf0b   : > { %v4873_v43 = vmul.f32 0.5, %v4872_v36 }
 0xf0d   : > { %v4874_v8 = vsub.f32 1.5, %v4873_v43 }
 0xf0e   : > { %v6405_v26 = vpop.eup %6404 }
 0xf0f   : > { %v4875_v38 = vmul.f32 %v6403_v10, %v4874_v8  ;;  %v4901_v31 = vmul.f32 %v6405_v26, %v4857_v24  ;;  %vm4907_vm3 = vweird.f32 %v6405_v26 }
 0xf10   : > { %vm4908_vm5 = vmor %vm4906_vm4, %vm4907_vm3 }
 0xf11   : > { %v4879_v22 = vsel %vm4878_vm1, %v6403_v10, %v4875_v38  ;;  %v4902_v37 = vmul.f32 %v6405_v26, %v4901_v31 }
 0xf12   : > { %v5030_v7 = vmul.f32 %v4879_v22, %v8835_v0 }
 0xf13   : > { %v4903_v56 = vmul.f32 0.5, %v4902_v37 }
 0xf14   : > { %v5049_v1 = vmul.f32 %v8950_v39, %v5030_v7 }
 0xf15   : > { %v4904_v13 = vsub.f32 1.5, %v4903_v56 }
 0xf16   : > { %v8962_v63 = vadd.f32 %v8957_v51, %v5049_v1 }
 0xf17   : > { %v4810_v18 = vpop.xlane.xlu1 %4809  ;;  %v4905_v57 = vmul.f32 %v6405_v26, %v4904_v13 }
 0xf18   : > { %v4844_v52 = vmul.f32 %v4810_v18, %v8412_v9  ;;  %5084 = vst.msk [vmem:[#allocation2] sm:$0xff] %vm1163_vm2, %v8962_v63 }
 0xf19   : > { %v4909_v15 = vsel %vm4908_vm5, %v6405_v26, %v4905_v57 }
 0xf1a   : > { %v4860_v11 = vadd.f32 1e-05, %v4844_v52  ;;  %v5033_v0 = vmul.f32 %v4909_v15, %v8843_v35 }
 0xf1c   : > { %6406 = vrsqrt.f32 %v4860_v11  ;;  %v5052_v20 = vmul.f32 %v8950_v39, %v5033_v0  ;;  %vm4936_vm7 = vweird.f32 %v4860_v11 }
 0xf1e   : > { %v8970_v58 = vadd.f32 %v8957_v51, %v5052_v20 }
 0xf20   : > { %5087 = vst.msk [vmem:[#allocation2 + $0x18] sm:$0xff] %vm1163_vm2, %v8970_v58 }
 0xf22   : > { %v6407_v12 = vpop.eup %6406 }
 0xf23   : > { %v4931_v30 = vmul.f32 %v6407_v12, %v4860_v11  ;;  %vm4937_vm6 = vweird.f32 %v6407_v12 }
 0xf24   : > { %vm4938_vm8 = vmor %vm4936_vm7, %vm4937_vm6 }
 0xf25   : > { %v4932_v29 = vmul.f32 %v6407_v12, %v4931_v30 }
 0xf27   : > { %v4933_v34 = vmul.f32 0.5, %v4932_v29 }
 0xf29   : > { %v4934_v60 = vsub.f32 1.5, %v4933_v34 }
 0xf2b   : > { %v4935_v42 = vmul.f32 %v6407_v12, %v4934_v60 }
 0xf2d   : > { %v4939_v3 = vsel %vm4938_vm8, %v6407_v12, %v4935_v42 }
 0xf2e   : > { %v5036_v35 = vmul.f32 %v4939_v3, %v8850_v61 }
 0xf30   : > { %v5055_v62 = vmul.f32 %v8950_v39, %v5036_v35 }
 0xf32   : > { %v8977_v33 = vadd.f32 %v8957_v51, %v5055_v62 }
 0xf34   : > { %5090 = vst.msk [vmem:[#allocation2 + $0x30] sm:$0xff] %vm1163_vm2, %v8977_v33 }
 0xf38   : > { %v4738_v55 = vpop.xlane.xlu0 %4737 }
 0xf39   : > { %v4756_v16 = vmul.f32 %v4738_v55, %v8412_v9 }
 0xf3b   : > { %v8983_v53 = vsub.f32 %v8858_v25, %v4756_v16 }
 0xf3d   : > { %v4788_v44 = vmul.f32 %v8983_v53, %v8983_v53 }
 0xf3f   : > { %v4832_v45 = vsel %vm1163_vm2, %v4788_v44, 0.0 }
 0xf40   : > { %v4741_v61 = vpop.xlane.xlu2 %4740  ;;  %4833 = vadd.xlane.f32.xlu2 %v4832_v45  ;;  %v4819_v23 = vpop.xlane.xlu1 %4818 }
 0xf41   : > { %v4757_v41 = vmul.f32 %v4741_v61, %v8412_v9  ;;  %v4795_v32 = vpop.xlane.xlu0 %4794  ;;  %v4847_v4 = vmul.f32 %v4819_v23, %v8412_v9 }
 0xf42   : > { %v4839_v19 = vmul.f32 %v4795_v32, %v8412_v9 }
 0xf43   : > { %v8992_v40 = vsub.f32 %v8874_v2, %v4757_v41  ;;  %v4863_v25 = vadd.f32 1e-05, %v4847_v4 }
 0xf44   : > { %v4855_v17 = vadd.f32 1e-05, %v4839_v19 }
 0xf45   : > { %6408 = vrsqrt.f32 %v4863_v25  ;;  %v4789_v21 = vmul.f32 %v8992_v40, %v8992_v40  ;;  %vm4966_vm11 = vweird.f32 %v4863_v25 }
 0xf46   : > { %6410 = vrsqrt.f32 %v4855_v17  ;;  %vm4886_vm12 = vweird.f32 %v4855_v17 }
 0xf47   : > { %v4835_v10 = vsel %vm1163_vm2, %v4789_v21, 0.0 }
 0xf48   : > { %4836 = vadd.xlane.f32.xlu1 %v4835_v10  ;;  %v4798_v24 = vpop.xlane.xlu2 %4797 }
 0xf49   : > { %v4840_v48 = vmul.f32 %v4798_v24, %v8412_v9  ;;  %v4804_v36 = vpop.xlane.xlu0 %4803 }
 0xf4a   : > { %v4842_v43 = vmul.f32 %v4804_v36, %v8412_v9 }
 0xf4b   : > { %v6409_v8 = vpop.eup %6408  ;;  %v4856_v26 = vadd.f32 1e-05, %v4840_v48 }
 0xf4c   : > { %v6411_v2 = vpop.eup %6410  ;;  %v4961_v38 = vmul.f32 %v6409_v8, %v4863_v25  ;;  %v8999_v31 = vadd.f32 1e-05, %v4842_v43  ;;  %vm4967_vm9 = vweird.f32 %v6409_v8 }
 0xf4d   : > { %v4881_v22 = vmul.f32 %v6411_v2, %v4855_v17  ;;  %6412 = vrsqrt.f32 %v4856_v26  ;;  %vm4887_vm10 = vweird.f32 %v6411_v2  ;;  %vm4968_vm13 = vmor %vm4966_vm11, %vm4967_vm9  ;;  %vm4896_vm1 = vweird.f32 %v4856_v26 }
 0xf4e   : > { %v4962_v37 = vmul.f32 %v6409_v8, %v4961_v38  ;;  %6414 = vrsqrt.f32 %v8999_v31  ;;  %vm4888_vm14 = vmor %vm4886_vm12, %vm4887_vm10  ;;  %vm4916_vm4 = vweird.f32 %v8999_v31 }
 0xf4f   : > { %v4882_v7 = vmul.f32 %v6411_v2, %v4881_v22 }
 0xf50   : > { %v4963_v56 = vmul.f32 0.5, %v4962_v37  ;;  %v4807_v1 = vpop.xlane.xlu2 %4806 }
 0xf51   : > { %v4883_v13 = vmul.f32 0.5, %v4882_v7  ;;  %v4843_v18 = vmul.f32 %v4807_v1, %v8412_v9  ;;  %v4813_v57 = vpop.xlane.xlu0 %4812 }
 0xf52   : > { %v4964_v52 = vsub.f32 1.5, %v4963_v56  ;;  %v4845_v15 = vmul.f32 %v4813_v57, %v8412_v9 }
 0xf53   : > { %v6413_v11 = vpop.eup %6412  ;;  %v4884_v0 = vsub.f32 1.5, %v4883_v13  ;;  %v9004_v20 = vadd.f32 1e-05, %v4843_v18 }
 0xf54   : > { %v6415_v12 = vpop.eup %6414  ;;  %v4965_v30 = vmul.f32 %v6409_v8, %v4964_v52  ;;  %v4891_v29 = vmul.f32 %v6413_v11, %v4856_v26  ;;  %v9006_v34 = vadd.f32 1e-05, %v4845_v15  ;;  %vm4897_vm15 = vweird.f32 %v6413_v11 }
 0xf55   : > { %v4885_v60 = vmul.f32 %v6411_v2, %v4884_v0  ;;  %v4911_v42 = vmul.f32 %v6415_v12, %v8999_v31  ;;  %6416 = vrsqrt.f32 %v9004_v20  ;;  %vm4917_vm0 = vweird.f32 %v6415_v12  ;;  %vm4898_vm3 = vmor %vm4896_vm1, %vm4897_vm15 }
 0xf56   : > { %v4969_v3 = vsel %vm4968_vm13, %v6409_v8, %v4965_v30  ;;  %v4892_v35 = vmul.f32 %v6413_v11, %v4891_v29  ;;  %6418 = vrsqrt.f32 %v9006_v34  ;;  %vm4918_vm5 = vmor %vm4916_vm4, %vm4917_vm0  ;;  %vm4926_vm8 = vweird.f32 %v9004_v20 }
 0xf57   : > { %v4889_v62 = vsel %vm4888_vm14, %v6411_v2, %v4885_v60  ;;  %v5039_v55 = vmul.f32 %v4969_v3, %v8867_v49  ;;  %v4912_v16 = vmul.f32 %v6415_v12, %v4911_v42  ;;  %vm4946_vm10 = vweird.f32 %v9006_v34 }
 0xf58   : > { %v5031_v44 = vmul.f32 %v4889_v62, %v8863_v14  ;;  %v4893_v45 = vmul.f32 0.5, %v4892_v35  ;;  %v4816_v61 = vpop.xlane.xlu2 %4815 }
 0xf59   : > { %v5058_v23 = vmul.f32 %v8950_v39, %v5039_v55  ;;  %v4913_v41 = vmul.f32 0.5, %v4912_v16  ;;  %v4846_v32 = vmul.f32 %v4816_v61, %v8412_v9  ;;  %v4822_v4 = vpop.xlane.xlu0 %4821 }
 0xf5a   : > { %v5050_v19 = vmul.f32 %v8950_v39, %v5031_v44  ;;  %v4894_v25 = vsub.f32 1.5, %v4893_v45  ;;  %v4848_v17 = vmul.f32 %v4822_v4, %v8412_v9 }
 0xf5b   : > { %v6417_v21 = vpop.eup %6416  ;;  %v9018_v49 = vadd.f32 %v8957_v51, %v5058_v23  ;;  %v4914_v10 = vsub.f32 1.5, %v4913_v41  ;;  %v9020_v14 = vadd.f32 1e-05, %v4846_v32 }
 0xf5c   : > { %v6419_v24 = vpop.eup %6418  ;;  %v9023_v48 = vadd.f32 %v8957_v51, %v5050_v19  ;;  %v4895_v36 = vmul.f32 %v6413_v11, %v4894_v25  ;;  %v4921_v43 = vmul.f32 %v6417_v21, %v9004_v20  ;;  %v9034_v22 = vadd.f32 1e-05, %v4848_v17 }
 0xf5d   : > { %5093 = vst.msk [vmem:[#allocation2 + $0x48] sm:$0xff] %vm1163_vm2, %v9018_v49  ;;  %v4915_v8 = vmul.f32 %v6415_v12, %v4914_v10  ;;  %v4941_v2 = vmul.f32 %v6419_v24, %v9006_v34  ;;  %6420 = vrsqrt.f32 %v9020_v14  ;;  %vm4927_vm6 = vweird.f32 %v6417_v21 }
 0xf5e   : > { %5085 = vst.msk [vmem:[#allocation2 + $0x8] sm:$0xff] %vm1163_vm2, %v9023_v48  ;;  %v4899_v38 = vsel %vm4898_vm3, %v6413_v11, %v4895_v36  ;;  %v4922_v26 = vmul.f32 %v6417_v21, %v4921_v43  ;;  %6422 = vrsqrt.f32 %v9034_v22  ;;  %vm4947_vm7 = vweird.f32 %v6419_v24  ;;  %vm4928_vm9 = vmor %vm4926_vm8, %vm4927_vm6 }
 0xf5f   : > { %v5032_v37 = vmul.f32 %v4899_v38, %v8879_v28  ;;  %v4919_v7 = vsel %vm4918_vm5, %v6415_v12, %v4915_v8  ;;  %v4942_v56 = vmul.f32 %v6419_v24, %v4941_v2  ;;  %vm4948_vm11 = vmor %vm4946_vm10, %vm4947_vm7  ;;  %vm4956_vm13 = vweird.f32 %v9020_v14 }
 0xf60   : > { %v5034_v1 = vmul.f32 %v4919_v7, %v8885_v50  ;;  %v4923_v31 = vmul.f32 0.5, %v4922_v26  ;;  %v4825_v13 = vpop.xlane.xlu2 %4824  ;;  %vm4976_vm0 = vweird.f32 %v9034_v22 }
 0xf61   : > { %v5051_v18 = vmul.f32 %v8950_v39, %v5032_v37  ;;  %v4943_v57 = vmul.f32 0.5, %v4942_v56  ;;  %v4849_v52 = vmul.f32 %v4825_v13, %v8412_v9 }
 0xf62   : > { %v5053_v15 = vmul.f32 %v8950_v39, %v5034_v1  ;;  %v4924_v11 = vsub.f32 1.5, %v4923_v31 }
 0xf63   : > { %v6421_v0 = vpop.eup %6420  ;;  %v9043_v28 = vadd.f32 %v8957_v51, %v5051_v18  ;;  %v4944_v12 = vsub.f32 1.5, %v4943_v57  ;;  %v9045_v50 = vadd.f32 1e-05, %v4849_v52 }
 0xf64   : > { %v9048_v30 = vadd.f32 %v8957_v51, %v5053_v15  ;;  %v4925_v29 = vmul.f32 %v6417_v21, %v4924_v11  ;;  %v4951_v60 = vmul.f32 %v6421_v0, %v9020_v14  ;;  %v6423_v3 = vpop.eup %6422  ;;  %vm4957_vm12 = vweird.f32 %v6421_v0 }
 0xf65   : > { %5086 = vst.msk [vmem:[#allocation2 + $0x10] sm:$0xff] %vm1163_vm2, %v9043_v28  ;;  %v4945_v42 = vmul.f32 %v6419_v24, %v4944_v12  ;;  %6424 = vrsqrt.f32 %v9045_v50  ;;  %v4971_v44 = vmul.f32 %v6423_v3, %v9034_v22  ;;  %vm4958_vm14 = vmor %vm4956_vm13, %vm4957_vm12  ;;  %vm4977_vm15 = vweird.f32 %v6423_v3 }
 0xf66   : > { %5088 = vst.msk [vmem:[#allocation2 + $0x20] sm:$0xff] %vm1163_vm2, %v9048_v30  ;;  %v4929_v35 = vsel %vm4928_vm9, %v6417_v21, %v4925_v29  ;;  %v4952_v62 = vmul.f32 %v6421_v0, %v4951_v60  ;;  %v4828_v55 = vpop.xlane.xlu1 %4827  ;;  %vm4978_vm1 = vmor %vm4976_vm0, %vm4977_vm15  ;;  %vm4986_vm4 = vweird.f32 %v9045_v50 }
 0xf67   : > { %v5035_v20 = vmul.f32 %v4929_v35, %v8895_v46  ;;  %v4949_v16 = vsel %vm4948_vm11, %v6419_v24, %v4945_v42  ;;  %v4850_v34 = vmul.f32 %v4828_v55, %v8412_v9  ;;  %v4972_v41 = vmul.f32 %v6423_v3, %v4971_v44 }
 0xf68   : > { %v5037_v45 = vmul.f32 %v4949_v16, %v8899_v59  ;;  %v4953_v61 = vmul.f32 0.5, %v4952_v62 }
 0xf69   : > { %v5054_v23 = vmul.f32 %v8950_v39, %v5035_v20  ;;  %v4866_v19 = vadd.f32 1e-05, %v4850_v34  ;;  %v4973_v46 = vmul.f32 0.5, %v4972_v41 }
 0xf6a   : > { %v5056_v32 = vmul.f32 %v8950_v39, %v5037_v45  ;;  %v4954_v4 = vsub.f32 1.5, %v4953_v61 }
 0xf6b   : > { %v6425_v25 = vpop.eup %6424  ;;  %v9065_v17 = vadd.f32 %v8957_v51, %v5054_v23  ;;  %v4974_v24 = vsub.f32 1.5, %v4973_v46  ;;  %6426 = vrsqrt.f32 %v4866_v19  ;;  %vm4996_vm7 = vweird.f32 %v4866_v19 }
 0xf6c   : > { %v9068_v21 = vadd.f32 %v8957_v51, %v5056_v32  ;;  %v4955_v59 = vmul.f32 %v6421_v0, %v4954_v4  ;;  %v4981_v10 = vmul.f32 %v6425_v25, %v9045_v50  ;;  %vm4987_vm3 = vweird.f32 %v6425_v25 }
 0xf6d   : > { %5089 = vst.msk [vmem:[#allocation2 + $0x28] sm:$0xff] %vm1163_vm2, %v9065_v17  ;;  %v4975_v38 = vmul.f32 %v6423_v3, %v4974_v24  ;;  %vm4988_vm5 = vmor %vm4986_vm4, %vm4987_vm3 }
 0xf6e   : > { %5091 = vst.msk [vmem:[#allocation2 + $0x38] sm:$0xff] %vm1163_vm2, %v9068_v21  ;;  %v4959_v36 = vsel %vm4958_vm14, %v6421_v0, %v4955_v59  ;;  %v4982_v43 = vmul.f32 %v6425_v25, %v4981_v10  ;;  %v4831_v8 = vpop.xlane.xlu0 %4830 }
 0xf6f   : > { %v5038_v2 = vmul.f32 %v4959_v36, %v8908_v6  ;;  %v4851_v14 = vmul.f32 %v4831_v8, %v8412_v9  ;;  %v4979_v7 = vsel %vm4978_vm1, %v6423_v3, %v4975_v38 }
 0xf70   : > { %v4983_v26 = vmul.f32 0.5, %v4982_v43  ;;  %v5040_v1 = vmul.f32 %v4979_v7, %v8914_v47 }
 0xf71   : > { %v5057_v37 = vmul.f32 %v8950_v39, %v5038_v2  ;;  %v4867_v56 = vadd.f32 1e-05, %v4851_v14  ;;  %v6427_v13 = vpop.eup %6426 }
 0xf72   : > { %v4984_v31 = vsub.f32 1.5, %v4983_v26  ;;  %v5059_v6 = vmul.f32 %v8950_v39, %v5040_v1  ;;  %v4991_v57 = vmul.f32 %v6427_v13, %v4866_v19  ;;  %vm4997_vm6 = vweird.f32 %v6427_v13 }
 0xf73   : > { %v9082_v18 = vadd.f32 %v8957_v51, %v5057_v37  ;;  %6428 = vrsqrt.f32 %v4867_v56  ;;  %vm4998_vm8 = vmor %vm4996_vm7, %vm4997_vm6  ;;  %vm5006_vm10 = vweird.f32 %v4867_v56 }
 0xf74   : > { %v4985_v22 = vmul.f32 %v6425_v25, %v4984_v31  ;;  %v9089_v52 = vadd.f32 %v8957_v51, %v5059_v6  ;;  %v4992_v15 = vmul.f32 %v6427_v13, %v4991_v57 }
 0xf75   : > { %5092 = vst.msk [vmem:[#allocation2 + $0x40] sm:$0xff] %vm1163_vm2, %v9082_v18 }
 0xf76   : > { %v4989_v47 = vsel %vm4988_vm5, %v6425_v25, %v4985_v22  ;;  %5094 = vst.msk [vmem:[#allocation2 + $0x50] sm:$0xff] %vm1163_vm2, %v9089_v52  ;;  %v4993_v0 = vmul.f32 0.5, %v4992_v15 }
 0xf77   : > { %v5041_v11 = vmul.f32 %v4989_v47, %v8924_v5 }
 0xf78   : > { %v4994_v50 = vsub.f32 1.5, %v4993_v0 }
 0xf79   : > { %v6429_v12 = vpop.eup %6428  ;;  %v5060_v29 = vmul.f32 %v8950_v39, %v5041_v11 }
 0xf7a   : > { %v5001_v60 = vmul.f32 %v6429_v12, %v4867_v56  ;;  %v4995_v3 = vmul.f32 %v6427_v13, %v4994_v50  ;;  %vm5007_vm9 = vweird.f32 %v6429_v12 }
 0xf7b   : > { %v9096_v42 = vadd.f32 %v8957_v51, %v5060_v29  ;;  %vm5008_vm11 = vmor %vm5006_vm10, %vm5007_vm9 }
 0xf7c   : > { %v5002_v35 = vmul.f32 %v6429_v12, %v5001_v60  ;;  %v4999_v5 = vsel %vm4998_vm8, %v6427_v13, %v4995_v3 }
 0xf7d   : > { %5095 = vst.msk [vmem:[#allocation2 + $0x58] sm:$0xff] %vm1163_vm2, %v9096_v42  ;;  %v5042_v55 = vmul.f32 %v4999_v5, %v8931_v27 }
 0xf7e   : > { %v5003_v62 = vmul.f32 0.5, %v5002_v35 }
 0xf7f   : > { %v5061_v16 = vmul.f32 %v8950_v39, %v5042_v55 }
 0xf80   : > { %v5004_v20 = vsub.f32 1.5, %v5003_v62 }
 0xf81   : > { %v5080_v45 = vadd.f32 %v8957_v51, %v5061_v16 }
 0xf82   : > { %v5005_v44 = vmul.f32 %v6429_v12, %v5004_v20 }
 0xf83   : > { %5096 = vst.msk [vmem:[#allocation2 + $0x60] sm:$0xff] %vm1163_vm2, %v5080_v45 }
 0xf84   : > { %v5009_v61 = vsel %vm5008_vm11, %v6429_v12, %v5005_v44 }
 0xf85   : > { %v5043_v34 = vmul.f32 %v5009_v61, %v8938_v54 }
 0xf87   : > { %v5062_v23 = vmul.f32 %v8950_v39, %v5043_v34 }
 0xf89   : > { %v5081_v41 = vadd.f32 %v8957_v51, %v5062_v23 }
 0xf8b   : > { %5097 = vst.msk [vmem:[#allocation2 + $0x68] sm:$0xff] %vm1163_vm2, %v5081_v41 }
 0xfb3   : > { %v4834_v27 = vpop.xlane.xlu2 %4833 }
 0xfb4   : > { %v4852_v32 = vmul.f32 %v4834_v27, %v8412_v9 }
 0xfb6   : > { %v4868_v4 = vadd.f32 1e-05, %v4852_v32 }
 0xfb8   : > { %6430 = vrsqrt.f32 %v4868_v4  ;;  %vm5016_vm13 = vweird.f32 %v4868_v4 }
 0xfbb   : > { %v4837_v19 = vpop.xlane.xlu1 %4836 }
 0xfbc   : > { %v4853_v25 = vmul.f32 %v4837_v19, %v8412_v9 }
 0xfbe   : > { %v6431_v46 = vpop.eup %6430  ;;  %v4869_v59 = vadd.f32 1e-05, %v4853_v25 }
 0xfbf   : > { %v5011_v10 = vmul.f32 %v6431_v46, %v4868_v4  ;;  %vm5017_vm12 = vweird.f32 %v6431_v46 }
 0xfc0   : > { %6432 = vrsqrt.f32 %v4869_v59  ;;  %vm5018_vm14 = vmor %vm5016_vm13, %vm5017_vm12  ;;  %vm5026_vm0 = vweird.f32 %v4869_v59 }
 0xfc1   : > { %v5012_v24 = vmul.f32 %v6431_v46, %v5011_v10 }
 0xfc3   : > { %v5013_v54 = vmul.f32 0.5, %v5012_v24 }
 0xfc5   : > { %v5014_v36 = vsub.f32 1.5, %v5013_v54 }
 0xfc6   : > { %v6433_v43 = vpop.eup %6432 }
 0xfc7   : > { %v5015_v8 = vmul.f32 %v6431_v46, %v5014_v36  ;;  %v5021_v2 = vmul.f32 %v6433_v43, %v4869_v59  ;;  %vm5027_vm15 = vweird.f32 %v6433_v43 }
 0xfc8   : > { %vm5028_vm1 = vmor %vm5026_vm0, %vm5027_vm15 }
 0xfc9   : > { %v5019_v38 = vsel %vm5018_vm14, %v6431_v46, %v5015_v8  ;;  %v5022_v14 = vmul.f32 %v6433_v43, %v5021_v2 }
 0xfca   : > { %v5044_v26 = vmul.f32 %v5019_v38, %v8983_v53 }
 0xfcb   : > { %v5023_v37 = vmul.f32 0.5, %v5022_v14 }
 0xfcc   : > { %v5063_v9 = vmul.f32 %v8950_v39, %v5044_v26 }
 0xfcd   : > { %v5024_v7 = vsub.f32 1.5, %v5023_v37 }
 0xfce   : > { %v5082_v56 = vadd.f32 %v8957_v51, %v5063_v9 }
 0xfcf   : > { %v5025_v1 = vmul.f32 %v6433_v43, %v5024_v7 }
 0xfd0   : > { %5098 = vst.msk [vmem:[#allocation2 + $0x70] sm:$0xff] %vm1163_vm2, %v5082_v56 }
 0xfd1   : > { %v5029_v31 = vsel %vm5028_vm1, %v6433_v43, %v5025_v1 }
 0xfd2   : > { %v5045_v13 = vmul.f32 %v5029_v31, %v8992_v40 }
 0xfd4   : > { %v5064_v6 = vmul.f32 %v8950_v39, %v5045_v13  ;;  %5103 = sbr.rel (%p5887_p4) target bundleno = 4073 (0xfe9), region = 100 }
 0xfd6   : > { %v5083_v22 = vadd.f32 %v8957_v51, %v5064_v6 }
 0xfd8   : > { %5099 = vst.msk [vmem:[#allocation2 + $0x78] sm:$0xff] %vm1163_vm2, %v5083_v22 }
 0xfd9   : > { %5104 = vst.msk [vmem:[%s6838_s13] sm:$0xff] %vm1163_vm2, %v8962_v63 }
 0xfda   : > { %5105 = vst.msk [vmem:[%s6838_s13 + $0x8] sm:$0xff] %vm1163_vm2, %v9023_v48 }
 0xfdb   : > { %5106 = vst.msk [vmem:[%s6838_s13 + $0x10] sm:$0xff] %vm1163_vm2, %v9043_v28 }
 0xfdc   : > { %5107 = vst.msk [vmem:[%s6838_s13 + $0x18] sm:$0xff] %vm1163_vm2, %v8970_v58 }
 0xfdd   : > { %5108 = vst.msk [vmem:[%s6838_s13 + $0x20] sm:$0xff] %vm1163_vm2, %v9048_v30 }
 0xfde   : > { %5109 = vst.msk [vmem:[%s6838_s13 + $0x28] sm:$0xff] %vm1163_vm2, %v9065_v17 }
 0xfdf   : > { %5110 = vst.msk [vmem:[%s6838_s13 + $0x30] sm:$0xff] %vm1163_vm2, %v8977_v33 }
 0xfe0   : > { %5111 = vst.msk [vmem:[%s6838_s13 + $0x38] sm:$0xff] %vm1163_vm2, %v9068_v21 }
 0xfe1   : > { %5112 = vst.msk [vmem:[%s6838_s13 + $0x40] sm:$0xff] %vm1163_vm2, %v9082_v18 }
 0xfe2   : > { %5113 = vst.msk [vmem:[%s6838_s13 + $0x48] sm:$0xff] %vm1163_vm2, %v9018_v49 }
 0xfe3   : > { %5114 = vst.msk [vmem:[%s6838_s13 + $0x50] sm:$0xff] %vm1163_vm2, %v9089_v52 }
 0xfe4   : > { %5115 = vst.msk [vmem:[%s6838_s13 + $0x58] sm:$0xff] %vm1163_vm2, %v9096_v42 }
 0xfe5   : > { %5116 = vst.msk [vmem:[%s6838_s13 + $0x60] sm:$0xff] %vm1163_vm2, %v5080_v45 }
 0xfe6   : > { %5117 = vst.msk [vmem:[%s6838_s13 + $0x68] sm:$0xff] %vm1163_vm2, %v5081_v41 }
 0xfe7   : > { %5118 = vst.msk [vmem:[%s6838_s13 + $0x70] sm:$0xff] %vm1163_vm2, %v5082_v56 }
 0xfe8   : > { %5119 = vst.msk [vmem:[%s6838_s13 + $0x78] sm:$0xff] %vm1163_vm2, %v5083_v22 }
 0xfe9 PF: > { %s9333_s4 = sld [smem:[#allocation15_spill]] }
 0xfea   : > { %s9334_s21 = sld [smem:[#allocation11_spill]] }
 0xfeb   : > { %s9335_s22 = sld [smem:[#allocation12_spill]] }
 0xfec   : > { %s9336_s23 = sld [smem:[#allocation18_spill]] }
 0xfed   : > { %s9337_s24 = sld [smem:[#allocation13_spill]] }
 0xfee   : > { %s9338_s25 = sld [smem:[#allocation14_spill]] }
 0xfef   : > { %s32_s28 = sadd.s32 1, %s9333_s4   ;;  %s9339_s26 = sld [smem:[#allocation16_spill]] }
 0xff0   : > { %p29_p5 = scmp.ge.s32.totalorder %s32_s28, 6   ;;  %s9340_s27 = sld [smem:[#allocation17_spill]] }
 0xff2   :  { %31 = sbr.rel (!%p29_p5) target bundleno = 20 (0x14), region = 179 }
 0xff7   :  { %5142 = vsyncpa [#allocation6], 1 }
 0xff8   :  { %5144 = vsyncpa [#allocation6 + $0x1], 1 }
 0xff9   :  { %5145 = vsyncpa [#allocation8], 1 }
 0xffa   :  { %5147 = vsyncpa [#allocation8 + $0x1], 1 }

</bundles_post_ra>
